<compile_context>
chip_gen: v7x
topology: tpu7x:2x2x1
jax: 0.10.0
libtpu: 0.0.40
codegen_flags: <defaults>
</compile_context>

<pallas_src>
import functools

import numpy as np

import jax
import jax.numpy as jnp
from jax.experimental import pallas as pl
from jax.experimental.pallas import tpu as pltpu

# ----------------------------- hyper-parameters -----------------------------
B = 2                      # batch
WIN = 64                   # STFT window
HOP = 32                   # STFT hop
N_FRAMES = 16              # time frames
T = WIN + (N_FRAMES - 1) * HOP          # 544 waveform samples
N_BINS = WIN // 2 + 1      # rfft bins = 33
N_BINS_PAD = 64            # lane-friendly padded bin count
N_MELS = 16                # mel bands (spectrogram height)
PATCH = 4                  # patch size (both freq and time)
HF = N_MELS // PATCH       # patches along freq = 4
WT = N_FRAMES // PATCH     # patches along time = 4
NPATCH = HF * WT           # 16
D = 32                     # embed dim
NH = 2                     # attention heads
HD = D // NH               # head dim = 16
MLP = 64                   # MLP hidden
DEPTH = 2                  # transformer blocks
S = NPATCH + 2             # sequence length (cls + dist + patches) = 18
N_CLASSES = 183            # as in PaSSTMTG default
N_CLASSES_PAD = 256        # lane-dense padded head width

_LN_EPS = 1e-6


# ------------------------------ small helpers --------------------------------
def _ln(v, g, b):
    """LayerNorm over last axis; g/b are [1, D] arrays (broadcast over rows)."""
    m = jnp.mean(v, axis=-1, keepdims=True)
    var = jnp.mean((v - m) ** 2, axis=-1, keepdims=True)
    return (v - m) * jax.lax.rsqrt(var + _LN_EPS) * g + b


def _gelu(v):
    # tanh-approx GELU (EUP-friendly). TODO(synk): timm PaSST uses exact erf GELU.
    return 0.5 * v * (1.0 + jnp.tanh(0.7978845608028654 * (v + 0.044715 * v * v * v)))


# ------------------------------ the fused kernel ------------------------------
def passt_kernel(frames_ref, dft_ref, melfb_ref, s_sel_ref, wpe_blk_ref,
                 r_sel_ref, c_sel_ref, base_ref, lnb_ref,
                 wqkv_ref, bqkv_ref, wo_ref, bo_ref,
                 w1_ref, b1_ref, w2_ref, b2_ref,
                 lnf_ref, whead_ref, bhead_ref, o_ref):
    f32 = jnp.float32

    # ---- front-end: windowed frames -> (re|im) DFT -> power -> mel -> log ----
    spec = jnp.dot(frames_ref[...], dft_ref[...], preferred_element_type=f32)  # [B*NF,128]
    re = spec[:, :N_BINS_PAD]
    im = spec[:, N_BINS_PAD:]
    power = re * re + im * im                                                   # [B*NF,64]
    mel = jnp.dot(power, melfb_ref[...], preferred_element_type=f32)            # [B*NF,16]
    logmel = jnp.log(mel + 1e-5)

    # ---- patch embedding (im2col folded into constant selector matmuls) ----
    # E[(b,wt), hf*D+d] = sum_{ph,pw} logmel[b*NF+wt*P+pw, hf*P+ph] * Wpe[ph*P+pw, d]
    e = jnp.zeros((B * WT, HF * D), f32)
    for pw in range(PATCH):
        rows = jnp.dot(s_sel_ref[pw], logmel, preferred_element_type=f32)       # [B*WT,16]
        e = e + jnp.dot(rows, wpe_blk_ref[pw], preferred_element_type=f32)      # [B*WT,128]

    # ---- token matrix [B*S, D]: base (cls/dist/pos/bias) + scattered patches ----
    x = base_ref[...]
    for hf in range(HF):
        t = jnp.dot(r_sel_ref[hf], e, preferred_element_type=f32)               # [B*S,128]
        x = x + jnp.dot(t, c_sel_ref[hf], preferred_element_type=f32)           # [B*S,D]

    # ---- transformer blocks (static loop, stacked [DEPTH,...] weights) ----
    scale = 1.0 / (HD ** 0.5)
    for dep in range(DEPTH):
        lnb = lnb_ref[dep]                                                       # [4, D]
        h = _ln(x, lnb[0:1, :], lnb[1:2, :])
        qkv = jnp.dot(h, wqkv_ref[dep], preferred_element_type=f32) + bqkv_ref[dep]
        per_batch = []
        for b in range(B):
            qkv_b = qkv[b * S:(b + 1) * S, :]                                    # [S, 3D]
            heads = []
            for hh in range(NH):
                q = qkv_b[:, hh * HD:(hh + 1) * HD]
                k = qkv_b[:, D + hh * HD:D + (hh + 1) * HD]
                v = qkv_b[:, 2 * D + hh * HD:2 * D + (hh + 1) * HD]
                s = jnp.einsum('qd,kd->qk', q, k,
                               preferred_element_type=f32) * scale              # [S, S]
                s = s - jnp.max(s, axis=-1, keepdims=True)
                ex = jnp.exp(s)
                p = ex * pl.reciprocal(jnp.sum(ex, axis=-1, keepdims=True),
                                       approx=True)
                heads.append(jnp.dot(p, v, preferred_element_type=f32))          # [S, HD]
            per_batch.append(jnp.concatenate(heads, axis=1))                     # [S, D]
        attn = jnp.concatenate(per_batch, axis=0)                                # [B*S, D]
        attn = jnp.dot(attn, wo_ref[dep], preferred_element_type=f32) + bo_ref[dep]
        x = x + attn

        h2 = _ln(x, lnb[2:3, :], lnb[3:4, :])
        m = jnp.dot(h2, w1_ref[dep], preferred_element_type=f32) + b1_ref[dep]
        m = _gelu(m)
        m = jnp.dot(m, w2_ref[dep], preferred_element_type=f32) + b2_ref[dep]
        x = x + m

    # ---- final norm on cls/dist, average, head (LN + Linear), sigmoid ----
    lnf = lnf_ref[...]                                                           # [4, D]
    cls = jnp.concatenate([x[b * S:b * S + 1, :] for b in range(B)], axis=0)     # [B, D]
    dst = jnp.concatenate([x[b * S + 1:b * S + 2, :] for b in range(B)], axis=0)
    pooled = 0.5 * (_ln(cls, lnf[0:1, :], lnf[1:2, :])
                    + _ln(dst, lnf[0:1, :], lnf[1:2, :]))
    hpool = _ln(pooled, lnf[2:3, :], lnf[3:4, :])
    logits = jnp.dot(hpool, whead_ref[...], preferred_element_type=f32) + bhead_ref[...]
    o_ref[...] = 1.0 / (1.0 + jnp.exp(-logits))                                  # [B, 256]


_VMEM = pl.BlockSpec(memory_space=pltpu.MemorySpace.VMEM)


# --------------------- static (parameter-independent) matrices ----------------
def make_static_matrices():
    # DFT with Hann window folded in; cos | sin, each lane-padded to 64 -> [WIN, 128]
    n = np.arange(WIN)[:, None].astype(np.float64)
    k = np.arange(N_BINS)[None, :].astype(np.float64)
    hann = 0.5 - 0.5 * np.cos(2.0 * np.pi * np.arange(WIN) / WIN)
    ang = 2.0 * np.pi * n * k / WIN
    cos_w = hann[:, None] * np.cos(ang)
    sin_w = -hann[:, None] * np.sin(ang)       # sign irrelevant: only |X|^2 used
    dft = np.zeros((WIN, 2 * N_BINS_PAD), np.float32)
    dft[:, :N_BINS] = cos_w
    dft[:, N_BINS_PAD:N_BINS_PAD + N_BINS] = sin_w

    # simplified triangular filterbank on linear frequency axis, bin-padded rows
    centers = np.linspace(0.0, N_BINS - 1.0, N_MELS + 2)
    bins = np.arange(N_BINS, dtype=np.float64)
    melfb = np.zeros((N_BINS_PAD, N_MELS), np.float32)
    for m in range(N_MELS):
        l, c, r = centers[m], centers[m + 1], centers[m + 2]
        up = (bins - l) / (c - l)
        down = (r - bins) / (r - c)
        melfb[:N_BINS, m] = np.clip(np.minimum(up, down), 0.0, None)

    # row selector: S_pw[(b,wt), b*NF + wt*P + pw] = 1
    s_sel = np.zeros((PATCH, B * WT, B * N_FRAMES), np.float32)
    for pw in range(PATCH):
        for b in range(B):
            for wt in range(WT):
                s_sel[pw, b * WT + wt, b * N_FRAMES + wt * PATCH + pw] = 1.0

    # scatter of E rows into token rows: R_hf[b*S+2+hf*WT+wt, b*WT+wt] = 1
    r_sel = np.zeros((HF, B * S, B * WT), np.float32)
    for hf in range(HF):
        for b in range(B):
            for wt in range(WT):
                r_sel[hf, b * S + 2 + hf * WT + wt, b * WT + wt] = 1.0

    # column selector: C_hf[hf*D+d, d] = 1
    c_sel = np.zeros((HF, HF * D, D), np.float32)
    for hf in range(HF):
        for d in range(D):
            c_sel[hf, hf * D + d, d] = 1.0

    return dict(dft=jnp.asarray(dft), melfb=jnp.asarray(melfb),
                s_sel=jnp.asarray(s_sel), r_sel=jnp.asarray(r_sel),
                c_sel=jnp.asarray(c_sel))


# --------------------------------- parameters ---------------------------------
def init_params(key):
    keys = jax.random.split(key, 7 + DEPTH)
    g = lambda k, shape: 0.02 * jax.random.normal(k, shape, jnp.float32)
    p = {
        "w_pe": g(keys[0], (PATCH * PATCH, D)),
        "b_pe": jnp.zeros((1, D), jnp.float32),
        "freq_pos": g(keys[1], (HF, D)),
        "time_pos": g(keys[2], (WT, D)),
        "tok_pos": g(keys[3], (2, D)),
        "cls_tok": g(keys[4], (1, D)),
        "dist_tok": g(keys[5], (1, D)),
        "lnf_g": jnp.ones((1, D), jnp.float32), "lnf_b": jnp.zeros((1, D), jnp.float32),
        "lnh_g": jnp.ones((1, D), jnp.float32), "lnh_b": jnp.zeros((1, D), jnp.float32),
        "w_head": g(keys[6], (D, N_CLASSES)),
        "b_head": jnp.zeros((1, N_CLASSES), jnp.float32),
        "blocks": [],
    }
    for i in range(DEPTH):
        bk = jax.random.split(keys[7 + i], 4)
        p["blocks"].append(dict(
            ln1_g=jnp.ones((1, D), jnp.float32), ln1_b=jnp.zeros((1, D), jnp.float32),
            w_qkv=g(bk[0], (D, 3 * D)), b_qkv=jnp.zeros((1, 3 * D), jnp.float32),
            w_o=g(bk[1], (D, D)), b_o=jnp.zeros((1, D), jnp.float32),
            ln2_g=jnp.ones((1, D), jnp.float32), ln2_b=jnp.zeros((1, D), jnp.float32),
            w_1=g(bk[2], (D, MLP)), b_1=jnp.zeros((1, MLP), jnp.float32),
            w_2=g(bk[3], (MLP, D)), b_2=jnp.zeros((1, D), jnp.float32),
        ))
    return p


def prepare_params(p):
    """One-time weight preprocessing into the fused-kernel layout (plain JAX)."""
    # block-diagonal patch-embed weights: W_pw[hf*P+ph, hf*D+d] = Wpe[ph*P+pw, d]
    wpe = p["w_pe"].reshape(PATCH, PATCH, D).transpose(1, 0, 2)          # [pw, ph, d]
    eye = jnp.eye(HF, dtype=jnp.float32)
    wpe_blk = jnp.einsum("gh,pqd->pgqhd", eye, wpe).reshape(PATCH, HF * PATCH, HF * D)

    # base token matrix [B*S, D]: cls/dist tokens + tok_pos, patch pos + bias
    pos = (p["freq_pos"][:, None, :] + p["time_pos"][None, :, :]).reshape(NPATCH, D)
    patch_base = pos + p["b_pe"]
    cls_row = p["cls_tok"] + p["tok_pos"][0:1]
    dist_row = p["dist_tok"] + p["tok_pos"][1:2]
    per_b = jnp.concatenate([cls_row, dist_row, patch_base], axis=0)     # [S, D]
    base = jnp.tile(per_b, (B, 1))                                       # [B*S, D]

    blocks = p["blocks"]
    st = lambda name: jnp.stack([bp[name] for bp in blocks], axis=0)
    ln_blocks = jnp.stack(
        [jnp.concatenate([bp["ln1_g"], bp["ln1_b"], bp["ln2_g"], bp["ln2_b"]], axis=0)
         for bp in blocks], axis=0)                                      # [DEPTH, 4, D]
    ln_final = jnp.concatenate(
        [p["lnf_g"], p["lnf_b"], p["lnh_g"], p["lnh_b"]], axis=0)        # [4, D]

    # lane-pad head to 256 classes (zeros -> sigmoid 0.5 in padded cols, sliced off)
    w_head = jnp.zeros((D, N_CLASSES_PAD), jnp.float32).at[:, :N_CLASSES].set(p["w_head"])
    b_head = jnp.zeros((1, N_CLASSES_PAD), jnp.float32).at[:, :N_CLASSES].set(p["b_head"])

    return dict(wpe_blk=wpe_blk, base=base, ln_blocks=ln_blocks,
                w_qkv=st("w_qkv"), b_qkv=st("b_qkv"), w_o=st("w_o"), b_o=st("b_o"),
                w_1=st("w_1"), b_1=st("b_1"), w_2=st("w_2"), b_2=st("b_2"),
                ln_final=ln_final, w_head=w_head, b_head=b_head)


# ----------------------------------- forward ----------------------------------
def passt_mtg_forward(x, prep, static):
    # framing (gather) is the only plain-JAX glue on activations
    idx = jnp.arange(N_FRAMES)[:, None] * HOP + jnp.arange(WIN)[None, :]
    frames = x[:, idx].reshape(B * N_FRAMES, WIN)                        # [B*NF, WIN]

    out_pad = pl.pallas_call(
        passt_kernel,
        out_shape=jax.ShapeDtypeStruct((B, N_CLASSES_PAD), jnp.float32),
        in_specs=[_VMEM] * 20,
        out_specs=_VMEM,
    )(frames, static["dft"], static["melfb"], static["s_sel"], prep["wpe_blk"],
      static["r_sel"], static["c_sel"], prep["base"], prep["ln_blocks"],
      prep["w_qkv"], prep["b_qkv"], prep["w_o"], prep["b_o"],
      prep["w_1"], prep["b_1"], prep["w_2"], prep["b_2"],
      prep["ln_final"], prep["w_head"], prep["b_head"])

    return out_pad[:, :N_CLASSES]


# ------------------------------------ main -------------------------------------
if __name__ == "__main__":
    key = jax.random.PRNGKey(0)
    x = jax.random.normal(key, (B, T), jnp.float32)          # raw waveform [B, T]
    params = init_params(jax.random.PRNGKey(42))
    static = make_static_matrices()
    prep = prepare_params(params)                            # one-time weight prep

    fwd = jax.jit(functools.partial(passt_mtg_forward, static=static))
    out = jax.block_until_ready(fwd(x, prep))

    assert out.shape == (B, N_CLASSES), out.shape
    assert out.dtype == jnp.float32
    assert bool(jnp.all((out >= 0.0) & (out <= 1.0)))         # sigmoid range
    print("KERNEL_OK")
</pallas_src>

<mosaic_0001>
module attributes {stable_mosaic.version = 11 : i64} {
  func.func @passt_kernel(%arg0: memref<32x64xf32, #tpu.memory_space<vmem>>, %arg1: memref<64x128xf32, #tpu.memory_space<vmem>>, %arg2: memref<64x16xf32, #tpu.memory_space<vmem>>, %arg3: memref<4x8x32xf32, #tpu.memory_space<vmem>>, %arg4: memref<4x16x128xf32, #tpu.memory_space<vmem>>, %arg5: memref<4x36x8xf32, #tpu.memory_space<vmem>>, %arg6: memref<4x128x32xf32, #tpu.memory_space<vmem>>, %arg7: memref<36x32xf32, #tpu.memory_space<vmem>>, %arg8: memref<2x4x32xf32, #tpu.memory_space<vmem>>, %arg9: memref<2x32x96xf32, #tpu.memory_space<vmem>>, %arg10: memref<2x1x96xf32, #tpu.memory_space<vmem>>, %arg11: memref<2x32x32xf32, #tpu.memory_space<vmem>>, %arg12: memref<2x1x32xf32, #tpu.memory_space<vmem>>, %arg13: memref<2x32x64xf32, #tpu.memory_space<vmem>>, %arg14: memref<2x1x64xf32, #tpu.memory_space<vmem>>, %arg15: memref<2x64x32xf32, #tpu.memory_space<vmem>>, %arg16: memref<2x1x32xf32, #tpu.memory_space<vmem>>, %arg17: memref<4x32xf32, #tpu.memory_space<vmem>>, %arg18: memref<32x256xf32, #tpu.memory_space<vmem>>, %arg19: memref<1x256xf32, #tpu.memory_space<vmem>>, %arg20: memref<2x256xf32, #tpu.memory_space<vmem>>) attributes {dimension_semantics = [], scalar_prefetch = 0 : i64, scratch_operands = 0 : i64, tpu.core_type = #tpu.core_type<tc>} {
    %c0 = arith.constant 0 : index
    %c0_0 = arith.constant 0 : index
    %0 = vector.load %arg0[%c0, %c0_0] : memref<32x64xf32, #tpu.memory_space<vmem>>, vector<32x64xf32>
    %c0_1 = arith.constant 0 : index
    %c0_2 = arith.constant 0 : index
    %1 = vector.load %arg1[%c0_1, %c0_2] : memref<64x128xf32, #tpu.memory_space<vmem>>, vector<64x128xf32>
    %cst = arith.constant dense<0.000000e+00> : vector<32x128xf32>
    %2 = tpu.matmul %0, %1, %cst {dimension_numbers = #tpu.dot_dimension_numbers<[1], [0], [0], [1], [0, 0, 1, 1], [], []>} : vector<32x64xf32>, vector<64x128xf32>, vector<32x128xf32> -> vector<32x128xf32>
    %3 = vector.extract_strided_slice %2 {offsets = [0, 0], sizes = [32, 64], strides = [1, 1]} : vector<32x128xf32> to vector<32x64xf32>
    %4 = vector.extract_strided_slice %2 {offsets = [0, 64], sizes = [32, 64], strides = [1, 1]} : vector<32x128xf32> to vector<32x64xf32>
    %5 = arith.mulf %3, %3 : vector<32x64xf32>
    %6 = arith.mulf %4, %4 : vector<32x64xf32>
    %7 = arith.addf %5, %6 : vector<32x64xf32>
    %c0_3 = arith.constant 0 : index
    %c0_4 = arith.constant 0 : index
    %8 = vector.load %arg2[%c0_3, %c0_4] : memref<64x16xf32, #tpu.memory_space<vmem>>, vector<64x16xf32>
    %cst_5 = arith.constant dense<0.000000e+00> : vector<32x16xf32>
    %9 = tpu.matmul %7, %8, %cst_5 {dimension_numbers = #tpu.dot_dimension_numbers<[1], [0], [0], [1], [0, 0, 1, 1], [], []>} : vector<32x64xf32>, vector<64x16xf32>, vector<32x16xf32> -> vector<32x16xf32>
    %cst_6 = arith.constant 9.99999974E-6 : f32
    %10 = vector.broadcast %cst_6 : f32 to vector<32x16xf32>
    %11 = arith.addf %9, %10 : vector<32x16xf32>
    %12 = math.log %11 : vector<32x16xf32>
    %cst_7 = arith.constant 0.000000e+00 : f32
    %13 = vector.broadcast %cst_7 : f32 to vector<8x128xf32>
    %c0_8 = arith.constant 0 : index
    %c0_9 = arith.constant 0 : index
    %c0_10 = arith.constant 0 : index
    %14 = vector.load %arg3[%c0_8, %c0_9, %c0_10] : memref<4x8x32xf32, #tpu.memory_space<vmem>>, vector<1x8x32xf32>
    %15 = vector.shape_cast %14 : vector<1x8x32xf32> to vector<8x32xf32>
    %cst_11 = arith.constant dense<0.000000e+00> : vector<8x16xf32>
    %16 = tpu.matmul %15, %12, %cst_11 {dimension_numbers = #tpu.dot_dimension_numbers<[1], [0], [0], [1], [0, 0, 1, 1], [], []>} : vector<8x32xf32>, vector<32x16xf32>, vector<8x16xf32> -> vector<8x16xf32>
    %c0_12 = arith.constant 0 : index
    %c0_13 = arith.constant 0 : index
    %c0_14 = arith.constant 0 : index
    %17 = vector.load %arg4[%c0_12, %c0_13, %c0_14] : memref<4x16x128xf32, #tpu.memory_space<vmem>>, vector<1x16x128xf32>
    %18 = vector.shape_cast %17 : vector<1x16x128xf32> to vector<16x128xf32>
    %cst_15 = arith.constant dense<0.000000e+00> : vector<8x128xf32>
    %19 = tpu.matmul %16, %18, %cst_15 {dimension_numbers = #tpu.dot_dimension_numbers<[1], [0], [0], [1], [0, 0, 1, 1], [], []>} : vector<8x16xf32>, vector<16x128xf32>, vector<8x128xf32> -> vector<8x128xf32>
    %20 = arith.addf %13, %19 : vector<8x128xf32>
    %c1 = arith.constant 1 : index
    %c0_16 = arith.constant 0 : index
    %c0_17 = arith.constant 0 : index
    %21 = vector.load %arg3[%c1, %c0_16, %c0_17] : memref<4x8x32xf32, #tpu.memory_space<vmem>>, vector<1x8x32xf32>
    %22 = vector.shape_cast %21 : vector<1x8x32xf32> to vector<8x32xf32>
    %cst_18 = arith.constant dense<0.000000e+00> : vector<8x16xf32>
    %23 = tpu.matmul %22, %12, %cst_18 {dimension_numbers = #tpu.dot_dimension_numbers<[1], [0], [0], [1], [0, 0, 1, 1], [], []>} : vector<8x32xf32>, vector<32x16xf32>, vector<8x16xf32> -> vector<8x16xf32>
    %c1_19 = arith.constant 1 : index
    %c0_20 = arith.constant 0 : index
    %c0_21 = arith.constant 0 : index
    %24 = vector.load %arg4[%c1_19, %c0_20, %c0_21] : memref<4x16x128xf32, #tpu.memory_space<vmem>>, vector<1x16x128xf32>
    %25 = vector.shape_cast %24 : vector<1x16x128xf32> to vector<16x128xf32>
    %cst_22 = arith.constant dense<0.000000e+00> : vector<8x128xf32>
    %26 = tpu.matmul %23, %25, %cst_22 {dimension_numbers = #tpu.dot_dimension_numbers<[1], [0], [0], [1], [0, 0, 1, 1], [], []>} : vector<8x16xf32>, vector<16x128xf32>, vector<8x128xf32> -> vector<8x128xf32>
    %27 = arith.addf %20, %26 : vector<8x128xf32>
    %c2 = arith.constant 2 : index
    %c0_23 = arith.constant 0 : index
    %c0_24 = arith.constant 0 : index
    %28 = vector.load %arg3[%c2, %c0_23, %c0_24] : memref<4x8x32xf32, #tpu.memory_space<vmem>>, vector<1x8x32xf32>
    %29 = vector.shape_cast %28 : vector<1x8x32xf32> to vector<8x32xf32>
    %cst_25 = arith.constant dense<0.000000e+00> : vector<8x16xf32>
    %30 = tpu.matmul %29, %12, %cst_25 {dimension_numbers = #tpu.dot_dimension_numbers<[1], [0], [0], [1], [0, 0, 1, 1], [], []>} : vector<8x32xf32>, vector<32x16xf32>, vector<8x16xf32> -> vector<8x16xf32>
    %c2_26 = arith.constant 2 : index
    %c0_27 = arith.constant 0 : index
    %c0_28 = arith.constant 0 : index
    %31 = vector.load %arg4[%c2_26, %c0_27, %c0_28] : memref<4x16x128xf32, #tpu.memory_space<vmem>>, vector<1x16x128xf32>
    %32 = vector.shape_cast %31 : vector<1x16x128xf32> to vector<16x128xf32>
    %cst_29 = arith.constant dense<0.000000e+00> : vector<8x128xf32>
    %33 = tpu.matmul %30, %32, %cst_29 {dimension_numbers = #tpu.dot_dimension_numbers<[1], [0], [0], [1], [0, 0, 1, 1], [], []>} : vector<8x16xf32>, vector<16x128xf32>, vector<8x128xf32> -> vector<8x128xf32>
    %34 = arith.addf %27, %33 : vector<8x128xf32>
    %c3 = arith.constant 3 : index
    %c0_30 = arith.constant 0 : index
    %c0_31 = arith.constant 0 : index
    %35 = vector.load %arg3[%c3, %c0_30, %c0_31] : memref<4x8x32xf32, #tpu.memory_space<vmem>>, vector<1x8x32xf32>
    %36 = vector.shape_cast %35 : vector<1x8x32xf32> to vector<8x32xf32>
    %cst_32 = arith.constant dense<0.000000e+00> : vector<8x16xf32>
    %37 = tpu.matmul %36, %12, %cst_32 {dimension_numbers = #tpu.dot_dimension_numbers<[1], [0], [0], [1], [0, 0, 1, 1], [], []>} : vector<8x32xf32>, vector<32x16xf32>, vector<8x16xf32> -> vector<8x16xf32>
    %c3_33 = arith.constant 3 : index
    %c0_34 = arith.constant 0 : index
    %c0_35 = arith.constant 0 : index
    %38 = vector.load %arg4[%c3_33, %c0_34, %c0_35] : memref<4x16x128xf32, #tpu.memory_space<vmem>>, vector<1x16x128xf32>
    %39 = vector.shape_cast %38 : vector<1x16x128xf32> to vector<16x128xf32>
    %cst_36 = arith.constant dense<0.000000e+00> : vector<8x128xf32>
    %40 = tpu.matmul %37, %39, %cst_36 {dimension_numbers = #tpu.dot_dimension_numbers<[1], [0], [0], [1], [0, 0, 1, 1], [], []>} : vector<8x16xf32>, vector<16x128xf32>, vector<8x128xf32> -> vector<8x128xf32>
    %41 = arith.addf %34, %40 : vector<8x128xf32>
    %c0_37 = arith.constant 0 : index
    %c0_38 = arith.constant 0 : index
    %42 = vector.load %arg7[%c0_37, %c0_38] : memref<36x32xf32, #tpu.memory_space<vmem>>, vector<36x32xf32>
    %c0_39 = arith.constant 0 : index
    %c0_40 = arith.constant 0 : index
    %c0_41 = arith.constant 0 : index
    %43 = vector.load %arg5[%c0_39, %c0_40, %c0_41] : memref<4x36x8xf32, #tpu.memory_space<vmem>>, vector<1x36x8xf32>
    %44 = vector.shape_cast %43 : vector<1x36x8xf32> to vector<36x8xf32>
    %cst_42 = arith.constant dense<0.000000e+00> : vector<36x128xf32>
    %45 = tpu.matmul %44, %41, %cst_42 {dimension_numbers = #tpu.dot_dimension_numbers<[1], [0], [0], [1], [0, 0, 1, 1], [], []>} : vector<36x8xf32>, vector<8x128xf32>, vector<36x128xf32> -> vector<36x128xf32>
    %c0_43 = arith.constant 0 : index
    %c0_44 = arith.constant 0 : index
    %c0_45 = arith.constant 0 : index
    %46 = vector.load %arg6[%c0_43, %c0_44, %c0_45] : memref<4x128x32xf32, #tpu.memory_space<vmem>>, vector<1x128x32xf32>
    %47 = vector.shape_cast %46 : vector<1x128x32xf32> to vector<128x32xf32>
    %cst_46 = arith.constant dense<0.000000e+00> : vector<36x32xf32>
    %48 = tpu.matmul %45, %47, %cst_46 {dimension_numbers = #tpu.dot_dimension_numbers<[1], [0], [0], [1], [0, 0, 1, 1], [], []>} : vector<36x128xf32>, vector<128x32xf32>, vector<36x32xf32> -> vector<36x32xf32>
    %49 = arith.addf %42, %48 : vector<36x32xf32>
    %c1_47 = arith.constant 1 : index
    %c0_48 = arith.constant 0 : index
    %c0_49 = arith.constant 0 : index
    %50 = vector.load %arg5[%c1_47, %c0_48, %c0_49] : memref<4x36x8xf32, #tpu.memory_space<vmem>>, vector<1x36x8xf32>
    %51 = vector.shape_cast %50 : vector<1x36x8xf32> to vector<36x8xf32>
    %cst_50 = arith.constant dense<0.000000e+00> : vector<36x128xf32>
    %52 = tpu.matmul %51, %41, %cst_50 {dimension_numbers = #tpu.dot_dimension_numbers<[1], [0], [0], [1], [0, 0, 1, 1], [], []>} : vector<36x8xf32>, vector<8x128xf32>, vector<36x128xf32> -> vector<36x128xf32>
    %c1_51 = arith.constant 1 : index
    %c0_52 = arith.constant 0 : index
    %c0_53 = arith.constant 0 : index
    %53 = vector.load %arg6[%c1_51, %c0_52, %c0_53] : memref<4x128x32xf32, #tpu.memory_space<vmem>>, vector<1x128x32xf32>
    %54 = vector.shape_cast %53 : vector<1x128x32xf32> to vector<128x32xf32>
    %cst_54 = arith.constant dense<0.000000e+00> : vector<36x32xf32>
    %55 = tpu.matmul %52, %54, %cst_54 {dimension_numbers = #tpu.dot_dimension_numbers<[1], [0], [0], [1], [0, 0, 1, 1], [], []>} : vector<36x128xf32>, vector<128x32xf32>, vector<36x32xf32> -> vector<36x32xf32>
    %56 = arith.addf %49, %55 : vector<36x32xf32>
    %c2_55 = arith.constant 2 : index
    %c0_56 = arith.constant 0 : index
    %c0_57 = arith.constant 0 : index
    %57 = vector.load %arg5[%c2_55, %c0_56, %c0_57] : memref<4x36x8xf32, #tpu.memory_space<vmem>>, vector<1x36x8xf32>
    %58 = vector.shape_cast %57 : vector<1x36x8xf32> to vector<36x8xf32>
    %cst_58 = arith.constant dense<0.000000e+00> : vector<36x128xf32>
    %59 = tpu.matmul %58, %41, %cst_58 {dimension_numbers = #tpu.dot_dimension_numbers<[1], [0], [0], [1], [0, 0, 1, 1], [], []>} : vector<36x8xf32>, vector<8x128xf32>, vector<36x128xf32> -> vector<36x128xf32>
    %c2_59 = arith.constant 2 : index
    %c0_60 = arith.constant 0 : index
    %c0_61 = arith.constant 0 : index
    %60 = vector.load %arg6[%c2_59, %c0_60, %c0_61] : memref<4x128x32xf32, #tpu.memory_space<vmem>>, vector<1x128x32xf32>
    %61 = vector.shape_cast %60 : vector<1x128x32xf32> to vector<128x32xf32>
    %cst_62 = arith.constant dense<0.000000e+00> : vector<36x32xf32>
    %62 = tpu.matmul %59, %61, %cst_62 {dimension_numbers = #tpu.dot_dimension_numbers<[1], [0], [0], [1], [0, 0, 1, 1], [], []>} : vector<36x128xf32>, vector<128x32xf32>, vector<36x32xf32> -> vector<36x32xf32>
    %63 = arith.addf %56, %62 : vector<36x32xf32>
    %c3_63 = arith.constant 3 : index
    %c0_64 = arith.constant 0 : index
    %c0_65 = arith.constant 0 : index
    %64 = vector.load %arg5[%c3_63, %c0_64, %c0_65] : memref<4x36x8xf32, #tpu.memory_space<vmem>>, vector<1x36x8xf32>
    %65 = vector.shape_cast %64 : vector<1x36x8xf32> to vector<36x8xf32>
    %cst_66 = arith.constant dense<0.000000e+00> : vector<36x128xf32>
    %66 = tpu.matmul %65, %41, %cst_66 {dimension_numbers = #tpu.dot_dimension_numbers<[1], [0], [0], [1], [0, 0, 1, 1], [], []>} : vector<36x8xf32>, vector<8x128xf32>, vector<36x128xf32> -> vector<36x128xf32>
    %c3_67 = arith.constant 3 : index
    %c0_68 = arith.constant 0 : index
    %c0_69 = arith.constant 0 : index
    %67 = vector.load %arg6[%c3_67, %c0_68, %c0_69] : memref<4x128x32xf32, #tpu.memory_space<vmem>>, vector<1x128x32xf32>
    %68 = vector.shape_cast %67 : vector<1x128x32xf32> to vector<128x32xf32>
    %cst_70 = arith.constant dense<0.000000e+00> : vector<36x32xf32>
    %69 = tpu.matmul %66, %68, %cst_70 {dimension_numbers = #tpu.dot_dimension_numbers<[1], [0], [0], [1], [0, 0, 1, 1], [], []>} : vector<36x128xf32>, vector<128x32xf32>, vector<36x32xf32> -> vector<36x32xf32>
    %70 = arith.addf %63, %69 : vector<36x32xf32>
    %c0_71 = arith.constant 0 : index
    %c0_72 = arith.constant 0 : index
    %c0_73 = arith.constant 0 : index
    %71 = vector.load %arg8[%c0_71, %c0_72, %c0_73] : memref<2x4x32xf32, #tpu.memory_space<vmem>>, vector<1x4x32xf32>
    %72 = vector.shape_cast %71 : vector<1x4x32xf32> to vector<4x32xf32>
    %73 = vector.extract_strided_slice %72 {offsets = [0, 0], sizes = [1, 32], strides = [1, 1]} : vector<4x32xf32> to vector<1x32xf32>
    %74 = vector.extract_strided_slice %72 {offsets = [1, 0], sizes = [1, 32], strides = [1, 1]} : vector<4x32xf32> to vector<1x32xf32>
    %cst_74 = arith.constant dense<0.000000e+00> : vector<36xf32>
    %75 = vector.multi_reduction <add>, %70, %cst_74 [1] : vector<36x32xf32> to vector<36xf32>
    %76 = vector.shape_cast %75 : vector<36xf32> to vector<36x1xf32>
    %cst_75 = arith.constant 3.200000e+01 : f32
    %77 = vector.broadcast %cst_75 : f32 to vector<36x1xf32>
    %78 = arith.divf %76, %77 : vector<36x1xf32>
    %79 = vector.broadcast %78 : vector<36x1xf32> to vector<36x32xf32>
    %80 = arith.subf %70, %79 : vector<36x32xf32>
    %81 = arith.mulf %80, %80 : vector<36x32xf32>
    %cst_76 = arith.constant dense<0.000000e+00> : vector<36xf32>
    %82 = vector.multi_reduction <add>, %81, %cst_76 [1] : vector<36x32xf32> to vector<36xf32>
    %83 = vector.shape_cast %82 : vector<36xf32> to vector<36x1xf32>
    %cst_77 = arith.constant 3.200000e+01 : f32
    %84 = vector.broadcast %cst_77 : f32 to vector<36x1xf32>
    %85 = arith.divf %83, %84 : vector<36x1xf32>
    %86 = vector.broadcast %78 : vector<36x1xf32> to vector<36x32xf32>
    %87 = arith.subf %70, %86 : vector<36x32xf32>
    %cst_78 = arith.constant 9.99999997E-7 : f32
    %88 = vector.broadcast %cst_78 : f32 to vector<36x1xf32>
    %89 = arith.addf %85, %88 : vector<36x1xf32>
    %90 = math.rsqrt %89 : vector<36x1xf32>
    %91 = vector.broadcast %90 : vector<36x1xf32> to vector<36x32xf32>
    %92 = arith.mulf %87, %91 : vector<36x32xf32>
    %93 = vector.broadcast %73 : vector<1x32xf32> to vector<36x32xf32>
    %94 = arith.mulf %92, %93 : vector<36x32xf32>
    %95 = vector.broadcast %74 : vector<1x32xf32> to vector<36x32xf32>
    %96 = arith.addf %94, %95 : vector<36x32xf32>
    %c0_79 = arith.constant 0 : index
    %c0_80 = arith.constant 0 : index
    %c0_81 = arith.constant 0 : index
    %97 = vector.load %arg9[%c0_79, %c0_80, %c0_81] : memref<2x32x96xf32, #tpu.memory_space<vmem>>, vector<1x32x96xf32>
    %98 = vector.shape_cast %97 : vector<1x32x96xf32> to vector<32x96xf32>
    %cst_82 = arith.constant dense<0.000000e+00> : vector<36x96xf32>
    %99 = tpu.matmul %96, %98, %cst_82 {dimension_numbers = #tpu.dot_dimension_numbers<[1], [0], [0], [1], [0, 0, 1, 1], [], []>} : vector<36x32xf32>, vector<32x96xf32>, vector<36x96xf32> -> vector<36x96xf32>
    %c0_83 = arith.constant 0 : index
    %c0_84 = arith.constant 0 : index
    %c0_85 = arith.constant 0 : index
    %100 = vector.load %arg10[%c0_83, %c0_84, %c0_85] : memref<2x1x96xf32, #tpu.memory_space<vmem>>, vector<1x1x96xf32>
    %101 = vector.shape_cast %100 : vector<1x1x96xf32> to vector<1x96xf32>
    %102 = vector.broadcast %101 : vector<1x96xf32> to vector<36x96xf32>
    %103 = arith.addf %99, %102 : vector<36x96xf32>
    %104 = vector.extract_strided_slice %103 {offsets = [0, 0], sizes = [18, 96], strides = [1, 1]} : vector<36x96xf32> to vector<18x96xf32>
    %105 = vector.extract_strided_slice %104 {offsets = [0, 0], sizes = [18, 16], strides = [1, 1]} : vector<18x96xf32> to vector<18x16xf32>
    %106 = vector.extract_strided_slice %104 {offsets = [0, 32], sizes = [18, 16], strides = [1, 1]} : vector<18x96xf32> to vector<18x16xf32>
    %107 = vector.extract_strided_slice %104 {offsets = [0, 64], sizes = [18, 16], strides = [1, 1]} : vector<18x96xf32> to vector<18x16xf32>
    "tpu.trace_start"() <{level = 10 : i32, message = "qd,kd->qk"}> : () -> ()
    %cst_86 = arith.constant dense<0.000000e+00> : vector<18x18xf32>
    %108 = tpu.matmul %105, %106, %cst_86 {dimension_numbers = #tpu.dot_dimension_numbers<[1], [1], [0], [0], [0, 0, 1, 0], [], []>} : vector<18x16xf32>, vector<18x16xf32>, vector<18x18xf32> -> vector<18x18xf32>
    "tpu.trace_stop"() : () -> ()
    %cst_87 = arith.constant 2.500000e-01 : f32
    %109 = vector.broadcast %cst_87 : f32 to vector<18x18xf32>
    %110 = arith.mulf %108, %109 : vector<18x18xf32>
    %cst_88 = arith.constant dense<0xFF800000> : vector<18xf32>
    %111 = vector.multi_reduction <maximumf>, %110, %cst_88 [1] : vector<18x18xf32> to vector<18xf32>
    %112 = vector.shape_cast %111 : vector<18xf32> to vector<18x1xf32>
    %113 = vector.broadcast %112 : vector<18x1xf32> to vector<18x18xf32>
    %114 = arith.subf %110, %113 : vector<18x18xf32>
    %115 = math.exp %114 : vector<18x18xf32>
    %cst_89 = arith.constant dense<0.000000e+00> : vector<18xf32>
    %116 = vector.multi_reduction <add>, %115, %cst_89 [1] : vector<18x18xf32> to vector<18xf32>
    %117 = vector.shape_cast %116 : vector<18xf32> to vector<18x1xf32>
    %118 = tpu.reciprocal %117 {approx = true} : vector<18x1xf32> -> vector<18x1xf32>
    %119 = vector.broadcast %118 : vector<18x1xf32> to vector<18x18xf32>
    %120 = arith.mulf %115, %119 : vector<18x18xf32>
    %cst_90 = arith.constant dense<0.000000e+00> : vector<18x16xf32>
    %121 = tpu.matmul %120, %107, %cst_90 {dimension_numbers = #tpu.dot_dimension_numbers<[1], [0], [0], [1], [0, 0, 1, 1], [], []>} : vector<18x18xf32>, vector<18x16xf32>, vector<18x16xf32> -> vector<18x16xf32>
    %122 = vector.extract_strided_slice %104 {offsets = [0, 16], sizes = [18, 16], strides = [1, 1]} : vector<18x96xf32> to vector<18x16xf32>
    %123 = vector.extract_strided_slice %104 {offsets = [0, 48], sizes = [18, 16], strides = [1, 1]} : vector<18x96xf32> to vector<18x16xf32>
    %124 = vector.extract_strided_slice %104 {offsets = [0, 80], sizes = [18, 16], strides = [1, 1]} : vector<18x96xf32> to vector<18x16xf32>
    "tpu.trace_start"() <{level = 10 : i32, message = "qd,kd->qk"}> : () -> ()
    %cst_91 = arith.constant dense<0.000000e+00> : vector<18x18xf32>
    %125 = tpu.matmul %122, %123, %cst_91 {dimension_numbers = #tpu.dot_dimension_numbers<[1], [1], [0], [0], [0, 0, 1, 0], [], []>} : vector<18x16xf32>, vector<18x16xf32>, vector<18x18xf32> -> vector<18x18xf32>
    "tpu.trace_stop"() : () -> ()
    %cst_92 = arith.constant 2.500000e-01 : f32
    %126 = vector.broadcast %cst_92 : f32 to vector<18x18xf32>
    %127 = arith.mulf %125, %126 : vector<18x18xf32>
    %cst_93 = arith.constant dense<0xFF800000> : vector<18xf32>
    %128 = vector.multi_reduction <maximumf>, %127, %cst_93 [1] : vector<18x18xf32> to vector<18xf32>
    %129 = vector.shape_cast %128 : vector<18xf32> to vector<18x1xf32>
    %130 = vector.broadcast %129 : vector<18x1xf32> to vector<18x18xf32>
    %131 = arith.subf %127, %130 : vector<18x18xf32>
    %132 = math.exp %131 : vector<18x18xf32>
    %cst_94 = arith.constant dense<0.000000e+00> : vector<18xf32>
    %133 = vector.multi_reduction <add>, %132, %cst_94 [1] : vector<18x18xf32> to vector<18xf32>
    %134 = vector.shape_cast %133 : vector<18xf32> to vector<18x1xf32>
    %135 = tpu.reciprocal %134 {approx = true} : vector<18x1xf32> -> vector<18x1xf32>
    %136 = vector.broadcast %135 : vector<18x1xf32> to vector<18x18xf32>
    %137 = arith.mulf %132, %136 : vector<18x18xf32>
    %cst_95 = arith.constant dense<0.000000e+00> : vector<18x16xf32>
    %138 = tpu.matmul %137, %124, %cst_95 {dimension_numbers = #tpu.dot_dimension_numbers<[1], [0], [0], [1], [0, 0, 1, 1], [], []>} : vector<18x18xf32>, vector<18x16xf32>, vector<18x16xf32> -> vector<18x16xf32>
    %139 = tpu.concatenate %121, %138 in 1 : vector<18x16xf32>, vector<18x16xf32> -> vector<18x32xf32>
    %140 = vector.extract_strided_slice %103 {offsets = [18, 0], sizes = [18, 96], strides = [1, 1]} : vector<36x96xf32> to vector<18x96xf32>
    %141 = vector.extract_strided_slice %140 {offsets = [0, 0], sizes = [18, 16], strides = [1, 1]} : vector<18x96xf32> to vector<18x16xf32>
    %142 = vector.extract_strided_slice %140 {offsets = [0, 32], sizes = [18, 16], strides = [1, 1]} : vector<18x96xf32> to vector<18x16xf32>
    %143 = vector.extract_strided_slice %140 {offsets = [0, 64], sizes = [18, 16], strides = [1, 1]} : vector<18x96xf32> to vector<18x16xf32>
    "tpu.trace_start"() <{level = 10 : i32, message = "qd,kd->qk"}> : () -> ()
    %cst_96 = arith.constant dense<0.000000e+00> : vector<18x18xf32>
    %144 = tpu.matmul %141, %142, %cst_96 {dimension_numbers = #tpu.dot_dimension_numbers<[1], [1], [0], [0], [0, 0, 1, 0], [], []>} : vector<18x16xf32>, vector<18x16xf32>, vector<18x18xf32> -> vector<18x18xf32>
    "tpu.trace_stop"() : () -> ()
    %cst_97 = arith.constant 2.500000e-01 : f32
    %145 = vector.broadcast %cst_97 : f32 to vector<18x18xf32>
    %146 = arith.mulf %144, %145 : vector<18x18xf32>
    %cst_98 = arith.constant dense<0xFF800000> : vector<18xf32>
    %147 = vector.multi_reduction <maximumf>, %146, %cst_98 [1] : vector<18x18xf32> to vector<18xf32>
    %148 = vector.shape_cast %147 : vector<18xf32> to vector<18x1xf32>
    %149 = vector.broadcast %148 : vector<18x1xf32> to vector<18x18xf32>
    %150 = arith.subf %146, %149 : vector<18x18xf32>
    %151 = math.exp %150 : vector<18x18xf32>
    %cst_99 = arith.constant dense<0.000000e+00> : vector<18xf32>
    %152 = vector.multi_reduction <add>, %151, %cst_99 [1] : vector<18x18xf32> to vector<18xf32>
    %153 = vector.shape_cast %152 : vector<18xf32> to vector<18x1xf32>
    %154 = tpu.reciprocal %153 {approx = true} : vector<18x1xf32> -> vector<18x1xf32>
    %155 = vector.broadcast %154 : vector<18x1xf32> to vector<18x18xf32>
    %156 = arith.mulf %151, %155 : vector<18x18xf32>
    %cst_100 = arith.constant dense<0.000000e+00> : vector<18x16xf32>
    %157 = tpu.matmul %156, %143, %cst_100 {dimension_numbers = #tpu.dot_dimension_numbers<[1], [0], [0], [1], [0, 0, 1, 1], [], []>} : vector<18x18xf32>, vector<18x16xf32>, vector<18x16xf32> -> vector<18x16xf32>
    %158 = vector.extract_strided_slice %140 {offsets = [0, 16], sizes = [18, 16], strides = [1, 1]} : vector<18x96xf32> to vector<18x16xf32>
    %159 = vector.extract_strided_slice %140 {offsets = [0, 48], sizes = [18, 16], strides = [1, 1]} : vector<18x96xf32> to vector<18x16xf32>
    %160 = vector.extract_strided_slice %140 {offsets = [0, 80], sizes = [18, 16], strides = [1, 1]} : vector<18x96xf32> to vector<18x16xf32>
    "tpu.trace_start"() <{level = 10 : i32, message = "qd,kd->qk"}> : () -> ()
    %cst_101 = arith.constant dense<0.000000e+00> : vector<18x18xf32>
    %161 = tpu.matmul %158, %159, %cst_101 {dimension_numbers = #tpu.dot_dimension_numbers<[1], [1], [0], [0], [0, 0, 1, 0], [], []>} : vector<18x16xf32>, vector<18x16xf32>, vector<18x18xf32> -> vector<18x18xf32>
    "tpu.trace_stop"() : () -> ()
    %cst_102 = arith.constant 2.500000e-01 : f32
    %162 = vector.broadcast %cst_102 : f32 to vector<18x18xf32>
    %163 = arith.mulf %161, %162 : vector<18x18xf32>
    %cst_103 = arith.constant dense<0xFF800000> : vector<18xf32>
    %164 = vector.multi_reduction <maximumf>, %163, %cst_103 [1] : vector<18x18xf32> to vector<18xf32>
    %165 = vector.shape_cast %164 : vector<18xf32> to vector<18x1xf32>
    %166 = vector.broadcast %165 : vector<18x1xf32> to vector<18x18xf32>
    %167 = arith.subf %163, %166 : vector<18x18xf32>
    %168 = math.exp %167 : vector<18x18xf32>
    %cst_104 = arith.constant dense<0.000000e+00> : vector<18xf32>
    %169 = vector.multi_reduction <add>, %168, %cst_104 [1] : vector<18x18xf32> to vector<18xf32>
    %170 = vector.shape_cast %169 : vector<18xf32> to vector<18x1xf32>
    %171 = tpu.reciprocal %170 {approx = true} : vector<18x1xf32> -> vector<18x1xf32>
    %172 = vector.broadcast %171 : vector<18x1xf32> to vector<18x18xf32>
    %173 = arith.mulf %168, %172 : vector<18x18xf32>
    %cst_105 = arith.constant dense<0.000000e+00> : vector<18x16xf32>
    %174 = tpu.matmul %173, %160, %cst_105 {dimension_numbers = #tpu.dot_dimension_numbers<[1], [0], [0], [1], [0, 0, 1, 1], [], []>} : vector<18x18xf32>, vector<18x16xf32>, vector<18x16xf32> -> vector<18x16xf32>
    %175 = tpu.concatenate %157, %174 in 1 : vector<18x16xf32>, vector<18x16xf32> -> vector<18x32xf32>
    %176 = tpu.concatenate %139, %175 in 0 : vector<18x32xf32>, vector<18x32xf32> -> vector<36x32xf32>
    %c0_106 = arith.constant 0 : index
    %c0_107 = arith.constant 0 : index
    %c0_108 = arith.constant 0 : index
    %177 = vector.load %arg11[%c0_106, %c0_107, %c0_108] : memref<2x32x32xf32, #tpu.memory_space<vmem>>, vector<1x32x32xf32>
    %178 = vector.shape_cast %177 : vector<1x32x32xf32> to vector<32x32xf32>
    %cst_109 = arith.constant dense<0.000000e+00> : vector<36x32xf32>
    %179 = tpu.matmul %176, %178, %cst_109 {dimension_numbers = #tpu.dot_dimension_numbers<[1], [0], [0], [1], [0, 0, 1, 1], [], []>} : vector<36x32xf32>, vector<32x32xf32>, vector<36x32xf32> -> vector<36x32xf32>
    %c0_110 = arith.constant 0 : index
    %c0_111 = arith.constant 0 : index
    %c0_112 = arith.constant 0 : index
    %180 = vector.load %arg12[%c0_110, %c0_111, %c0_112] : memref<2x1x32xf32, #tpu.memory_space<vmem>>, vector<1x1x32xf32>
    %181 = vector.shape_cast %180 : vector<1x1x32xf32> to vector<1x32xf32>
    %182 = vector.broadcast %181 : vector<1x32xf32> to vector<36x32xf32>
    %183 = arith.addf %179, %182 : vector<36x32xf32>
    %184 = arith.addf %70, %183 : vector<36x32xf32>
    %185 = vector.extract_strided_slice %72 {offsets = [2, 0], sizes = [1, 32], strides = [1, 1]} : vector<4x32xf32> to vector<1x32xf32>
    %186 = vector.extract_strided_slice %72 {offsets = [3, 0], sizes = [1, 32], strides = [1, 1]} : vector<4x32xf32> to vector<1x32xf32>
    %cst_113 = arith.constant dense<0.000000e+00> : vector<36xf32>
    %187 = vector.multi_reduction <add>, %184, %cst_113 [1] : vector<36x32xf32> to vector<36xf32>
    %188 = vector.shape_cast %187 : vector<36xf32> to vector<36x1xf32>
    %cst_114 = arith.constant 3.200000e+01 : f32
    %189 = vector.broadcast %cst_114 : f32 to vector<36x1xf32>
    %190 = arith.divf %188, %189 : vector<36x1xf32>
    %191 = vector.broadcast %190 : vector<36x1xf32> to vector<36x32xf32>
    %192 = arith.subf %184, %191 : vector<36x32xf32>
    %193 = arith.mulf %192, %192 : vector<36x32xf32>
    %cst_115 = arith.constant dense<0.000000e+00> : vector<36xf32>
    %194 = vector.multi_reduction <add>, %193, %cst_115 [1] : vector<36x32xf32> to vector<36xf32>
    %195 = vector.shape_cast %194 : vector<36xf32> to vector<36x1xf32>
    %cst_116 = arith.constant 3.200000e+01 : f32
    %196 = vector.broadcast %cst_116 : f32 to vector<36x1xf32>
    %197 = arith.divf %195, %196 : vector<36x1xf32>
    %198 = vector.broadcast %190 : vector<36x1xf32> to vector<36x32xf32>
    %199 = arith.subf %184, %198 : vector<36x32xf32>
    %cst_117 = arith.constant 9.99999997E-7 : f32
    %200 = vector.broadcast %cst_117 : f32 to vector<36x1xf32>
    %201 = arith.addf %197, %200 : vector<36x1xf32>
    %202 = math.rsqrt %201 : vector<36x1xf32>
    %203 = vector.broadcast %202 : vector<36x1xf32> to vector<36x32xf32>
    %204 = arith.mulf %199, %203 : vector<36x32xf32>
    %205 = vector.broadcast %185 : vector<1x32xf32> to vector<36x32xf32>
    %206 = arith.mulf %204, %205 : vector<36x32xf32>
    %207 = vector.broadcast %186 : vector<1x32xf32> to vector<36x32xf32>
    %208 = arith.addf %206, %207 : vector<36x32xf32>
    %c0_118 = arith.constant 0 : index
    %c0_119 = arith.constant 0 : index
    %c0_120 = arith.constant 0 : index
    %209 = vector.load %arg13[%c0_118, %c0_119, %c0_120] : memref<2x32x64xf32, #tpu.memory_space<vmem>>, vector<1x32x64xf32>
    %210 = vector.shape_cast %209 : vector<1x32x64xf32> to vector<32x64xf32>
    %cst_121 = arith.constant dense<0.000000e+00> : vector<36x64xf32>
    %211 = tpu.matmul %208, %210, %cst_121 {dimension_numbers = #tpu.dot_dimension_numbers<[1], [0], [0], [1], [0, 0, 1, 1], [], []>} : vector<36x32xf32>, vector<32x64xf32>, vector<36x64xf32> -> vector<36x64xf32>
    %c0_122 = arith.constant 0 : index
    %c0_123 = arith.constant 0 : index
    %c0_124 = arith.constant 0 : index
    %212 = vector.load %arg14[%c0_122, %c0_123, %c0_124] : memref<2x1x64xf32, #tpu.memory_space<vmem>>, vector<1x1x64xf32>
    %213 = vector.shape_cast %212 : vector<1x1x64xf32> to vector<1x64xf32>
    %214 = vector.broadcast %213 : vector<1x64xf32> to vector<36x64xf32>
    %215 = arith.addf %211, %214 : vector<36x64xf32>
    %cst_125 = arith.constant 5.000000e-01 : f32
    %216 = vector.broadcast %cst_125 : f32 to vector<36x64xf32>
    %217 = arith.mulf %216, %215 : vector<36x64xf32>
    %cst_126 = arith.constant 4.471500e-02 : f32
    %218 = vector.broadcast %cst_126 : f32 to vector<36x64xf32>
    %219 = arith.mulf %218, %215 : vector<36x64xf32>
    %220 = arith.mulf %219, %215 : vector<36x64xf32>
    %221 = arith.mulf %220, %215 : vector<36x64xf32>
    %222 = arith.addf %215, %221 : vector<36x64xf32>
    %cst_127 = arith.constant 0.797884583 : f32
    %223 = vector.broadcast %cst_127 : f32 to vector<36x64xf32>
    %224 = arith.mulf %223, %222 : vector<36x64xf32>
    %225 = math.tanh %224 : vector<36x64xf32>
    %cst_128 = arith.constant 1.000000e+00 : f32
    %226 = vector.broadcast %cst_128 : f32 to vector<36x64xf32>
    %227 = arith.addf %226, %225 : vector<36x64xf32>
    %228 = arith.mulf %217, %227 : vector<36x64xf32>
    %c0_129 = arith.constant 0 : index
    %c0_130 = arith.constant 0 : index
    %c0_131 = arith.constant 0 : index
    %229 = vector.load %arg15[%c0_129, %c0_130, %c0_131] : memref<2x64x32xf32, #tpu.memory_space<vmem>>, vector<1x64x32xf32>
    %230 = vector.shape_cast %229 : vector<1x64x32xf32> to vector<64x32xf32>
    %cst_132 = arith.constant dense<0.000000e+00> : vector<36x32xf32>
    %231 = tpu.matmul %228, %230, %cst_132 {dimension_numbers = #tpu.dot_dimension_numbers<[1], [0], [0], [1], [0, 0, 1, 1], [], []>} : vector<36x64xf32>, vector<64x32xf32>, vector<36x32xf32> -> vector<36x32xf32>
    %c0_133 = arith.constant 0 : index
    %c0_134 = arith.constant 0 : index
    %c0_135 = arith.constant 0 : index
    %232 = vector.load %arg16[%c0_133, %c0_134, %c0_135] : memref<2x1x32xf32, #tpu.memory_space<vmem>>, vector<1x1x32xf32>
    %233 = vector.shape_cast %232 : vector<1x1x32xf32> to vector<1x32xf32>
    %234 = vector.broadcast %233 : vector<1x32xf32> to vector<36x32xf32>
    %235 = arith.addf %231, %234 : vector<36x32xf32>
    %236 = arith.addf %184, %235 : vector<36x32xf32>
    %c1_136 = arith.constant 1 : index
    %c0_137 = arith.constant 0 : index
    %c0_138 = arith.constant 0 : index
    %237 = vector.load %arg8[%c1_136, %c0_137, %c0_138] : memref<2x4x32xf32, #tpu.memory_space<vmem>>, vector<1x4x32xf32>
    %238 = vector.shape_cast %237 : vector<1x4x32xf32> to vector<4x32xf32>
    %239 = vector.extract_strided_slice %238 {offsets = [0, 0], sizes = [1, 32], strides = [1, 1]} : vector<4x32xf32> to vector<1x32xf32>
    %240 = vector.extract_strided_slice %238 {offsets = [1, 0], sizes = [1, 32], strides = [1, 1]} : vector<4x32xf32> to vector<1x32xf32>
    %cst_139 = arith.constant dense<0.000000e+00> : vector<36xf32>
    %241 = vector.multi_reduction <add>, %236, %cst_139 [1] : vector<36x32xf32> to vector<36xf32>
    %242 = vector.shape_cast %241 : vector<36xf32> to vector<36x1xf32>
    %cst_140 = arith.constant 3.200000e+01 : f32
    %243 = vector.broadcast %cst_140 : f32 to vector<36x1xf32>
    %244 = arith.divf %242, %243 : vector<36x1xf32>
    %245 = vector.broadcast %244 : vector<36x1xf32> to vector<36x32xf32>
    %246 = arith.subf %236, %245 : vector<36x32xf32>
    %247 = arith.mulf %246, %246 : vector<36x32xf32>
    %cst_141 = arith.constant dense<0.000000e+00> : vector<36xf32>
    %248 = vector.multi_reduction <add>, %247, %cst_141 [1] : vector<36x32xf32> to vector<36xf32>
    %249 = vector.shape_cast %248 : vector<36xf32> to vector<36x1xf32>
    %cst_142 = arith.constant 3.200000e+01 : f32
    %250 = vector.broadcast %cst_142 : f32 to vector<36x1xf32>
    %251 = arith.divf %249, %250 : vector<36x1xf32>
    %252 = vector.broadcast %244 : vector<36x1xf32> to vector<36x32xf32>
    %253 = arith.subf %236, %252 : vector<36x32xf32>
    %cst_143 = arith.constant 9.99999997E-7 : f32
    %254 = vector.broadcast %cst_143 : f32 to vector<36x1xf32>
    %255 = arith.addf %251, %254 : vector<36x1xf32>
    %256 = math.rsqrt %255 : vector<36x1xf32>
    %257 = vector.broadcast %256 : vector<36x1xf32> to vector<36x32xf32>
    %258 = arith.mulf %253, %257 : vector<36x32xf32>
    %259 = vector.broadcast %239 : vector<1x32xf32> to vector<36x32xf32>
    %260 = arith.mulf %258, %259 : vector<36x32xf32>
    %261 = vector.broadcast %240 : vector<1x32xf32> to vector<36x32xf32>
    %262 = arith.addf %260, %261 : vector<36x32xf32>
    %c1_144 = arith.constant 1 : index
    %c0_145 = arith.constant 0 : index
    %c0_146 = arith.constant 0 : index
    %263 = vector.load %arg9[%c1_144, %c0_145, %c0_146] : memref<2x32x96xf32, #tpu.memory_space<vmem>>, vector<1x32x96xf32>
    %264 = vector.shape_cast %263 : vector<1x32x96xf32> to vector<32x96xf32>
    %cst_147 = arith.constant dense<0.000000e+00> : vector<36x96xf32>
    %265 = tpu.matmul %262, %264, %cst_147 {dimension_numbers = #tpu.dot_dimension_numbers<[1], [0], [0], [1], [0, 0, 1, 1], [], []>} : vector<36x32xf32>, vector<32x96xf32>, vector<36x96xf32> -> vector<36x96xf32>
    %c1_148 = arith.constant 1 : index
    %c0_149 = arith.constant 0 : index
    %c0_150 = arith.constant 0 : index
    %266 = vector.load %arg10[%c1_148, %c0_149, %c0_150] : memref<2x1x96xf32, #tpu.memory_space<vmem>>, vector<1x1x96xf32>
    %267 = vector.shape_cast %266 : vector<1x1x96xf32> to vector<1x96xf32>
    %268 = vector.broadcast %267 : vector<1x96xf32> to vector<36x96xf32>
    %269 = arith.addf %265, %268 : vector<36x96xf32>
    %270 = vector.extract_strided_slice %269 {offsets = [0, 0], sizes = [18, 96], strides = [1, 1]} : vector<36x96xf32> to vector<18x96xf32>
    %271 = vector.extract_strided_slice %270 {offsets = [0, 0], sizes = [18, 16], strides = [1, 1]} : vector<18x96xf32> to vector<18x16xf32>
    %272 = vector.extract_strided_slice %270 {offsets = [0, 32], sizes = [18, 16], strides = [1, 1]} : vector<18x96xf32> to vector<18x16xf32>
    %273 = vector.extract_strided_slice %270 {offsets = [0, 64], sizes = [18, 16], strides = [1, 1]} : vector<18x96xf32> to vector<18x16xf32>
    "tpu.trace_start"() <{level = 10 : i32, message = "qd,kd->qk"}> : () -> ()
    %cst_151 = arith.constant dense<0.000000e+00> : vector<18x18xf32>
    %274 = tpu.matmul %271, %272, %cst_151 {dimension_numbers = #tpu.dot_dimension_numbers<[1], [1], [0], [0], [0, 0, 1, 0], [], []>} : vector<18x16xf32>, vector<18x16xf32>, vector<18x18xf32> -> vector<18x18xf32>
    "tpu.trace_stop"() : () -> ()
    %cst_152 = arith.constant 2.500000e-01 : f32
    %275 = vector.broadcast %cst_152 : f32 to vector<18x18xf32>
    %276 = arith.mulf %274, %275 : vector<18x18xf32>
    %cst_153 = arith.constant dense<0xFF800000> : vector<18xf32>
    %277 = vector.multi_reduction <maximumf>, %276, %cst_153 [1] : vector<18x18xf32> to vector<18xf32>
    %278 = vector.shape_cast %277 : vector<18xf32> to vector<18x1xf32>
    %279 = vector.broadcast %278 : vector<18x1xf32> to vector<18x18xf32>
    %280 = arith.subf %276, %279 : vector<18x18xf32>
    %281 = math.exp %280 : vector<18x18xf32>
    %cst_154 = arith.constant dense<0.000000e+00> : vector<18xf32>
    %282 = vector.multi_reduction <add>, %281, %cst_154 [1] : vector<18x18xf32> to vector<18xf32>
    %283 = vector.shape_cast %282 : vector<18xf32> to vector<18x1xf32>
    %284 = tpu.reciprocal %283 {approx = true} : vector<18x1xf32> -> vector<18x1xf32>
    %285 = vector.broadcast %284 : vector<18x1xf32> to vector<18x18xf32>
    %286 = arith.mulf %281, %285 : vector<18x18xf32>
    %cst_155 = arith.constant dense<0.000000e+00> : vector<18x16xf32>
    %287 = tpu.matmul %286, %273, %cst_155 {dimension_numbers = #tpu.dot_dimension_numbers<[1], [0], [0], [1], [0, 0, 1, 1], [], []>} : vector<18x18xf32>, vector<18x16xf32>, vector<18x16xf32> -> vector<18x16xf32>
    %288 = vector.extract_strided_slice %270 {offsets = [0, 16], sizes = [18, 16], strides = [1, 1]} : vector<18x96xf32> to vector<18x16xf32>
    %289 = vector.extract_strided_slice %270 {offsets = [0, 48], sizes = [18, 16], strides = [1, 1]} : vector<18x96xf32> to vector<18x16xf32>
    %290 = vector.extract_strided_slice %270 {offsets = [0, 80], sizes = [18, 16], strides = [1, 1]} : vector<18x96xf32> to vector<18x16xf32>
    "tpu.trace_start"() <{level = 10 : i32, message = "qd,kd->qk"}> : () -> ()
    %cst_156 = arith.constant dense<0.000000e+00> : vector<18x18xf32>
    %291 = tpu.matmul %288, %289, %cst_156 {dimension_numbers = #tpu.dot_dimension_numbers<[1], [1], [0], [0], [0, 0, 1, 0], [], []>} : vector<18x16xf32>, vector<18x16xf32>, vector<18x18xf32> -> vector<18x18xf32>
    "tpu.trace_stop"() : () -> ()
    %cst_157 = arith.constant 2.500000e-01 : f32
    %292 = vector.broadcast %cst_157 : f32 to vector<18x18xf32>
    %293 = arith.mulf %291, %292 : vector<18x18xf32>
    %cst_158 = arith.constant dense<0xFF800000> : vector<18xf32>
    %294 = vector.multi_reduction <maximumf>, %293, %cst_158 [1] : vector<18x18xf32> to vector<18xf32>
    %295 = vector.shape_cast %294 : vector<18xf32> to vector<18x1xf32>
    %296 = vector.broadcast %295 : vector<18x1xf32> to vector<18x18xf32>
    %297 = arith.subf %293, %296 : vector<18x18xf32>
    %298 = math.exp %297 : vector<18x18xf32>
    %cst_159 = arith.constant dense<0.000000e+00> : vector<18xf32>
    %299 = vector.multi_reduction <add>, %298, %cst_159 [1] : vector<18x18xf32> to vector<18xf32>
    %300 = vector.shape_cast %299 : vector<18xf32> to vector<18x1xf32>
    %301 = tpu.reciprocal %300 {approx = true} : vector<18x1xf32> -> vector<18x1xf32>
    %302 = vector.broadcast %301 : vector<18x1xf32> to vector<18x18xf32>
    %303 = arith.mulf %298, %302 : vector<18x18xf32>
    %cst_160 = arith.constant dense<0.000000e+00> : vector<18x16xf32>
    %304 = tpu.matmul %303, %290, %cst_160 {dimension_numbers = #tpu.dot_dimension_numbers<[1], [0], [0], [1], [0, 0, 1, 1], [], []>} : vector<18x18xf32>, vector<18x16xf32>, vector<18x16xf32> -> vector<18x16xf32>
    %305 = tpu.concatenate %287, %304 in 1 : vector<18x16xf32>, vector<18x16xf32> -> vector<18x32xf32>
    %306 = vector.extract_strided_slice %269 {offsets = [18, 0], sizes = [18, 96], strides = [1, 1]} : vector<36x96xf32> to vector<18x96xf32>
    %307 = vector.extract_strided_slice %306 {offsets = [0, 0], sizes = [18, 16], strides = [1, 1]} : vector<18x96xf32> to vector<18x16xf32>
    %308 = vector.extract_strided_slice %306 {offsets = [0, 32], sizes = [18, 16], strides = [1, 1]} : vector<18x96xf32> to vector<18x16xf32>
    %309 = vector.extract_strided_slice %306 {offsets = [0, 64], sizes = [18, 16], strides = [1, 1]} : vector<18x96xf32> to vector<18x16xf32>
    "tpu.trace_start"() <{level = 10 : i32, message = "qd,kd->qk"}> : () -> ()
    %cst_161 = arith.constant dense<0.000000e+00> : vector<18x18xf32>
    %310 = tpu.matmul %307, %308, %cst_161 {dimension_numbers = #tpu.dot_dimension_numbers<[1], [1], [0], [0], [0, 0, 1, 0], [], []>} : vector<18x16xf32>, vector<18x16xf32>, vector<18x18xf32> -> vector<18x18xf32>
    "tpu.trace_stop"() : () -> ()
    %cst_162 = arith.constant 2.500000e-01 : f32
    %311 = vector.broadcast %cst_162 : f32 to vector<18x18xf32>
    %312 = arith.mulf %310, %311 : vector<18x18xf32>
    %cst_163 = arith.constant dense<0xFF800000> : vector<18xf32>
    %313 = vector.multi_reduction <maximumf>, %312, %cst_163 [1] : vector<18x18xf32> to vector<18xf32>
    %314 = vector.shape_cast %313 : vector<18xf32> to vector<18x1xf32>
    %315 = vector.broadcast %314 : vector<18x1xf32> to vector<18x18xf32>
    %316 = arith.subf %312, %315 : vector<18x18xf32>
    %317 = math.exp %316 : vector<18x18xf32>
    %cst_164 = arith.constant dense<0.000000e+00> : vector<18xf32>
    %318 = vector.multi_reduction <add>, %317, %cst_164 [1] : vector<18x18xf32> to vector<18xf32>
    %319 = vector.shape_cast %318 : vector<18xf32> to vector<18x1xf32>
    %320 = tpu.reciprocal %319 {approx = true} : vector<18x1xf32> -> vector<18x1xf32>
    %321 = vector.broadcast %320 : vector<18x1xf32> to vector<18x18xf32>
    %322 = arith.mulf %317, %321 : vector<18x18xf32>
    %cst_165 = arith.constant dense<0.000000e+00> : vector<18x16xf32>
    %323 = tpu.matmul %322, %309, %cst_165 {dimension_numbers = #tpu.dot_dimension_numbers<[1], [0], [0], [1], [0, 0, 1, 1], [], []>} : vector<18x18xf32>, vector<18x16xf32>, vector<18x16xf32> -> vector<18x16xf32>
    %324 = vector.extract_strided_slice %306 {offsets = [0, 16], sizes = [18, 16], strides = [1, 1]} : vector<18x96xf32> to vector<18x16xf32>
    %325 = vector.extract_strided_slice %306 {offsets = [0, 48], sizes = [18, 16], strides = [1, 1]} : vector<18x96xf32> to vector<18x16xf32>
    %326 = vector.extract_strided_slice %306 {offsets = [0, 80], sizes = [18, 16], strides = [1, 1]} : vector<18x96xf32> to vector<18x16xf32>
    "tpu.trace_start"() <{level = 10 : i32, message = "qd,kd->qk"}> : () -> ()
    %cst_166 = arith.constant dense<0.000000e+00> : vector<18x18xf32>
    %327 = tpu.matmul %324, %325, %cst_166 {dimension_numbers = #tpu.dot_dimension_numbers<[1], [1], [0], [0], [0, 0, 1, 0], [], []>} : vector<18x16xf32>, vector<18x16xf32>, vector<18x18xf32> -> vector<18x18xf32>
    "tpu.trace_stop"() : () -> ()
    %cst_167 = arith.constant 2.500000e-01 : f32
    %328 = vector.broadcast %cst_167 : f32 to vector<18x18xf32>
    %329 = arith.mulf %327, %328 : vector<18x18xf32>
    %cst_168 = arith.constant dense<0xFF800000> : vector<18xf32>
    %330 = vector.multi_reduction <maximumf>, %329, %cst_168 [1] : vector<18x18xf32> to vector<18xf32>
    %331 = vector.shape_cast %330 : vector<18xf32> to vector<18x1xf32>
    %332 = vector.broadcast %331 : vector<18x1xf32> to vector<18x18xf32>
    %333 = arith.subf %329, %332 : vector<18x18xf32>
    %334 = math.exp %333 : vector<18x18xf32>
    %cst_169 = arith.constant dense<0.000000e+00> : vector<18xf32>
    %335 = vector.multi_reduction <add>, %334, %cst_169 [1] : vector<18x18xf32> to vector<18xf32>
    %336 = vector.shape_cast %335 : vector<18xf32> to vector<18x1xf32>
    %337 = tpu.reciprocal %336 {approx = true} : vector<18x1xf32> -> vector<18x1xf32>
    %338 = vector.broadcast %337 : vector<18x1xf32> to vector<18x18xf32>
    %339 = arith.mulf %334, %338 : vector<18x18xf32>
    %cst_170 = arith.constant dense<0.000000e+00> : vector<18x16xf32>
    %340 = tpu.matmul %339, %326, %cst_170 {dimension_numbers = #tpu.dot_dimension_numbers<[1], [0], [0], [1], [0, 0, 1, 1], [], []>} : vector<18x18xf32>, vector<18x16xf32>, vector<18x16xf32> -> vector<18x16xf32>
    %341 = tpu.concatenate %323, %340 in 1 : vector<18x16xf32>, vector<18x16xf32> -> vector<18x32xf32>
    %342 = tpu.concatenate %305, %341 in 0 : vector<18x32xf32>, vector<18x32xf32> -> vector<36x32xf32>
    %c1_171 = arith.constant 1 : index
    %c0_172 = arith.constant 0 : index
    %c0_173 = arith.constant 0 : index
    %343 = vector.load %arg11[%c1_171, %c0_172, %c0_173] : memref<2x32x32xf32, #tpu.memory_space<vmem>>, vector<1x32x32xf32>
    %344 = vector.shape_cast %343 : vector<1x32x32xf32> to vector<32x32xf32>
    %cst_174 = arith.constant dense<0.000000e+00> : vector<36x32xf32>
    %345 = tpu.matmul %342, %344, %cst_174 {dimension_numbers = #tpu.dot_dimension_numbers<[1], [0], [0], [1], [0, 0, 1, 1], [], []>} : vector<36x32xf32>, vector<32x32xf32>, vector<36x32xf32> -> vector<36x32xf32>
    %c1_175 = arith.constant 1 : index
    %c0_176 = arith.constant 0 : index
    %c0_177 = arith.constant 0 : index
    %346 = vector.load %arg12[%c1_175, %c0_176, %c0_177] : memref<2x1x32xf32, #tpu.memory_space<vmem>>, vector<1x1x32xf32>
    %347 = vector.shape_cast %346 : vector<1x1x32xf32> to vector<1x32xf32>
    %348 = vector.broadcast %347 : vector<1x32xf32> to vector<36x32xf32>
    %349 = arith.addf %345, %348 : vector<36x32xf32>
    %350 = arith.addf %236, %349 : vector<36x32xf32>
    %351 = vector.extract_strided_slice %238 {offsets = [2, 0], sizes = [1, 32], strides = [1, 1]} : vector<4x32xf32> to vector<1x32xf32>
    %352 = vector.extract_strided_slice %238 {offsets = [3, 0], sizes = [1, 32], strides = [1, 1]} : vector<4x32xf32> to vector<1x32xf32>
    %cst_178 = arith.constant dense<0.000000e+00> : vector<36xf32>
    %353 = vector.multi_reduction <add>, %350, %cst_178 [1] : vector<36x32xf32> to vector<36xf32>
    %354 = vector.shape_cast %353 : vector<36xf32> to vector<36x1xf32>
    %cst_179 = arith.constant 3.200000e+01 : f32
    %355 = vector.broadcast %cst_179 : f32 to vector<36x1xf32>
    %356 = arith.divf %354, %355 : vector<36x1xf32>
    %357 = vector.broadcast %356 : vector<36x1xf32> to vector<36x32xf32>
    %358 = arith.subf %350, %357 : vector<36x32xf32>
    %359 = arith.mulf %358, %358 : vector<36x32xf32>
    %cst_180 = arith.constant dense<0.000000e+00> : vector<36xf32>
    %360 = vector.multi_reduction <add>, %359, %cst_180 [1] : vector<36x32xf32> to vector<36xf32>
    %361 = vector.shape_cast %360 : vector<36xf32> to vector<36x1xf32>
    %cst_181 = arith.constant 3.200000e+01 : f32
    %362 = vector.broadcast %cst_181 : f32 to vector<36x1xf32>
    %363 = arith.divf %361, %362 : vector<36x1xf32>
    %364 = vector.broadcast %356 : vector<36x1xf32> to vector<36x32xf32>
    %365 = arith.subf %350, %364 : vector<36x32xf32>
    %cst_182 = arith.constant 9.99999997E-7 : f32
    %366 = vector.broadcast %cst_182 : f32 to vector<36x1xf32>
    %367 = arith.addf %363, %366 : vector<36x1xf32>
    %368 = math.rsqrt %367 : vector<36x1xf32>
    %369 = vector.broadcast %368 : vector<36x1xf32> to vector<36x32xf32>
    %370 = arith.mulf %365, %369 : vector<36x32xf32>
    %371 = vector.broadcast %351 : vector<1x32xf32> to vector<36x32xf32>
    %372 = arith.mulf %370, %371 : vector<36x32xf32>
    %373 = vector.broadcast %352 : vector<1x32xf32> to vector<36x32xf32>
    %374 = arith.addf %372, %373 : vector<36x32xf32>
    %c1_183 = arith.constant 1 : index
    %c0_184 = arith.constant 0 : index
    %c0_185 = arith.constant 0 : index
    %375 = vector.load %arg13[%c1_183, %c0_184, %c0_185] : memref<2x32x64xf32, #tpu.memory_space<vmem>>, vector<1x32x64xf32>
    %376 = vector.shape_cast %375 : vector<1x32x64xf32> to vector<32x64xf32>
    %cst_186 = arith.constant dense<0.000000e+00> : vector<36x64xf32>
    %377 = tpu.matmul %374, %376, %cst_186 {dimension_numbers = #tpu.dot_dimension_numbers<[1], [0], [0], [1], [0, 0, 1, 1], [], []>} : vector<36x32xf32>, vector<32x64xf32>, vector<36x64xf32> -> vector<36x64xf32>
    %c1_187 = arith.constant 1 : index
    %c0_188 = arith.constant 0 : index
    %c0_189 = arith.constant 0 : index
    %378 = vector.load %arg14[%c1_187, %c0_188, %c0_189] : memref<2x1x64xf32, #tpu.memory_space<vmem>>, vector<1x1x64xf32>
    %379 = vector.shape_cast %378 : vector<1x1x64xf32> to vector<1x64xf32>
    %380 = vector.broadcast %379 : vector<1x64xf32> to vector<36x64xf32>
    %381 = arith.addf %377, %380 : vector<36x64xf32>
    %cst_190 = arith.constant 5.000000e-01 : f32
    %382 = vector.broadcast %cst_190 : f32 to vector<36x64xf32>
    %383 = arith.mulf %382, %381 : vector<36x64xf32>
    %cst_191 = arith.constant 4.471500e-02 : f32
    %384 = vector.broadcast %cst_191 : f32 to vector<36x64xf32>
    %385 = arith.mulf %384, %381 : vector<36x64xf32>
    %386 = arith.mulf %385, %381 : vector<36x64xf32>
    %387 = arith.mulf %386, %381 : vector<36x64xf32>
    %388 = arith.addf %381, %387 : vector<36x64xf32>
    %cst_192 = arith.constant 0.797884583 : f32
    %389 = vector.broadcast %cst_192 : f32 to vector<36x64xf32>
    %390 = arith.mulf %389, %388 : vector<36x64xf32>
    %391 = math.tanh %390 : vector<36x64xf32>
    %cst_193 = arith.constant 1.000000e+00 : f32
    %392 = vector.broadcast %cst_193 : f32 to vector<36x64xf32>
    %393 = arith.addf %392, %391 : vector<36x64xf32>
    %394 = arith.mulf %383, %393 : vector<36x64xf32>
    %c1_194 = arith.constant 1 : index
    %c0_195 = arith.constant 0 : index
    %c0_196 = arith.constant 0 : index
    %395 = vector.load %arg15[%c1_194, %c0_195, %c0_196] : memref<2x64x32xf32, #tpu.memory_space<vmem>>, vector<1x64x32xf32>
    %396 = vector.shape_cast %395 : vector<1x64x32xf32> to vector<64x32xf32>
    %cst_197 = arith.constant dense<0.000000e+00> : vector<36x32xf32>
    %397 = tpu.matmul %394, %396, %cst_197 {dimension_numbers = #tpu.dot_dimension_numbers<[1], [0], [0], [1], [0, 0, 1, 1], [], []>} : vector<36x64xf32>, vector<64x32xf32>, vector<36x32xf32> -> vector<36x32xf32>
    %c1_198 = arith.constant 1 : index
    %c0_199 = arith.constant 0 : index
    %c0_200 = arith.constant 0 : index
    %398 = vector.load %arg16[%c1_198, %c0_199, %c0_200] : memref<2x1x32xf32, #tpu.memory_space<vmem>>, vector<1x1x32xf32>
    %399 = vector.shape_cast %398 : vector<1x1x32xf32> to vector<1x32xf32>
    %400 = vector.broadcast %399 : vector<1x32xf32> to vector<36x32xf32>
    %401 = arith.addf %397, %400 : vector<36x32xf32>
    %402 = arith.addf %350, %401 : vector<36x32xf32>
    %c0_201 = arith.constant 0 : index
    %c0_202 = arith.constant 0 : index
    %403 = vector.load %arg17[%c0_201, %c0_202] : memref<4x32xf32, #tpu.memory_space<vmem>>, vector<4x32xf32>
    %404 = vector.extract_strided_slice %402 {offsets = [0, 0], sizes = [1, 32], strides = [1, 1]} : vector<36x32xf32> to vector<1x32xf32>
    %405 = vector.extract_strided_slice %402 {offsets = [18, 0], sizes = [1, 32], strides = [1, 1]} : vector<36x32xf32> to vector<1x32xf32>
    %406 = tpu.concatenate %404, %405 in 0 : vector<1x32xf32>, vector<1x32xf32> -> vector<2x32xf32>
    %407 = vector.extract_strided_slice %402 {offsets = [1, 0], sizes = [1, 32], strides = [1, 1]} : vector<36x32xf32> to vector<1x32xf32>
    %408 = vector.extract_strided_slice %402 {offsets = [19, 0], sizes = [1, 32], strides = [1, 1]} : vector<36x32xf32> to vector<1x32xf32>
    %409 = tpu.concatenate %407, %408 in 0 : vector<1x32xf32>, vector<1x32xf32> -> vector<2x32xf32>
    %410 = vector.extract_strided_slice %403 {offsets = [0, 0], sizes = [1, 32], strides = [1, 1]} : vector<4x32xf32> to vector<1x32xf32>
    %411 = vector.extract_strided_slice %403 {offsets = [1, 0], sizes = [1, 32], strides = [1, 1]} : vector<4x32xf32> to vector<1x32xf32>
    %cst_203 = arith.constant dense<0.000000e+00> : vector<2xf32>
    %412 = vector.multi_reduction <add>, %406, %cst_203 [1] : vector<2x32xf32> to vector<2xf32>
    %413 = vector.shape_cast %412 : vector<2xf32> to vector<2x1xf32>
    %cst_204 = arith.constant 3.200000e+01 : f32
    %414 = vector.broadcast %cst_204 : f32 to vector<2x1xf32>
    %415 = arith.divf %413, %414 : vector<2x1xf32>
    %416 = vector.broadcast %415 : vector<2x1xf32> to vector<2x32xf32>
    %417 = arith.subf %406, %416 : vector<2x32xf32>
    %418 = arith.mulf %417, %417 : vector<2x32xf32>
    %cst_205 = arith.constant dense<0.000000e+00> : vector<2xf32>
    %419 = vector.multi_reduction <add>, %418, %cst_205 [1] : vector<2x32xf32> to vector<2xf32>
    %420 = vector.shape_cast %419 : vector<2xf32> to vector<2x1xf32>
    %cst_206 = arith.constant 3.200000e+01 : f32
    %421 = vector.broadcast %cst_206 : f32 to vector<2x1xf32>
    %422 = arith.divf %420, %421 : vector<2x1xf32>
    %423 = vector.broadcast %415 : vector<2x1xf32> to vector<2x32xf32>
    %424 = arith.subf %406, %423 : vector<2x32xf32>
    %cst_207 = arith.constant 9.99999997E-7 : f32
    %425 = vector.broadcast %cst_207 : f32 to vector<2x1xf32>
    %426 = arith.addf %422, %425 : vector<2x1xf32>
    %427 = math.rsqrt %426 : vector<2x1xf32>
    %428 = vector.broadcast %427 : vector<2x1xf32> to vector<2x32xf32>
    %429 = arith.mulf %424, %428 : vector<2x32xf32>
    %430 = vector.broadcast %410 : vector<1x32xf32> to vector<2x32xf32>
    %431 = arith.mulf %429, %430 : vector<2x32xf32>
    %432 = vector.broadcast %411 : vector<1x32xf32> to vector<2x32xf32>
    %433 = arith.addf %431, %432 : vector<2x32xf32>
    %434 = vector.extract_strided_slice %403 {offsets = [0, 0], sizes = [1, 32], strides = [1, 1]} : vector<4x32xf32> to vector<1x32xf32>
    %435 = vector.extract_strided_slice %403 {offsets = [1, 0], sizes = [1, 32], strides = [1, 1]} : vector<4x32xf32> to vector<1x32xf32>
    %cst_208 = arith.constant dense<0.000000e+00> : vector<2xf32>
    %436 = vector.multi_reduction <add>, %409, %cst_208 [1] : vector<2x32xf32> to vector<2xf32>
    %437 = vector.shape_cast %436 : vector<2xf32> to vector<2x1xf32>
    %cst_209 = arith.constant 3.200000e+01 : f32
    %438 = vector.broadcast %cst_209 : f32 to vector<2x1xf32>
    %439 = arith.divf %437, %438 : vector<2x1xf32>
    %440 = vector.broadcast %439 : vector<2x1xf32> to vector<2x32xf32>
    %441 = arith.subf %409, %440 : vector<2x32xf32>
    %442 = arith.mulf %441, %441 : vector<2x32xf32>
    %cst_210 = arith.constant dense<0.000000e+00> : vector<2xf32>
    %443 = vector.multi_reduction <add>, %442, %cst_210 [1] : vector<2x32xf32> to vector<2xf32>
    %444 = vector.shape_cast %443 : vector<2xf32> to vector<2x1xf32>
    %cst_211 = arith.constant 3.200000e+01 : f32
    %445 = vector.broadcast %cst_211 : f32 to vector<2x1xf32>
    %446 = arith.divf %444, %445 : vector<2x1xf32>
    %447 = vector.broadcast %439 : vector<2x1xf32> to vector<2x32xf32>
    %448 = arith.subf %409, %447 : vector<2x32xf32>
    %cst_212 = arith.constant 9.99999997E-7 : f32
    %449 = vector.broadcast %cst_212 : f32 to vector<2x1xf32>
    %450 = arith.addf %446, %449 : vector<2x1xf32>
    %451 = math.rsqrt %450 : vector<2x1xf32>
    %452 = vector.broadcast %451 : vector<2x1xf32> to vector<2x32xf32>
    %453 = arith.mulf %448, %452 : vector<2x32xf32>
    %454 = vector.broadcast %434 : vector<1x32xf32> to vector<2x32xf32>
    %455 = arith.mulf %453, %454 : vector<2x32xf32>
    %456 = vector.broadcast %435 : vector<1x32xf32> to vector<2x32xf32>
    %457 = arith.addf %455, %456 : vector<2x32xf32>
    %458 = arith.addf %433, %457 : vector<2x32xf32>
    %cst_213 = arith.constant 5.000000e-01 : f32
    %459 = vector.broadcast %cst_213 : f32 to vector<2x32xf32>
    %460 = arith.mulf %459, %458 : vector<2x32xf32>
    %461 = vector.extract_strided_slice %403 {offsets = [2, 0], sizes = [1, 32], strides = [1, 1]} : vector<4x32xf32> to vector<1x32xf32>
    %462 = vector.extract_strided_slice %403 {offsets = [3, 0], sizes = [1, 32], strides = [1, 1]} : vector<4x32xf32> to vector<1x32xf32>
    %cst_214 = arith.constant dense<0.000000e+00> : vector<2xf32>
    %463 = vector.multi_reduction <add>, %460, %cst_214 [1] : vector<2x32xf32> to vector<2xf32>
    %464 = vector.shape_cast %463 : vector<2xf32> to vector<2x1xf32>
    %cst_215 = arith.constant 3.200000e+01 : f32
    %465 = vector.broadcast %cst_215 : f32 to vector<2x1xf32>
    %466 = arith.divf %464, %465 : vector<2x1xf32>
    %467 = vector.broadcast %466 : vector<2x1xf32> to vector<2x32xf32>
    %468 = arith.subf %460, %467 : vector<2x32xf32>
    %469 = arith.mulf %468, %468 : vector<2x32xf32>
    %cst_216 = arith.constant dense<0.000000e+00> : vector<2xf32>
    %470 = vector.multi_reduction <add>, %469, %cst_216 [1] : vector<2x32xf32> to vector<2xf32>
    %471 = vector.shape_cast %470 : vector<2xf32> to vector<2x1xf32>
    %cst_217 = arith.constant 3.200000e+01 : f32
    %472 = vector.broadcast %cst_217 : f32 to vector<2x1xf32>
    %473 = arith.divf %471, %472 : vector<2x1xf32>
    %474 = vector.broadcast %466 : vector<2x1xf32> to vector<2x32xf32>
    %475 = arith.subf %460, %474 : vector<2x32xf32>
    %cst_218 = arith.constant 9.99999997E-7 : f32
    %476 = vector.broadcast %cst_218 : f32 to vector<2x1xf32>
    %477 = arith.addf %473, %476 : vector<2x1xf32>
    %478 = math.rsqrt %477 : vector<2x1xf32>
    %479 = vector.broadcast %478 : vector<2x1xf32> to vector<2x32xf32>
    %480 = arith.mulf %475, %479 : vector<2x32xf32>
    %481 = vector.broadcast %461 : vector<1x32xf32> to vector<2x32xf32>
    %482 = arith.mulf %480, %481 : vector<2x32xf32>
    %483 = vector.broadcast %462 : vector<1x32xf32> to vector<2x32xf32>
    %484 = arith.addf %482, %483 : vector<2x32xf32>
    %c0_219 = arith.constant 0 : index
    %c0_220 = arith.constant 0 : index
    %485 = vector.load %arg18[%c0_219, %c0_220] : memref<32x256xf32, #tpu.memory_space<vmem>>, vector<32x256xf32>
    %cst_221 = arith.constant dense<0.000000e+00> : vector<2x256xf32>
    %486 = tpu.matmul %484, %485, %cst_221 {dimension_numbers = #tpu.dot_dimension_numbers<[1], [0], [0], [1], [0, 0, 1, 1], [], []>} : vector<2x32xf32>, vector<32x256xf32>, vector<2x256xf32> -> vector<2x256xf32>
    %c0_222 = arith.constant 0 : index
    %c0_223 = arith.constant 0 : index
    %487 = vector.load %arg19[%c0_222, %c0_223] : memref<1x256xf32, #tpu.memory_space<vmem>>, vector<1x256xf32>
    %488 = vector.broadcast %487 : vector<1x256xf32> to vector<2x256xf32>
    %489 = arith.addf %486, %488 : vector<2x256xf32>
    %cst_224 = arith.constant 0.000000e+00 : f32
    %490 = vector.broadcast %cst_224 : f32 to vector<2x256xf32>
    %491 = arith.subf %490, %489 : vector<2x256xf32>
    %492 = math.exp %491 : vector<2x256xf32>
    %cst_225 = arith.constant 1.000000e+00 : f32
    %493 = vector.broadcast %cst_225 : f32 to vector<2x256xf32>
    %494 = arith.addf %493, %492 : vector<2x256xf32>
    %cst_226 = arith.constant 1.000000e+00 : f32
    %495 = vector.broadcast %cst_226 : f32 to vector<2x256xf32>
    %496 = arith.divf %495, %494 : vector<2x256xf32>
    %c0_227 = arith.constant 0 : index
    %c0_228 = arith.constant 0 : index
    %497 = vector.load %arg20[%c0_227, %c0_228] : memref<2x256xf32, #tpu.memory_space<vmem>>, vector<2x256xf32>
    tpu.vector_store %arg20[%c0_227, %c0_228], %496 {strides = array<i32>} : memref<2x256xf32, #tpu.memory_space<vmem>>, vector<2x256xf32>,
    return
  }
}

</mosaic_0001>

<bundles_post_ra>
// kernel: passt_mtg_forward.1
= control target key start
LH: loop header
LB: loop body
LE: loop exit
PB: predicated region body
PF: predicated region fallthrough
CT: control target
= control target key end

     0   :  { %s9201_s0 = inlined_call_operand.vmem [shape: f32[32,64], index: 0, kind: input, shape index: {}]   ;;  %s9202_s1 = inlined_call_operand.vmem [shape: f32[64,128], index: 1, kind: input, shape index: {}]   ;;  %s9203_s2 = inlined_call_operand.vmem [shape: f32[64,16], index: 2, kind: input, shape index: {}]   ;;  %s9204_s3 = inlined_call_operand.vmem [shape: f32[4,8,32], index: 3, kind: input, shape index: {}]   ;;  %s9205_s4 = inlined_call_operand.vmem [shape: f32[4,16,128], index: 4, kind: input, shape index: {}]   ;;  %s9206_s5 = inlined_call_operand.vmem [shape: f32[4,36,8], index: 5, kind: input, shape index: {}]   ;;  %s9207_s6 = inlined_call_operand.vmem [shape: f32[4,128,32], index: 6, kind: input, shape index: {}]   ;;  %s9208_s7 = inlined_call_operand.vmem [shape: f32[36,32], index: 7, kind: input, shape index: {}]   ;;  %s9209_s8 = inlined_call_operand.vmem [shape: f32[2,4,32], index: 8, kind: input, shape index: {}]   ;;  %s9210_s9 = inlined_call_operand.vmem [shape: f32[2,32,96], index: 9, kind: input, shape index: {}]   ;;  %s9211_s10 = inlined_call_operand.vmem [shape: f32[2,1,96], index: 10, kind: input, shape index: {}]   ;;  %s9212_s11 = inlined_call_operand.vmem [shape: f32[2,32,32], index: 11, kind: input, shape index: {}]   ;;  %s9213_s12 = inlined_call_operand.vmem [shape: f32[2,1,32], index: 12, kind: input, shape index: {}]   ;;  %s9214_s13 = inlined_call_operand.vmem [shape: f32[2,32,64], index: 13, kind: input, shape index: {}]   ;;  %s9215_s14 = inlined_call_operand.vmem [shape: f32[2,1,64], index: 14, kind: input, shape index: {}]   ;;  %s9216_s15 = inlined_call_operand.vmem [shape: f32[2,64,32], index: 15, kind: input, shape index: {}]   ;;  %s9217_s16 = inlined_call_operand.vmem [shape: f32[2,1,32], index: 16, kind: input, shape index: {}]   ;;  %s9218_s17 = inlined_call_operand.vmem [shape: f32[4,32], index: 17, kind: input, shape index: {}]   ;;  %s9219_s18 = inlined_call_operand.vmem [shape: f32[32,256], index: 18, kind: input, shape index: {}]   ;;  %s9220_s19 = inlined_call_operand.vmem [shape: f32[1,256], index: 19, kind: input, shape index: {}]   ;;  %s9221_s20 = inlined_call_operand.hbm [shape: f32[2,256], index: 20, kind: output, shape index: {}]  }
   0x1   :  { %9227 = sst [smem:[#allocation5_spill]] %s9201_s0 }
   0x2   :  { %9228 = sst [smem:[#allocation6_spill]] %s9202_s1 }
   0x3   :  { %9229 = sst [smem:[#allocation7_spill]] %s9203_s2 }
   0x4   :  { %9230 = sst [smem:[#allocation8_spill]] %s9204_s3 }
   0x5   :  { %9231 = sst [smem:[#allocation9_spill]] %s9205_s4 }
   0x6   :  { %s9232_s23 = sld [smem:[#allocation6_spill]]  ;;  %vm78_vm0 = vcmask 523264   ;;  %s9233_s1 = sld [smem:[#allocation5_spill]] }
   0xc   :  { %v70_v0 = vld [vmem:[%s9232_s23] sm:$0xff]  ;;  %v71_v1 = vld [vmem:[%s9232_s23 + $0x8] sm:$0xff]  ;;  %v72_v2 = vld [vmem:[%s9232_s23 + $0x10] sm:$0xff] }
   0xd   :  { %v6811_v3 = vpack.c.bf16 %v71_v1, %v70_v0  ;;  %v73_v4 = vld [vmem:[%s9232_s23 + $0x18] sm:$0xff]  ;;  %v74_v6 = vld [vmem:[%s9232_s23 + $0x20] sm:$0xff]  ;;  %v75_v7 = vld [vmem:[%s9232_s23 + $0x28] sm:$0xff] }
   0xe   :  { %v6815_v5 = vpack.c.bf16 %v73_v4, %v72_v2  ;;  %v66_v8 = vld [vmem:[%s9233_s1] sm:$0xff] }
   0xf   :  { %6812 = vmatprep.subr.bf16.mxu0 %v6811_v3  ;;  %6015 = vmatprep.mubr.msk.f32.mxu0 %vm78_vm0, %v66_v8 }
  0x10   :  { %6814 = vmatpush3.bf16.msra.mxu0 %v6811_v3 }
  0x11   :  { %25 = vsyncpa [#allocation3], 0  ;;  %6816 = vmatprep.subr.bf16.mxu0 %v6815_v5  ;;  %v6819_v9 = vpack.c.bf16 %v75_v7, %v74_v6  ;;  %v76_v10 = vld [vmem:[%s9232_s23 + $0x30] sm:$0xff]  ;;  %v77_v11 = vld [vmem:[%s9232_s23 + $0x38] sm:$0xff]  ;;  %s9234_s0 = sld [smem:[#allocation7_spill]]  ;;  %s7434_s21 = smov 64  }
  0x12   :  { %v6823_v12 = vpack.c.bf16 %v77_v11, %v76_v10  ;;  %v67_v13 = vld [vmem:[%s9233_s1 + $0x8] sm:$0xff]  ;;  %v68_v14 = vld [vmem:[%s9233_s1 + $0x10] sm:$0xff]  ;;  %v69_v15 = vld [vmem:[%s9233_s1 + $0x18] sm:$0xff]  ;;  %v7435_v44 = vmov 0.0|0.0   ;;  %vm7436_vm1 = vmmov 0   ;;  %v7437_v45 = vmov 0.0  }
  0x13   :  { %s9235_s24 = sld [smem:[#allocation8_spill]]  ;;  %vm314_vm2 = vcmask 261120   ;;  %s9236_s23 = sld [smem:[#allocation9_spill]]  ;;  %vm468_vm3 = vcmask 130048   ;;  %vm929_vm4 = vcmask 64512   ;;  %vm1828_vm5 = vcmask 257024  }
  0x14   :  { %6818 = vmatpush3.bf16.msra.mxu0 %v6815_v5  ;;  %s7438_s28 = smov 96   ;;  %vm8208_vm6 = vmpackc.low %vm468_vm3, %vm468_vm3  ;;  %vm2121_vm7 = vcmask 146432   ;;  %vm2128_vm8 = vcmask 140288   ;;  %s7439_s4 = smov 80   ;;  %vm2512_vm9 = vcmask 1045504   ;;  %vm2173_vm10 = vcmask 1041408  }
  0x15   :  { %6820 = vmatprep.subr.bf16.mxu0 %v6819_v9  ;;  %s7440_s29 = smov 112   ;;  %s7441_s30 = smov 48   ;;  %vm5192_vm11 = vcmask 1040384   ;;  %vm5200_vm12 = vcmask 254976  }
  0x17   :  { %v200_v16 = vld [vmem:[%s9234_s0] sm:$0xff]  ;;  %v201_v17 = vld [vmem:[%s9234_s0 + $0x8] sm:$0xff]  ;;  %v202_v18 = vld [vmem:[%s9234_s0 + $0x10] sm:$0xff] }
  0x18   :  { %6822 = vmatpush3.bf16.msra.mxu0 %v6819_v9  ;;  %v6827_v19 = vpack.c.bf16 %v201_v17, %v200_v16  ;;  %v203_v20 = vld [vmem:[%s9234_s0 + $0x18] sm:$0xff]  ;;  %v204_v22 = vld [vmem:[%s9234_s0 + $0x20] sm:$0xff]  ;;  %v205_v23 = vld [vmem:[%s9234_s0 + $0x28] sm:$0xff] }
  0x19   :  { %6824 = vmatprep.subr.bf16.mxu0 %v6823_v12  ;;  %v6831_v21 = vpack.c.bf16 %v203_v20, %v202_v18  ;;  %v6835_v24 = vpack.c.bf16 %v205_v23, %v204_v22  ;;  %v206_v25 = vld [vmem:[%s9234_s0 + $0x30] sm:$0xff]  ;;  %v207_v26 = vld [vmem:[%s9234_s0 + $0x38] sm:$0xff]  ;;  %v313_v0 = vld [vmem:[%s9235_s24] sm:$0xff] }
  0x1a   :  { %6828 = vmatprep.subr.bf16.mxu1 %v6827_v19  ;;  %v6839_v27 = vpack.c.bf16 %v207_v26, %v206_v25  ;;  %v5411_v1 = vld [vmem:[%s9235_s24 + $0x10] sm:$0xff]  ;;  %v5405_v2 = vld [vmem:[%s9235_s24 + $0x8] sm:$0xff]  ;;  %v5416_v3 = vld [vmem:[%s9235_s24 + $0x18] sm:$0xff] }
  0x1b   :  { %6830 = vmatpush3.bf16.msra.mxu1 %v6827_v19  ;;  %v5407_v4 = vld [vmem:[%s9236_s23 + $0x10] sm:$0xff]  ;;  %v5408_v5 = vld [vmem:[%s9236_s23 + $0x18] sm:$0xff]  ;;  %v388_v11 = vld [vmem:[%s9236_s23] sm:$0xff] }
  0x1c   :  { %6826 = vmatpush3.bf16.msra.mxu0 %v6823_v12  ;;  %6832 = vmatprep.subr.bf16.mxu1 %v6831_v21  ;;  %v6856_v6 = vpack.c.bf16 %v5408_v5, %v5407_v4  ;;  %v389_v12 = vld [vmem:[%s9236_s23 + $0x8] sm:$0xff]  ;;  %v5413_v18 = vld [vmem:[%s9236_s23 + $0x20] sm:$0xff]  ;;  %v5419_v22 = vld [vmem:[%s9236_s23 + $0x38] sm:$0xff] }
  0x1d   :  { %6843 = vmatprep.subr.bf16.mxu0 %v7435_v44  ;;  %v5414_v19 = vld [vmem:[%s9236_s23 + $0x28] sm:$0xff]  ;;  %v1037_v26 = vld [vmem:[%s9207_s6 + $0x10] sm:$0xff]  ;;  %v5479_v4 = vld [vmem:[%s9206_s5 + $0x80] sm:$0xff] }
  0x1e   :  { %v6868_v20 = vpack.c.bf16 %v5414_v19, %v5413_v18  ;;  %v1036_v25 = vld [vmem:[%s9207_s6 + $0x8] sm:$0xff] }
  0x1f   :  { %6016 = vmatmul.mubr.msk.f32.vlgmr.msra.gmra.mrb[0].mxu0 %vm78_vm0, %v67_v13  ;;  %6834 = vmatpush3.bf16.msra.mxu1 %v6831_v21  ;;  %v6859_v13 = vpack.c.bf16 %v389_v12, %v388_v11  ;;  %v5418_v21 = vld [vmem:[%s9236_s23 + $0x30] sm:$0xff]  ;;  %v5480_v5 = vld [vmem:[%s9206_s5 + $0x88] sm:$0xff]  ;;  %v5439_v12 = vld [vmem:[%s9207_s6 + $0x98] sm:$0xff] }
  0x20   :  { %6018 = vmatprep.mubr.msk.f32.mxu0 %vm78_vm0, %v68_v14  ;;  %6836 = vmatprep.subr.bf16.mxu1 %v6835_v24  ;;  %v6877_v23 = vpack.c.bf16 %v5419_v22, %v5418_v21  ;;  %v5438_v11 = vld [vmem:[%s9207_s6 + $0x90] sm:$0xff]  ;;  %v5443_v22 = vld [vmem:[%s9207_s6 + $0xb8] sm:$0xff] }
  0x21   :  { %v5442_v21 = vld [vmem:[%s9207_s6 + $0xb0] sm:$0xff] }
  0x23   :  { %6019 = vmatmul.mubr.msk.f32.gmra.mrb[2].mxu0 %vm78_vm0, %v69_v15  ;;  %6838 = vmatpush3.bf16.msra.mxu1 %v6835_v24  ;;  %v1035_v24 = vld [vmem:[%s9207_s6] sm:$0xff] }
  0x24   :  { %6840 = vmatprep.subr.bf16.mxu1 %v6839_v27  ;;  %6051 = vmatprep.mubr.msk.f32.mxu0 %vm7436_vm1, %v7437_v45 }
  0x27   :  { %6842 = vmatpush3.bf16.msra.mxu1 %v6839_v27  ;;  %v6880_v27 = vpack.c.bf16 %v1036_v25, %v1035_v24  ;;  %v6913_v25 = vpack.c.bf16 %v5443_v22, %v5442_v21 }
  0x28   :  { %6861 = vmatprep.subr.bf16.mxu1 %v7435_v44 }
  0xf2   :  { %v6017_v28 = vpop.f32.mrb[0].mxu0 }
  0xf3   :  { %v157_v29 = vpop.f32.mrb[1].mxu0  ;;  %v177_v33 = vmul.f32 %v6017_v28, %v6017_v28  ;;  %v1038_v28 = vld [vmem:[%s9207_s6 + $0x18] sm:$0xff] }
  0xf4   :  { %v176_v30 = vmul.f32 %v157_v29, %v157_v29  ;;  %v6883_v29 = vpack.c.bf16 %v1038_v28, %v1037_v26  ;;  %v5444_v26 = vld [vmem:[%s9207_s6 + $0xc0] sm:$0xff] }
  0xf6   :  { %184 = vrot.lane.b32.xlu0 %v176_v30, %s7434_s21  ;;  %v6020_v31 = vpop.f32.mrb[2].mxu0 }
  0xf7   :  { %v167_v32 = vpop.f32.mrb[3].mxu0  ;;  %v179_v35 = vmul.f32 %v6020_v31, %v6020_v31  ;;  %v1040_v31 = vld [vmem:[%s9207_s6 + $0x28] sm:$0xff] }
  0xf8   :  { %v178_v34 = vmul.f32 %v167_v32, %v167_v32 }
  0xfa   :  { %186 = vrot.lane.b32.xlu0 %v177_v33, %s7434_s21  ;;  %188 = vrot.lane.b32.xlu1 %v178_v34, %s7434_s21 }
  0xfe   :  { %190 = vrot.lane.b32.xlu1 %v179_v35, %s7434_s21 }
 0x168   :  { %v185_v36 = vpop.permute.xlu0 %184 }
 0x169   :  { %v196_v37 = vadd.f32 %v185_v36, %v176_v30  ;;  %v1039_v30 = vld [vmem:[%s9207_s6 + $0x20] sm:$0xff] }
 0x16a   :  { %v6886_v32 = vpack.c.bf16 %v1040_v31, %v1039_v30  ;;  %v1043_v36 = vld [vmem:[%s9207_s6 + $0x40] sm:$0xff]  ;;  %v5446_v31 = vld [vmem:[%s9207_s6 + $0xd0] sm:$0xff] }
 0x16b   :  { %6037 = vmatprep.mubr.msk.f32.mxu1 %vm78_vm0, %v196_v37  ;;  %v1044_v37 = vld [vmem:[%s9207_s6 + $0x48] sm:$0xff] }
 0x16c   :  { %v187_v38 = vpop.permute.xlu0 %186  ;;  %v189_v39 = vpop.permute.xlu1 %188 }
 0x16d   :  { %v197_v40 = vadd.f32 %v187_v38, %v177_v33  ;;  %v198_v41 = vadd.f32 %v189_v39, %v178_v34  ;;  %v1041_v33 = vld [vmem:[%s9207_s6 + $0x30] sm:$0xff]  ;;  %v1042_v34 = vld [vmem:[%s9207_s6 + $0x38] sm:$0xff]  ;;  %v6892_v38 = vpack.c.bf16 %v1044_v37, %v1043_v36  ;;  %v5448_v36 = vld [vmem:[%s9207_s6 + $0xe0] sm:$0xff] }
 0x16e   :  { %v1045_v39 = vld [vmem:[%s9207_s6 + $0x50] sm:$0xff]  ;;  %v5449_v37 = vld [vmem:[%s9207_s6 + $0xe8] sm:$0xff] }
 0x16f   :  { %6038 = vmatmul.mubr.msk.f32.vlgmr.msra.gmra.mrb[0].mxu1 %vm78_vm0, %v197_v40  ;;  %v1046_v40 = vld [vmem:[%s9207_s6 + $0x58] sm:$0xff] }
 0x170   :  { %6040 = vmatprep.mubr.msk.f32.mxu1 %vm78_vm0, %v198_v41  ;;  %v191_v42 = vpop.permute.xlu1 %190  ;;  %v6895_v41 = vpack.c.bf16 %v1046_v40, %v1045_v39  ;;  %v6922_v40 = vpack.c.bf16 %v5449_v37, %v5448_v36 }
 0x171   :  { %v199_v43 = vadd.f32 %v191_v42, %v179_v35  ;;  %v6889_v35 = vpack.c.bf16 %v1042_v34, %v1041_v33  ;;  %v1047_v42 = vld [vmem:[%s9207_s6 + $0x60] sm:$0xff] }
 0x173   :  { %6041 = vmatmul.mubr.msk.f32.gmra.mrb[2].mxu1 %vm78_vm0, %v199_v43  ;;  %v1048_v43 = vld [vmem:[%s9207_s6 + $0x68] sm:$0xff] }
 0x174   :  { %6087 = vmatprep.mubr.msk.f32.mxu1 %vm7436_vm1, %v7437_v45 }
 0x242   :  { %v6039_v46 = vpop.f32.mrb[0].mxu1 }
 0x243   :  { %v292_v47 = vadd.f32 1e-05, %v6039_v46  ;;  %v286_v48 = vpop.f32.mrb[1].mxu1  ;;  %v6898_v46 = vpack.c.bf16 %v1048_v43, %v1047_v42  ;;  %v5451_v42 = vld [vmem:[%s9207_s6 + $0xf8] sm:$0xff] }
 0x244   :  { %v287_v49 = vadd.f32 1e-05, %v286_v48  ;;  %v1050_v48 = vld [vmem:[%s9207_s6 + $0x78] sm:$0xff] }
 0x245   :  { %7230 = vlog2.f32 %v292_v47  ;;  %v1049_v47 = vld [vmem:[%s9207_s6 + $0x70] sm:$0xff] }
 0x246   :  { %7232 = vlog2.f32 %v287_v49  ;;  %v6042_v50 = vpop.f32.mrb[2].mxu1  ;;  %v6901_v49 = vpack.c.bf16 %v1050_v48, %v1049_v47  ;;  %v5462_v48 = vld [vmem:[%s9207_s6 + $0x100] sm:$0xff] }
 0x247   :  { %v302_v51 = vadd.f32 1e-05, %v6042_v50  ;;  %v296_v52 = vpop.f32.mrb[3].mxu1  ;;  %v924_v50 = vld [vmem:[%s9206_s5] sm:$0xff] }
 0x248   :  { %v297_v53 = vadd.f32 1e-05, %v296_v52 }
 0x249   :  { %7234 = vlog2.f32 %v302_v51 }
 0x24a   :  { %7236 = vlog2.f32 %v297_v53  ;;  %v925_v53 = vld [vmem:[%s9206_s5 + $0x8] sm:$0xff] }
 0x24f   :  { %v7231_v54 = vpop.eup %7230 }
 0x250   :  { %v7233_v55 = vpop.eup %7232  ;;  %v308_v56 = vmul.f32 0.6931472, %v7231_v54  ;;  %v926_v54 = vld [vmem:[%s9206_s5 + $0x10] sm:$0xff] }
 0x251   :  { %v306_v57 = vmul.f32 0.6931472, %v7233_v55  ;;  %v927_v55 = vld [vmem:[%s9206_s5 + $0x18] sm:$0xff] }
 0x253   :  { %v7235_v58 = vpop.eup %7234  ;;  %v6844_v59 = vpack.c.bf16 %v308_v56, %v306_v57  ;;  %v928_v56 = vld [vmem:[%s9206_s5 + $0x20] sm:$0xf]  ;;  %v5426_v57 = vld [vmem:[%s9206_s5 + $0x28] sm:$0xff] }
 0x254   :  { %v7237_v60 = vpop.eup %7236  ;;  %v312_v61 = vmul.f32 0.6931472, %v7235_v58  ;;  %v5427_v58 = vld [vmem:[%s9206_s5 + $0x30] sm:$0xff] }
 0x255   :  { %v310_v62 = vmul.f32 0.6931472, %v7237_v60  ;;  %6845 = vmatpush3.bf16.msra.mxu0 %v6844_v59  ;;  %6863 = vmatpush3.bf16.msra.mxu1 %v6844_v59  ;;  %v5429_v60 = vld [vmem:[%s9206_s5 + $0x40] sm:$0xff] }
 0x256   :  { %6846 = vmatprep.subr.bf16.mxu0 %v7435_v44  ;;  %6864 = vmatprep.subr.bf16.mxu1 %v7435_v44 }
 0x257   :  { %v6847_v63 = vpack.c.bf16 %v312_v61, %v310_v62  ;;  %v5430_v61 = vld [vmem:[%s9206_s5 + $0x48] sm:$0xf]  ;;  %v5452_v62 = vld [vmem:[%s9206_s5 + $0x50] sm:$0xff] }
 0x259   :  { %6848 = vmatpush3.bf16.msra.mxu0 %v6847_v63  ;;  %6866 = vmatpush3.bf16.msra.mxu1 %v6847_v63 }
 0x25a   :  { %6849 = vmatprep.subr.bf16.mxu0 %v7435_v44  ;;  %6870 = vmatprep.subr.bf16.mxu1 %v7435_v44 }
 0x25c   :  { %6052 = vmatmul.mubr.msk.f32.vlgmr.msra.gmra.mrb[4].mxu0 %vm314_vm2, %v313_v0  ;;  %6088 = vmatmul.mubr.msk.f32.vlgmr.msra.gmra.mrb[4].mxu1 %vm314_vm2, %v5411_v1  ;;  %v5454_v0 = vld [vmem:[%s9206_s5 + $0x60] sm:$0xff]  ;;  %v5455_v1 = vld [vmem:[%s9206_s5 + $0x68] sm:$0xff] }
 0x25d   :  { %6851 = vmatpush3.bf16.msra.mxu0 %v6844_v59  ;;  %6872 = vmatpush3.bf16.msra.mxu1 %v6844_v59  ;;  %v5428_v59 = vld [vmem:[%s9206_s5 + $0x38] sm:$0xff] }
 0x25e   :  { %6852 = vmatprep.subr.bf16.mxu0 %v7435_v44  ;;  %6873 = vmatprep.subr.bf16.mxu1 %v7435_v44 }
 0x25f   :  { %6062 = vmatprep.mubr.msk.f32.mxu0 %vm7436_vm1, %v7437_v45  ;;  %6105 = vmatprep.mubr.msk.f32.mxu1 %vm7436_vm1, %v7437_v45 }
 0x261   :  { %6854 = vmatpush3.bf16.msra.mxu0 %v6847_v63  ;;  %6875 = vmatpush3.bf16.msra.mxu1 %v6847_v63  ;;  %v5453_v63 = vld [vmem:[%s9206_s5 + $0x58] sm:$0xff] }
 0x262   :  { %6855 = vmatprep.subr.bf16.mxu0 %v7435_v44  ;;  %6879 = vmatprep.subr.bf16.mxu1 %v7435_v44 }
 0x264   :  { %6063 = vmatmul.mubr.msk.f32.vlgmr.msra.gmra.mrb[6].mxu0 %vm314_vm2, %v5405_v2  ;;  %6106 = vmatmul.mubr.msk.f32.vlgmr.msra.gmra.mrb[6].mxu1 %vm314_vm2, %v5416_v3  ;;  %v5456_v2 = vld [vmem:[%s9206_s5 + $0x70] sm:$0xf]  ;;  %v5478_v3 = vld [vmem:[%s9206_s5 + $0x78] sm:$0xff] }
 0x265   :  { %6069 = vmatprep.mubr.msk.f32.mxu0 %vm7436_vm1, %v7437_v45  ;;  %6164 = vmatprep.mubr.msk.f32.mxu1 %vm7436_vm1, %v7437_v45 }
 0x266   :  { %6857 = vmatpush3.bf16.msra.mxu0 %v6856_v6  ;;  %6881 = vmatpush3.bf16.msra.mxu1 %v6880_v27  ;;  %v5481_v6 = vld [vmem:[%s9206_s5 + $0x90] sm:$0xff]  ;;  %v5445_v27 = vld [vmem:[%s9207_s6 + $0xc8] sm:$0xff] }
 0x267   :  { %6858 = vmatprep.subr.bf16.mxu0 %v7435_v44  ;;  %6882 = vmatprep.subr.bf16.mxu1 %v7435_v44  ;;  %v6916_v30 = vpack.c.bf16 %v5445_v27, %v5444_v26 }
 0x26a   :  { %6884 = vmatpush3.bf16.msra.mxu1 %v6883_v29 }
 0x26b   :  { %6885 = vmatprep.subr.bf16.mxu1 %v7435_v44 }
 0x26e   :  { %6887 = vmatpush3.bf16.msra.mxu1 %v6886_v32  ;;  %v5447_v32 = vld [vmem:[%s9207_s6 + $0xd8] sm:$0xff] }
 0x26f   :  { %6888 = vmatprep.subr.bf16.mxu1 %v7435_v44 }
 0x272   :  { %6890 = vmatpush3.bf16.msra.mxu1 %v6889_v35  ;;  %v6919_v35 = vpack.c.bf16 %v5447_v32, %v5446_v31 }
 0x273   :  { %6891 = vmatprep.subr.bf16.mxu1 %v7435_v44 }
 0x276   :  { %6893 = vmatpush3.bf16.msra.mxu1 %v6892_v38 }
 0x277   :  { %6894 = vmatprep.subr.bf16.mxu1 %v7435_v44 }
 0x27a   :  { %6896 = vmatpush3.bf16.msra.mxu1 %v6895_v41  ;;  %v5450_v41 = vld [vmem:[%s9207_s6 + $0xf0] sm:$0xff] }
 0x27b   :  { %6897 = vmatprep.subr.bf16.mxu1 %v7435_v44  ;;  %v6925_v47 = vpack.c.bf16 %v5451_v42, %v5450_v41 }
 0x27e   :  { %6899 = vmatpush3.bf16.msra.mxu1 %v6898_v46 }
 0x27f   :  { %6900 = vmatprep.subr.bf16.mxu1 %v7435_v44 }
 0x282   :  { %6902 = vmatpush3.bf16.msra.mxu1 %v6901_v49  ;;  %v5463_v49 = vld [vmem:[%s9207_s6 + $0x108] sm:$0xff] }
 0x283   :  { %6903 = vmatprep.subr.bf16.mxu1 %v7435_v44 }
 0x32f   :  { %v384_v7 = vpop.f32.mrb[4].mxu0  ;;  %v686_v8 = vpop.f32.mrb[4].mxu1 }
 0x330   :  { %v6053_v9 = vpop.f32.mrb[5].mxu0  ;;  %v6089_v10 = vpop.f32.mrb[5].mxu1 }
 0x331   :  { %v5437_v9 = vld [vmem:[%s9207_s6 + $0x88] sm:$0xff] }
 0x337   :  { %v461_v14 = vpop.f32.mrb[6].mxu0  ;;  %v838_v15 = vpop.f32.mrb[6].mxu1 }
 0x338   :  { %v6064_v16 = vpop.f32.mrb[7].mxu0  ;;  %6070 = vmatmul.mubr.msk.f32.vlgmr.msra.gmra.mrb[8].mxu0 %vm468_vm3, %v461_v14  ;;  %v6107_v17 = vpop.f32.mrb[7].mxu1 }
 0x339   :  { %6860 = vmatpush3.bf16.msra.mxu0 %v6859_v13  ;;  %6076 = vmatprep.mubr.msk.f32.mxu0 %vm7436_vm1, %v7437_v45  ;;  %v5440_v16 = vld [vmem:[%s9207_s6 + $0xa0] sm:$0xff]  ;;  %v5441_v17 = vld [vmem:[%s9207_s6 + $0xa8] sm:$0xff] }
 0x33a   :  { %6867 = vmatprep.subr.bf16.mxu0 %v7435_v44 }
 0x340   :  { %6077 = vmatmul.mubr.msk.f32.vlgmr.msra.gmra.mrb[8].mxu0 %vm468_vm3, %v384_v7  ;;  %v5482_v7 = vld [vmem:[%s9206_s5 + $0x98] sm:$0xf] }
 0x341   :  { %6869 = vmatpush3.bf16.msra.mxu0 %v6868_v20  ;;  %6094 = vmatprep.mubr.msk.f32.mxu0 %vm7436_vm1, %v7437_v45  ;;  %v6910_v20 = vpack.c.bf16 %v5441_v17, %v5440_v16 }
 0x342   :  { %6876 = vmatprep.subr.bf16.mxu0 %v7435_v44 }
 0x348   :  { %6095 = vmatmul.mubr.msk.f32.vlgmr.msra.gmra.mrb[8].mxu0 %vm468_vm3, %v686_v8  ;;  %v5436_v8 = vld [vmem:[%s9207_s6 + $0x80] sm:$0xff] }
 0x349   :  { %6878 = vmatpush3.bf16.msra.mxu0 %v6877_v23  ;;  %6112 = vmatprep.mubr.msk.f32.mxu0 %vm7436_vm1, %v7437_v45  ;;  %v6904_v10 = vpack.c.bf16 %v5437_v9, %v5436_v8  ;;  %v5472_v9 = vld [vmem:[%s9207_s6 + $0x150] sm:$0xff] }
 0x34a   :  { %6115 = vmatprep.subr.mxu0 %v7437_v45 }
 0x350   :  { %6113 = vmatmul.mubr.msk.f32.vlgmr.msra.gmra.mrb[8].mxu0 %vm468_vm3, %v838_v15  ;;  %v6907_v15 = vpack.c.bf16 %v5439_v12, %v5438_v11 }
 0x351   :  { %6117 = vmatprep.mubr.msk.f32.mxu0 %vm7436_vm1, %v7437_v45 }
 0x423   :  { %v914_v51 = vpop.f32.mrb[8].mxu0 }
 0x424   :  { %v6114_v52 = vpop.f32.mrb[9].mxu0  ;;  %6116 = vmatpush3.msra.mxu0 %v914_v51 }
 0x425   :  { %6118 = vmatmul.mubr.msk.f32.vlgmr.msra.gmra.mrb[10].mxu0 %vm929_vm4, %v924_v50  ;;  %6179 = vmatprep.subr.mxu0 %v7437_v45  ;;  %v6928_v52 = vpack.c.bf16 %v5463_v49, %v5462_v48 }
 0x426   :  { %6180 = vmatpush3.msra.mxu0 %v914_v51  ;;  %6120 = vmatprep.mubr.msk.f32.mxu0 %vm7436_vm1, %v7437_v45 }
 0x427   :  { %6243 = vmatprep.subr.mxu0 %v7437_v45 }
 0x429   :  { %6121 = vmatmul.mubr.msk.f32.gmra.mrb[12].mxu0 %vm929_vm4, %v925_v53  ;;  %v5464_v53 = vld [vmem:[%s9207_s6 + $0x110] sm:$0xff] }
 0x42a   :  { %6123 = vmatprep.mubr.msk.f32.mxu0 %vm7436_vm1, %v7437_v45 }
 0x42d   :  { %6124 = vmatmul.mubr.msk.f32.gmra.mrb[14].mxu0 %vm929_vm4, %v926_v54  ;;  %v5465_v54 = vld [vmem:[%s9207_s6 + $0x118] sm:$0xff] }
 0x42e   :  { %6126 = vmatprep.mubr.msk.f32.mxu0 %vm7436_vm1, %v7437_v45 }
 0x431   :  { %6127 = vmatmul.mubr.msk.f32.gmra.mrb[16].mxu0 %vm929_vm4, %v927_v55 }
 0x432   :  { %6129 = vmatprep.mubr.msk.f32.mxu0 %vm7436_vm1, %v7437_v45 }
 0x435   :  { %6130 = vmatmul.mubr.msk.f32.gmra.mrb[18].mxu0 %vm929_vm4, %v928_v56 }
 0x436   :  { %6181 = vmatprep.mubr.msk.f32.mxu0 %vm7436_vm1, %v7437_v45 }
 0x439   :  { %6182 = vmatmul.mubr.msk.f32.vlgmr.msra.gmra.mrb[20].mxu0 %vm929_vm4, %v5426_v57  ;;  %v6931_v57 = vpack.c.bf16 %v5465_v54, %v5464_v53  ;;  %v5500_v54 = vld [vmem:[%s9207_s6 + $0x1e0] sm:$0xff] }
 0x43a   :  { %6244 = vmatpush3.msra.mxu0 %v914_v51  ;;  %6184 = vmatprep.mubr.msk.f32.mxu0 %vm7436_vm1, %v7437_v45 }
 0x43b   :  { %6307 = vmatprep.subr.mxu0 %v7437_v45 }
 0x43d   :  { %6185 = vmatmul.mubr.msk.f32.gmra.mrb[22].mxu0 %vm929_vm4, %v5427_v58  ;;  %v5466_v58 = vld [vmem:[%s9207_s6 + $0x120] sm:$0xff] }
 0x43e   :  { %6187 = vmatprep.mubr.msk.f32.mxu0 %vm7436_vm1, %v7437_v45 }
 0x441   :  { %6188 = vmatmul.mubr.msk.f32.gmra.mrb[24].mxu0 %vm929_vm4, %v5428_v59  ;;  %v5467_v59 = vld [vmem:[%s9207_s6 + $0x128] sm:$0xff] }
 0x442   :  { %6190 = vmatprep.mubr.msk.f32.mxu0 %vm7436_vm1, %v7437_v45 }
 0x445   :  { %6191 = vmatmul.mubr.msk.f32.gmra.mrb[26].mxu0 %vm929_vm4, %v5429_v60 }
 0x446   :  { %6193 = vmatprep.mubr.msk.f32.mxu0 %vm7436_vm1, %v7437_v45 }
 0x449   :  { %6194 = vmatmul.mubr.msk.f32.gmra.mrb[28].mxu0 %vm929_vm4, %v5430_v61 }
 0x44a   :  { %6245 = vmatprep.mubr.msk.f32.mxu0 %vm7436_vm1, %v7437_v45 }
 0x44d   :  { %6246 = vmatmul.mubr.msk.f32.vlgmr.msra.gmra.mrb[30].mxu0 %vm929_vm4, %v5452_v62  ;;  %v6934_v62 = vpack.c.bf16 %v5467_v59, %v5466_v58  ;;  %v5503_v58 = vld [vmem:[%s9207_s6 + $0x1f8] sm:$0xff] }
 0x44e   :  { %6308 = vmatpush3.msra.mxu0 %v914_v51  ;;  %6248 = vmatprep.mubr.msk.f32.mxu0 %vm7436_vm1, %v7437_v45 }
 0x44f   :  { %6975 = vmatprep.subr.bf16.mxu0 %v7435_v44 }
 0x451   :  { %6249 = vmatmul.mubr.msk.f32.gmra.mrb[32].mxu0 %vm929_vm4, %v5453_v63  ;;  %v5468_v63 = vld [vmem:[%s9207_s6 + $0x130] sm:$0xff] }
 0x452   :  { %6251 = vmatprep.mubr.msk.f32.mxu0 %vm7436_vm1, %v7437_v45 }
 0x455   :  { %6252 = vmatmul.mubr.msk.f32.gmra.mrb[34].mxu0 %vm929_vm4, %v5454_v0  ;;  %v5469_v0 = vld [vmem:[%s9207_s6 + $0x138] sm:$0xff] }
 0x456   :  { %6254 = vmatprep.mubr.msk.f32.mxu0 %vm7436_vm1, %v7437_v45 }
 0x459   :  { %6255 = vmatmul.mubr.msk.f32.gmra.mrb[36].mxu0 %vm929_vm4, %v5455_v1 }
 0x45a   :  { %6257 = vmatprep.mubr.msk.f32.mxu0 %vm7436_vm1, %v7437_v45 }
 0x45d   :  { %6258 = vmatmul.mubr.msk.f32.gmra.mrb[38].mxu0 %vm929_vm4, %v5456_v2 }
 0x45e   :  { %6309 = vmatprep.mubr.msk.f32.mxu0 %vm7436_vm1, %v7437_v45 }
 0x461   :  { %6310 = vmatmul.mubr.msk.f32.vlgmr.msra.gmra.mrb[40].mxu0 %vm929_vm4, %v5478_v3  ;;  %v6937_v3 = vpack.c.bf16 %v5469_v0, %v5468_v63  ;;  %v920_v0 = vld [vmem:[%s9208_s7 + $0x8] sm:$0xff] }
 0x462   :  { %6312 = vmatprep.mubr.msk.f32.mxu0 %vm7436_vm1, %v7437_v45 }
 0x465   :  { %6313 = vmatmul.mubr.msk.f32.gmra.mrb[42].mxu0 %vm929_vm4, %v5479_v4  ;;  %v5470_v4 = vld [vmem:[%s9207_s6 + $0x140] sm:$0xff] }
 0x466   :  { %6315 = vmatprep.mubr.msk.f32.mxu0 %vm7436_vm1, %v7437_v45 }
 0x469   :  { %6316 = vmatmul.mubr.msk.f32.gmra.mrb[44].mxu0 %vm929_vm4, %v5480_v5  ;;  %v5471_v5 = vld [vmem:[%s9207_s6 + $0x148] sm:$0xff] }
 0x46a   :  { %6318 = vmatprep.mubr.msk.f32.mxu0 %vm7436_vm1, %v7437_v45  ;;  %v6940_v8 = vpack.c.bf16 %v5471_v5, %v5470_v4  ;;  %v921_v5 = vld [vmem:[%s9208_s7 + $0x10] sm:$0xff] }
 0x46d   :  { %6319 = vmatmul.mubr.msk.f32.gmra.mrb[46].mxu0 %vm929_vm4, %v5481_v6 }
 0x46e   :  { %6321 = vmatprep.mubr.msk.f32.mxu0 %vm7436_vm1, %v7437_v45 }
 0x471   :  { %6322 = vmatmul.mubr.msk.f32.gmra.mrb[48].mxu0 %vm929_vm4, %v5482_v7 }
 0x472   :  { %6379 = vmatprep.mubr.msk.f32.mxu0 %vm7436_vm1, %v7437_v45 }
 0x4f8   :  { %v1011_v13 = vpop.f32.mrb[10].mxu0 }
 0x4f9   :  { %v6119_v14 = vpop.f32.mrb[11].mxu0  ;;  %6165 = vmatmul.mubr.f32.vlgmr.msra.gmra.mrb[8].mxu1 %v1011_v13 }
 0x4fa   :  { %6905 = vmatpush3.bf16.msra.mxu1 %v6904_v10  ;;  %6167 = vmatprep.mubr.msk.f32.mxu1 %vm7436_vm1, %v7437_v45  ;;  %v5473_v10 = vld [vmem:[%s9207_s6 + $0x158] sm:$0xff]  ;;  %v5474_v14 = vld [vmem:[%s9207_s6 + $0x160] sm:$0xff] }
 0x4fb   :  { %6906 = vmatprep.subr.bf16.mxu1 %v7435_v44  ;;  %v6943_v13 = vpack.c.bf16 %v5473_v10, %v5472_v9 }
 0x4fc   :  { %v1016_v18 = vpop.f32.mrb[12].mxu0 }
 0x4fd   :  { %v6122_v19 = vpop.f32.mrb[13].mxu0  ;;  %6168 = vmatmul.mubr.f32.gmra.mrb[10].mxu1 %v1016_v18 }
 0x4fe   :  { %6908 = vmatpush3.bf16.msra.mxu1 %v6907_v15  ;;  %6170 = vmatprep.mubr.msk.f32.mxu1 %vm7436_vm1, %v7437_v45  ;;  %v5475_v15 = vld [vmem:[%s9207_s6 + $0x168] sm:$0xff]  ;;  %v5476_v19 = vld [vmem:[%s9207_s6 + $0x170] sm:$0xff] }
 0x4ff   :  { %6909 = vmatprep.subr.bf16.mxu1 %v7435_v44  ;;  %v6946_v18 = vpack.c.bf16 %v5475_v15, %v5474_v14 }
 0x500   :  { %v1021_v23 = vpop.f32.mrb[14].mxu0 }
 0x501   :  { %v6125_v24 = vpop.f32.mrb[15].mxu0  ;;  %6171 = vmatmul.mubr.f32.gmra.mrb[12].mxu1 %v1021_v23 }
 0x502   :  { %6911 = vmatpush3.bf16.msra.mxu1 %v6910_v20  ;;  %6173 = vmatprep.mubr.msk.f32.mxu1 %vm7436_vm1, %v7437_v45  ;;  %v5477_v20 = vld [vmem:[%s9207_s6 + $0x178] sm:$0xff]  ;;  %v5488_v24 = vld [vmem:[%s9207_s6 + $0x180] sm:$0xff] }
 0x503   :  { %6912 = vmatprep.subr.bf16.mxu1 %v7435_v44  ;;  %v6949_v23 = vpack.c.bf16 %v5477_v20, %v5476_v19 }
 0x504   :  { %v1026_v28 = vpop.f32.mrb[16].mxu0 }
 0x505   :  { %v6128_v29 = vpop.f32.mrb[17].mxu0  ;;  %6174 = vmatmul.mubr.f32.gmra.mrb[14].mxu1 %v1026_v28 }
 0x506   :  { %6914 = vmatpush3.bf16.msra.mxu1 %v6913_v25  ;;  %6176 = vmatprep.mubr.msk.f32.mxu1 %vm7436_vm1, %v7437_v45  ;;  %v5489_v25 = vld [vmem:[%s9207_s6 + $0x188] sm:$0xff]  ;;  %v5490_v29 = vld [vmem:[%s9207_s6 + $0x190] sm:$0xff] }
 0x507   :  { %6915 = vmatprep.subr.bf16.mxu1 %v7435_v44  ;;  %v6952_v28 = vpack.c.bf16 %v5489_v25, %v5488_v24 }
 0x508   :  { %v1031_v33 = vpop.f32.mrb[18].mxu0 }
 0x509   :  { %v6131_v34 = vpop.f32.mrb[19].mxu0  ;;  %6177 = vmatmul.mubr.f32.gmra.mrb[16].mxu1 %v1031_v33 }
 0x50a   :  { %6917 = vmatpush3.bf16.msra.mxu1 %v6916_v30  ;;  %6228 = vmatprep.mubr.msk.f32.mxu1 %vm7436_vm1, %v7437_v45  ;;  %v5491_v30 = vld [vmem:[%s9207_s6 + $0x198] sm:$0xff]  ;;  %v5492_v34 = vld [vmem:[%s9207_s6 + $0x1a0] sm:$0xff] }
 0x50b   :  { %6918 = vmatprep.subr.bf16.mxu1 %v7435_v44  ;;  %v6955_v33 = vpack.c.bf16 %v5491_v30, %v5490_v29  ;;  %v923_v30 = vld [vmem:[%s9208_s7 + $0x20] sm:$0xf] }
 0x50c   :  { %v1233_v38 = vpop.f32.mrb[20].mxu0 }
 0x50d   :  { %v6183_v39 = vpop.f32.mrb[21].mxu0 }
 0x50e   :  { %6920 = vmatpush3.bf16.msra.mxu1 %v6919_v35  ;;  %v5493_v35 = vld [vmem:[%s9207_s6 + $0x1a8] sm:$0xff]  ;;  %v5494_v39 = vld [vmem:[%s9207_s6 + $0x1b0] sm:$0xff] }
 0x50f   :  { %6921 = vmatprep.subr.bf16.mxu1 %v7435_v44 }
 0x510   :  { %v1238_v43 = vpop.f32.mrb[22].mxu0 }
 0x511   :  { %v6186_v46 = vpop.f32.mrb[23].mxu0 }
 0x512   :  { %6923 = vmatpush3.bf16.msra.mxu1 %v6922_v40  ;;  %v5495_v40 = vld [vmem:[%s9207_s6 + $0x1b8] sm:$0xff]  ;;  %v5496_v46 = vld [vmem:[%s9207_s6 + $0x1c0] sm:$0xff] }
 0x513   :  { %6924 = vmatprep.subr.bf16.mxu1 %v7435_v44 }
 0x514   :  { %v1243_v50 = vpop.f32.mrb[24].mxu0 }
 0x515   :  { %v6189_v51 = vpop.f32.mrb[25].mxu0 }
 0x516   :  { %6926 = vmatpush3.bf16.msra.mxu1 %v6925_v47  ;;  %v5497_v47 = vld [vmem:[%s9207_s6 + $0x1c8] sm:$0xff]  ;;  %v5498_v51 = vld [vmem:[%s9207_s6 + $0x1d0] sm:$0xff] }
 0x517   :  { %6927 = vmatprep.subr.bf16.mxu1 %v7435_v44 }
 0x518   :  { %v1248_v55 = vpop.f32.mrb[26].mxu0 }
 0x519   :  { %6229 = vmatmul.mubr.f32.vlgmr.msra.gmra.mrb[8].mxu1 %v1233_v38  ;;  %v6192_v56 = vpop.f32.mrb[27].mxu0  ;;  %v6958_v38 = vpack.c.bf16 %v5493_v35, %v5492_v34 }
 0x51a   :  { %6929 = vmatpush3.bf16.msra.mxu1 %v6928_v52  ;;  %6231 = vmatprep.mubr.msk.f32.mxu1 %vm7436_vm1, %v7437_v45  ;;  %v5499_v52 = vld [vmem:[%s9207_s6 + $0x1d8] sm:$0xff] }
 0x51b   :  { %6930 = vmatprep.subr.bf16.mxu1 %v7435_v44  ;;  %v6967_v53 = vpack.c.bf16 %v5499_v52, %v5498_v51 }
 0x51c   :  { %v1253_v60 = vpop.f32.mrb[28].mxu0 }
 0x51d   :  { %6232 = vmatmul.mubr.f32.gmra.mrb[10].mxu1 %v1238_v43  ;;  %v6195_v61 = vpop.f32.mrb[29].mxu0  ;;  %v6961_v43 = vpack.c.bf16 %v5495_v40, %v5494_v39  ;;  %v1903_v39 = vld [vmem:[%s9210_s9 + $0x10] sm:$0xff]  ;;  %v1904_v40 = vld [vmem:[%s9210_s9 + $0x18] sm:$0xff] }
 0x51e   :  { %6932 = vmatpush3.bf16.msra.mxu1 %v6931_v57  ;;  %6234 = vmatprep.mubr.msk.f32.mxu1 %vm7436_vm1, %v7437_v45  ;;  %v5502_v57 = vld [vmem:[%s9207_s6 + $0x1f0] sm:$0xff] }
 0x51f   :  { %6933 = vmatprep.subr.bf16.mxu1 %v7435_v44  ;;  %v6973_v59 = vpack.c.bf16 %v5503_v58, %v5502_v57  ;;  %v1815_v57 = vld [vmem:[%s9209_s8] sm:$0xf] }
 0x520   :  { %v1456_v1 = vpop.f32.mrb[30].mxu0 }
 0x521   :  { %6235 = vmatmul.mubr.f32.gmra.mrb[12].mxu1 %v1243_v50  ;;  %v6247_v2 = vpop.f32.mrb[31].mxu0  ;;  %v6964_v50 = vpack.c.bf16 %v5497_v47, %v5496_v46  ;;  %v1883_v46 = vlaneseq }
 0x522   :  { %6935 = vmatpush3.bf16.msra.mxu1 %v6934_v62  ;;  %6237 = vmatprep.mubr.msk.f32.mxu1 %vm7436_vm1, %v7437_v45 }
 0x523   :  { %6936 = vmatprep.subr.bf16.mxu1 %v7435_v44 }
 0x524   :  { %v1461_v6 = vpop.f32.mrb[32].mxu0 }
 0x525   :  { %6238 = vmatmul.mubr.f32.gmra.mrb[14].mxu1 %v1248_v55  ;;  %v6250_v7 = vpop.f32.mrb[33].mxu0  ;;  %v5501_v55 = vld [vmem:[%s9207_s6 + $0x1e8] sm:$0xff]  ;;  %s7442_s6 = smov 16  }
 0x526   :  { %6938 = vmatpush3.bf16.msra.mxu1 %v6937_v3  ;;  %6240 = vmatprep.mubr.msk.f32.mxu1 %vm7436_vm1, %v7437_v45  ;;  %v6970_v56 = vpack.c.bf16 %v5501_v55, %v5500_v54 }
 0x527   :  { %6939 = vmatprep.subr.bf16.mxu1 %v7435_v44 }
 0x528   :  { %v1466_v11 = vpop.f32.mrb[34].mxu0 }
 0x529   :  { %6241 = vmatmul.mubr.f32.gmra.mrb[16].mxu1 %v1253_v60  ;;  %v6253_v12 = vpop.f32.mrb[35].mxu0  ;;  %v919_v60 = vld [vmem:[%s9208_s7] sm:$0xff] }
 0x52a   :  { %6941 = vmatpush3.bf16.msra.mxu1 %v6940_v8  ;;  %6292 = vmatprep.mubr.msk.f32.mxu1 %vm7436_vm1, %v7437_v45 }
 0x52b   :  { %6942 = vmatprep.subr.bf16.mxu1 %v7435_v44 }
 0x52c   :  { %v1471_v16 = vpop.f32.mrb[36].mxu0 }
 0x52d   :  { %v6256_v17 = vpop.f32.mrb[37].mxu0 }
 0x52e   :  { %6944 = vmatpush3.bf16.msra.mxu1 %v6943_v13 }
 0x52f   :  { %6945 = vmatprep.subr.bf16.mxu1 %v7435_v44 }
 0x530   :  { %v1476_v21 = vpop.f32.mrb[38].mxu0 }
 0x531   :  { %v6259_v22 = vpop.f32.mrb[39].mxu0 }
 0x532   :  { %6947 = vmatpush3.bf16.msra.mxu1 %v6946_v18 }
 0x533   :  { %6948 = vmatprep.subr.bf16.mxu1 %v7435_v44 }
 0x534   :  { %v1679_v26 = vpop.f32.mrb[40].mxu0 }
 0x535   :  { %v6311_v27 = vpop.f32.mrb[41].mxu0 }
 0x536   :  { %6950 = vmatpush3.bf16.msra.mxu1 %v6949_v23  ;;  %v922_v23 = vld [vmem:[%s9208_s7 + $0x18] sm:$0xff] }
 0x537   :  { %6951 = vmatprep.subr.bf16.mxu1 %v7435_v44 }
 0x538   :  { %v1684_v31 = vpop.f32.mrb[42].mxu0 }
 0x539   :  { %6293 = vmatmul.mubr.f32.vlgmr.msra.gmra.mrb[8].mxu1 %v1456_v1  ;;  %v6314_v32 = vpop.f32.mrb[43].mxu0 }
 0x53a   :  { %6953 = vmatpush3.bf16.msra.mxu1 %v6952_v28  ;;  %6295 = vmatprep.mubr.msk.f32.mxu1 %vm7436_vm1, %v7437_v45 }
 0x53b   :  { %6954 = vmatprep.subr.bf16.mxu1 %v7435_v44 }
 0x53c   :  { %v1689_v36 = vpop.f32.mrb[44].mxu0 }
 0x53d   :  { %6296 = vmatmul.mubr.f32.gmra.mrb[10].mxu1 %v1461_v6  ;;  %v6317_v37 = vpop.f32.mrb[45].mxu0 }
 0x53e   :  { %6956 = vmatpush3.bf16.msra.mxu1 %v6955_v33  ;;  %6298 = vmatprep.mubr.msk.f32.mxu1 %vm7436_vm1, %v7437_v45  ;;  %v1902_v37 = vld [vmem:[%s9210_s9 + $0x8] sm:$0xff] }
 0x53f   :  { %6957 = vmatprep.subr.bf16.mxu1 %v7435_v44 }
 0x540   :  { %v1694_v41 = vpop.f32.mrb[46].mxu0 }
 0x541   :  { %6299 = vmatmul.mubr.f32.gmra.mrb[12].mxu1 %v1466_v11  ;;  %v6320_v42 = vpop.f32.mrb[47].mxu0 }
 0x542   :  { %6959 = vmatpush3.bf16.msra.mxu1 %v6958_v38  ;;  %6301 = vmatprep.mubr.msk.f32.mxu1 %vm7436_vm1, %v7437_v45 }
 0x543   :  { %6960 = vmatprep.subr.bf16.mxu1 %v7435_v44 }
 0x544   :  { %v1699_v48 = vpop.f32.mrb[48].mxu0 }
 0x545   :  { %6302 = vmatmul.mubr.f32.gmra.mrb[14].mxu1 %v1471_v16  ;;  %v6323_v49 = vpop.f32.mrb[49].mxu0 }
 0x546   :  { %6962 = vmatpush3.bf16.msra.mxu1 %v6961_v43  ;;  %6304 = vmatprep.mubr.msk.f32.mxu1 %vm7436_vm1, %v7437_v45 }
 0x547   :  { %6963 = vmatprep.subr.bf16.mxu1 %v7435_v44 }
 0x549   :  { %6305 = vmatmul.mubr.f32.gmra.mrb[16].mxu1 %v1476_v21 }
 0x54a   :  { %6965 = vmatpush3.bf16.msra.mxu1 %v6964_v50  ;;  %6356 = vmatprep.mubr.msk.f32.mxu1 %vm7436_vm1, %v7437_v45  ;;  %v8150_v50 = vshrl.u32 %v1883_v46, 7 }
 0x54b   :  { %6966 = vmatprep.subr.bf16.mxu1 %v7435_v44 }
 0x54e   :  { %6968 = vmatpush3.bf16.msra.mxu1 %v6967_v53 }
 0x54f   :  { %6969 = vmatprep.subr.bf16.mxu1 %v7435_v44 }
 0x552   :  { %6971 = vmatpush3.bf16.msra.mxu1 %v6970_v56  ;;  %v8153_v56 = vsub.s32 0, %v8150_v50 }
 0x553   :  { %6972 = vmatprep.subr.bf16.mxu1 %v7435_v44 }
 0x556   :  { %6974 = vmatpush3.bf16.msra.mxu1 %v6973_v59 }
 0x557   :  { %6995 = vmatprep.subr.bf16.mxu1 %v7435_v44 }
 0x559   :  { %6357 = vmatmul.mubr.f32.vlgmr.msra.gmra.mrb[8].mxu1 %v1679_v26 }
 0x55a   :  { %6359 = vmatprep.mubr.msk.f32.mxu1 %vm7436_vm1, %v7437_v45 }
 0x55d   :  { %6360 = vmatmul.mubr.f32.gmra.mrb[10].mxu1 %v1684_v31 }
 0x55e   :  { %6362 = vmatprep.mubr.msk.f32.mxu1 %vm7436_vm1, %v7437_v45 }
 0x561   :  { %6363 = vmatmul.mubr.f32.gmra.mrb[12].mxu1 %v1689_v36  ;;  %v1901_v36 = vld [vmem:[%s9210_s9] sm:$0xff] }
 0x562   :  { %6365 = vmatprep.mubr.msk.f32.mxu1 %vm7436_vm1, %v7437_v45  ;;  %v6976_v38 = vpack.c.bf16 %v1902_v37, %v1901_v36 }
 0x564   :  { %6977 = vmatpush3.bf16.msra.mxu0 %v6976_v38 }
 0x565   :  { %6366 = vmatmul.mubr.f32.gmra.mrb[14].mxu1 %v1694_v41  ;;  %6978 = vmatprep.subr.bf16.mxu0 %v7435_v44  ;;  %v6979_v41 = vpack.c.bf16 %v1904_v40, %v1903_v39  ;;  %v8187_v39 = vld [vmem:[%s9211_s10] ss:$0 sm:$0xff] }
 0x566   :  { %6368 = vmatprep.mubr.msk.f32.mxu1 %vm7436_vm1, %v7437_v45 }
 0x568   :  { %6980 = vmatpush3.bf16.msra.mxu0 %v6979_v41 }
 0x569   :  { %6369 = vmatmul.mubr.f32.gmra.mrb[16].mxu1 %v1699_v48  ;;  %6981 = vmatprep.subr.bf16.mxu0 %v7435_v44 }
 0x56a   :  { %6460 = vmatprep.mubr.msk.f32.mxu1 %vm7436_vm1, %v7437_v45 }
 0x62c   :  { %v1786_v61 = vpop.f32.mrb[8].mxu1 }
 0x62d   :  { %v8090_v62 = vadd.f32 %v1786_v61, %v919_v60  ;;  %v6358_v63 = vpop.f32.mrb[9].mxu1  ;;  %v8160_v61 = vsub.s32 1, %v8150_v50 }
 0x62f   :  { %v1816_v1 = vsel %vm314_vm2, %v8090_v62, 0.0 }
 0x630   :  { %1817 = vadd.xlane.f32.xlu0 %v1816_v1  ;;  %v1791_v2 = vpop.f32.mrb[10].mxu1  ;;  %v1886_v1 = vrot.slane %v1815_v57, %v8153_v56 }
 0x631   :  { %v8097_v3 = vadd.f32 %v1791_v2, %v920_v0  ;;  %v6361_v4 = vpop.f32.mrb[11].mxu1 }
 0x633   :  { %v1819_v6 = vsel %vm314_vm2, %v8097_v3, 0.0 }
 0x634   :  { %1820 = vadd.xlane.f32.xlu1 %v1819_v6  ;;  %v1796_v7 = vpop.f32.mrb[12].mxu1 }
 0x635   :  { %v8104_v8 = vadd.f32 %v1796_v7, %v921_v5  ;;  %v6364_v9 = vpop.f32.mrb[13].mxu1  ;;  %v1895_v7 = vrot.slane %v1815_v57, %v8160_v61 }
 0x637   :  { %v1822_v10 = vsel %vm314_vm2, %v8104_v8, 0.0 }
 0x638   :  { %1823 = vadd.xlane.f32.xlu0 %v1822_v10  ;;  %v1801_v11 = vpop.f32.mrb[14].mxu1 }
 0x639   :  { %v6367_v12 = vpop.f32.mrb[15].mxu1  ;;  %v8118_v27 = vadd.f32 %v1801_v11, %v922_v23 }
 0x63b   :  { %v1825_v34 = vsel %vm314_vm2, %v8118_v27, 0.0 }
 0x63c   :  { %v1806_v13 = vpop.f32.mrb[16].mxu1 }
 0x63d   :  { %v6370_v14 = vpop.f32.mrb[17].mxu1  ;;  %v8129_v32 = vadd.f32 %v1806_v13, %v923_v30 }
 0x63f   :  { %v1829_v35 = vsel %vm1828_vm5, %v8129_v32, 0.0 }
 0x6bd   :  { %v1818_v15 = vpop.xlane.xlu0 %1817 }
 0x6be   :  { %v1833_v16 = vmul.f32 0.03125, %v1818_v15 }
 0x6c0   :  { %v1838_v17 = vsub.f32 %v8090_v62, %v1833_v16 }
 0x6c1   :  { %v1821_v18 = vpop.xlane.xlu1 %1820 }
 0x6c2   :  { %v1834_v19 = vmul.f32 0.03125, %v1821_v18  ;;  %v1843_v20 = vmul.f32 %v1838_v17, %v1838_v17 }
 0x6c4   :  { %v8110_v21 = vsub.f32 %v8097_v3, %v1834_v19  ;;  %v1848_v22 = vsel %vm314_vm2, %v1843_v20, 0.0 }
 0x6c5   :  { %1849 = vadd.xlane.f32.xlu0 %v1848_v22  ;;  %v1824_v24 = vpop.xlane.xlu0 %1823 }
 0x6c6   :  { %v1835_v25 = vmul.f32 0.03125, %v1824_v24  ;;  %v1844_v26 = vmul.f32 %v8110_v21, %v8110_v21 }
 0x6c8   :  { %v8121_v28 = vsub.f32 %v8104_v8, %v1835_v25  ;;  %v1851_v29 = vsel %vm314_vm2, %v1844_v26, 0.0 }
 0x6c9   :  { %1852 = vadd.xlane.f32.xlu1 %v1851_v29 }
 0x6ca   :  { %v1845_v31 = vmul.f32 %v8121_v28, %v8121_v28 }
 0x6cc   :  { %v1854_v33 = vsel %vm314_vm2, %v1845_v31, 0.0 }
 0x6cd   :  { %1855 = vadd.xlane.f32.xlu0 %v1854_v33  ;;  %1826 = vadd.xlane.f32.xlu1 %v1825_v34 }
 0x6d1   :  { %1830 = vadd.xlane.f32.xlu0 %v1829_v35 }
 0x752   :  { %v1850_v42 = vpop.xlane.xlu0 %1849 }
 0x753   :  { %v1863_v43 = vmul.f32 0.03125, %v1850_v42 }
 0x755   :  { %v1868_v47 = vadd.f32 1e-06, %v1863_v43 }
 0x756   :  { %v1853_v48 = vpop.xlane.xlu1 %1852 }
 0x757   :  { %7238 = vrsqrt.f32 %v1868_v47  ;;  %v1864_v49 = vmul.f32 0.03125, %v1853_v48 }
 0x759   :  { %v1869_v51 = vadd.f32 1e-06, %v1864_v49 }
 0x75a   :  { %v1856_v52 = vpop.xlane.xlu0 %1855  ;;  %v1827_v53 = vpop.xlane.xlu1 %1826 }
 0x75b   :  { %7240 = vrsqrt.f32 %v1869_v51  ;;  %v1865_v54 = vmul.f32 0.03125, %v1856_v52  ;;  %v1836_v55 = vmul.f32 0.03125, %v1827_v53 }
 0x75d   :  { %v1870_v58 = vadd.f32 1e-06, %v1865_v54  ;;  %v1841_v59 = vsub.f32 %v8118_v27, %v1836_v55 }
 0x75e   :  { %v1831_v60 = vpop.xlane.xlu0 %1830 }
 0x75f   :  { %7242 = vrsqrt.f32 %v1870_v58  ;;  %v1837_v63 = vmul.f32 0.03125, %v1831_v60  ;;  %v1846_v0 = vmul.f32 %v1841_v59, %v1841_v59 }
 0x761   :  { %v7239_v2 = vpop.eup %7238  ;;  %v1842_v4 = vsub.f32 %v8129_v32, %v1837_v63  ;;  %v1857_v5 = vsel %vm314_vm2, %v1846_v0, 0.0 }
 0x762   :  { %v1878_v6 = vmul.f32 %v7239_v2, %v1838_v17  ;;  %1858 = vadd.xlane.f32.xlu1 %v1857_v5 }
 0x763   :  { %v1847_v9 = vmul.f32 %v1842_v4, %v1842_v4 }
 0x764   :  { %v1887_v10 = vmul.f32 %v1886_v1, %v1878_v6 }
 0x765   :  { %v7241_v11 = vpop.eup %7240  ;;  %v1860_v12 = vsel %vm1828_vm5, %v1847_v9, 0.0 }
 0x766   :  { %1861 = vadd.xlane.f32.xlu0 %v1860_v12  ;;  %v1896_v13 = vadd.f32 %v1895_v7, %v1887_v10  ;;  %v1879_v14 = vmul.f32 %v7241_v11, %v8110_v21 }
 0x768   :  { %6380 = vmatmul.mubr.msk.f32.vlgmr.msra.gmra.mrb[50].mxu0 %vm314_vm2, %v1896_v13  ;;  %v1888_v15 = vmul.f32 %v1886_v1, %v1879_v14 }
 0x769   :  { %v7243_v16 = vpop.eup %7242  ;;  %6382 = vmatprep.mubr.msk.f32.mxu0 %vm7436_vm1, %v7437_v45 }
 0x76a   :  { %v1897_v17 = vadd.f32 %v1895_v7, %v1888_v15  ;;  %v1880_v18 = vmul.f32 %v7243_v16, %v8121_v28 }
 0x76c   :  { %6383 = vmatmul.mubr.msk.f32.gmra.mrb[52].mxu0 %vm314_vm2, %v1897_v17  ;;  %v1889_v19 = vmul.f32 %v1886_v1, %v1880_v18 }
 0x76d   :  { %6385 = vmatprep.mubr.msk.f32.mxu0 %vm7436_vm1, %v7437_v45 }
 0x76e   :  { %v1898_v20 = vadd.f32 %v1895_v7, %v1889_v19 }
 0x770   :  { %6386 = vmatmul.mubr.msk.f32.gmra.mrb[54].mxu0 %vm314_vm2, %v1898_v20 }
 0x771   :  { %6388 = vmatprep.mubr.msk.f32.mxu0 %vm7436_vm1, %v7437_v45 }
 0x7ef   :  { %v1859_v21 = vpop.xlane.xlu1 %1858 }
 0x7f0   :  { %v1866_v22 = vmul.f32 0.03125, %v1859_v21 }
 0x7f2   :  { %v1871_v23 = vadd.f32 1e-06, %v1866_v22 }
 0x7f3   :  { %v1862_v24 = vpop.xlane.xlu0 %1861 }
 0x7f4   :  { %7244 = vrsqrt.f32 %v1871_v23  ;;  %v1867_v25 = vmul.f32 0.03125, %v1862_v24 }
 0x7f6   :  { %v1872_v26 = vadd.f32 1e-06, %v1867_v25 }
 0x7f8   :  { %7246 = vrsqrt.f32 %v1872_v26 }
 0x7fe   :  { %v7245_v28 = vpop.eup %7244 }
 0x7ff   :  { %v1881_v29 = vmul.f32 %v7245_v28, %v1841_v59 }
 0x801   :  { %v1890_v30 = vmul.f32 %v1886_v1, %v1881_v29 }
 0x802   :  { %v7247_v31 = vpop.eup %7246 }
 0x803   :  { %v1899_v33 = vadd.f32 %v1895_v7, %v1890_v30  ;;  %v1882_v34 = vmul.f32 %v7247_v31, %v1842_v4 }
 0x805   :  { %6389 = vmatmul.mubr.msk.f32.gmra.mrb[56].mxu0 %vm314_vm2, %v1899_v33  ;;  %v1891_v35 = vmul.f32 %v1886_v1, %v1882_v34 }
 0x806   :  { %6391 = vmatprep.mubr.msk.f32.mxu0 %vm7436_vm1, %v7437_v45 }
 0x807   :  { %v1900_v36 = vadd.f32 %v1895_v7, %v1891_v35 }
 0x809   :  { %6392 = vmatmul.mubr.msk.f32.gmra.mrb[58].mxu0 %vm314_vm2, %v1900_v36 }
 0x80a   :  { %6400 = vmatprep.mubr.msk.f32.mxu0 %vm7436_vm1, %v7437_v45 }
 0x83b   :  { %v1993_v37 = vpop.f32.mrb[50].mxu0 }
 0x83c   :  { %v6381_v38 = vpop.f32.mrb[51].mxu0  ;;  %v8190_v41 = vadd.f32 %v8187_v39, %v1993_v37 }
 0x83f   :  { %v1998_v40 = vpop.f32.mrb[52].mxu0 }
 0x840   :  { %v8193_v42 = vadd.f32 %v8187_v39, %v1998_v40  ;;  %v6384_v43 = vpop.f32.mrb[53].mxu0 }
 0x842   :  { %v8197_v46 = vpack.i.bf16 %v8193_v42, %v8190_v41 }
 0x843   :  { %v2003_v47 = vpop.f32.mrb[54].mxu0 }
 0x844   :  { %v8200_v48 = vadd.f32 %v8187_v39, %v2003_v47  ;;  %7151 = vrot.lane.b32.xlu1 %v8197_v46, %s7438_s28  ;;  %v6387_v49 = vpop.f32.mrb[55].mxu0 }
 0x846   :  { %2024 = vrot.lane.b32.xlu0 %v8200_v48, %s7438_s28  ;;  %v2513_v35 = vrot.slane %v8200_v48, 2 }
 0x8b6   :  { %v7152_v51 = vpop.permute.xlu1 %7151 }
 0x8b7   :  { %v7154_v52 = vunpack.i.h.bf16 %v7152_v51  ;;  %v7153_v53 = vunpack.i.l.bf16 %v7152_v51 }
 0x8b8   :  { %v2025_v57 = vpop.permute.xlu0 %2024 }
 0x8b9   :  { %v6982_v55 = vpack.c.bf16 %v7154_v52, %v7153_v53 }
 0x8bb   :  { %6984 = vmatpush3.bf16.xpose.msk.msra.mxu0 %vm8208_vm6, %v6982_v55 }
 0x8bc   :  { %6398 = vmatprep.subr.mxu0 %v7437_v45 }
 0x8c3   :  { %6399 = vmatpush3.xpose.msk.msra.mxu0 %vm468_vm3, %v2025_v57 }
 0x8c4   :  { %6985 = vmatprep.subr.bf16.mxu0 %v7435_v44 }
 0x8c6   :  { %6401 = vmatmul.mubr.msk.f32.vlgmr.msra.gmra.mrb[60].mxu0 %vm468_vm3, %v8190_v41 }
 0x8c7   :  { %6403 = vmatprep.mubr.msk.f32.mxu0 %vm7436_vm1, %v7437_v45 }
 0x8ca   :  { %6404 = vmatmul.mubr.msk.f32.gmra.mrb[62].mxu0 %vm468_vm3, %v8193_v42 }
 0x8cb   :  { %6406 = vmatprep.mubr.msk.f32.mxu0 %vm7436_vm1, %v7437_v45 }
 0x8ce   :  { %6407 = vmatmul.mubr.msk.f32.gmra.mrb[64].mxu0 %vm468_vm3, %v8200_v48 }
 0x8cf   :  { %6415 = vmatprep.mubr.msk.f32.mxu0 %vm7436_vm1, %v7437_v45 }
 0x8d8   :  { %v2008_v58 = vpop.f32.mrb[56].mxu0 }
 0x8d9   :  { %v6390_v59 = vpop.f32.mrb[57].mxu0  ;;  %v2009_v31 = vadd.f32 %v8187_v39, %v2008_v58 }
 0x8db   :  { %v2514_v34 = vrot.slane %v2009_v31, 2 }
 0x8dc   :  { %v2013_v60 = vpop.f32.mrb[58].mxu0 }
 0x8dd   :  { %v6393_v63 = vpop.f32.mrb[59].mxu0  ;;  %v2014_v30 = vadd.f32 %v8187_v39, %v2013_v60  ;;  %v8257_v37 = vsel %vm2512_vm9, %v2513_v35, %v2514_v34 }
 0x8df   :  { %v8243_v33 = vrot.slane %v2014_v30, 2 }
 0x8e1   :  { %v8252_v36 = vsel %vm2512_vm9, %v2514_v34, %v8243_v33 }
 0x8e2   :  { %v8261_v38 = vpack.i.bf16 %v8252_v36, %v8257_v37 }
 0x999   :  { %v2104_v0 = vpop.f32.mrb[60].mxu0 }
 0x99a   :  { %v2118_v1 = vmul.f32 0.25, %v2104_v0  ;;  %v6402_v2 = vpop.f32.mrb[61].mxu0 }
 0x99c   :  { %v2122_v4 = vsel %vm2121_vm7, %v2118_v1, -inf }
 0x99d   :  { %2123 = vmax.xlane.f32.xlu1 %v2122_v4  ;;  %v2109_v5 = vpop.f32.mrb[62].mxu0 }
 0x99e   :  { %v2119_v6 = vmul.f32 0.25, %v2109_v5  ;;  %v6405_v7 = vpop.f32.mrb[63].mxu0 }
 0x9a0   :  { %v2125_v9 = vsel %vm2121_vm7, %v2119_v6, -inf }
 0x9a1   :  { %2126 = vmax.xlane.f32.xlu0 %v2125_v9  ;;  %v2114_v10 = vpop.f32.mrb[64].mxu0 }
 0x9a2   :  { %v2120_v11 = vmul.f32 0.25, %v2114_v10  ;;  %v6408_v12 = vpop.f32.mrb[65].mxu0 }
 0x9a4   :  { %v2129_v13 = vsel %vm2128_vm8, %v2120_v11, -inf }
 0x9a5   :  { %2130 = vmax.xlane.f32.xlu1 %v2129_v13 }
 0x9b6   :  { %7156 = vrot.lane.b32.xlu1 %v8197_v46, %s7434_s21 }
 0x9ba   :  { %7161 = vrot.lane.b32.xlu1 %v8197_v46, %s7439_s4 }
 0x9be   :  { %2266 = vrot.lane.b32.xlu1 %v8200_v48, %s7439_s4 }
 0xa2a   :  { %v2124_v14 = vpop.xlane.xlu1 %2123 }
 0xa2b   :  { %v2132_v15 = vsub.f32 %v2118_v1, %v2124_v14 }
 0xa2d   :  { %v2135_v16 = vmul.f32 1.442695, %v2132_v15 }
 0xa2e   :  { %v2127_v17 = vpop.xlane.xlu0 %2126 }
 0xa2f   :  { %7248 = vpow2.f32 %v2135_v16  ;;  %v2133_v18 = vsub.f32 %v2119_v6, %v2127_v17 }
 0xa31   :  { %v2137_v19 = vmul.f32 1.442695, %v2133_v18 }
 0xa32   :  { %v2131_v20 = vpop.xlane.xlu1 %2130 }
 0xa33   :  { %7250 = vpow2.f32 %v2137_v19  ;;  %v2134_v39 = vsub.f32 %v2120_v11, %v2131_v20 }
 0xa35   :  { %v2139_v40 = vmul.f32 1.442695, %v2134_v39 }
 0xa36   :  { %v7157_v21 = vpop.permute.xlu1 %7156 }
 0xa37   :  { %v7159_v22 = vunpack.i.h.bf16 %v7157_v21  ;;  %v7158_v23 = vunpack.i.l.bf16 %v7157_v21  ;;  %7252 = vpow2.f32 %v2139_v40 }
 0xa39   :  { %v7249_v24 = vpop.eup %7248  ;;  %v6986_v25 = vpack.c.bf16 %v7159_v22, %v7158_v23 }
 0xa3a   :  { %v2141_v26 = vsel %vm2121_vm7, %v7249_v24, 0.0  ;;  %v7162_v47 = vpop.permute.xlu1 %7161 }
 0xa3b   :  { %2142 = vadd.xlane.f32.xlu0 %v2141_v26  ;;  %6987 = vmatpush3.bf16.msra.mxu0 %v6986_v25  ;;  %v7163_v55 = vunpack.i.l.bf16 %v7162_v47 }
 0xa3c   :  { %6413 = vmatprep.subr.mxu0 %v7437_v45 }
 0xa3d   :  { %v7251_v28 = vpop.eup %7250 }
 0xa3e   :  { %v2144_v29 = vsel %vm2121_vm7, %v7251_v28, 0.0  ;;  %v2267_v49 = vpop.permute.xlu1 %2266 }
 0xa3f   :  { %2145 = vadd.xlane.f32.xlu1 %v2144_v29 }
 0xa50   :  { %2256 = vrot.lane.b32.xlu1 %v8190_v41, %s7440_s29  ;;  %v7253_v41 = vpop.eup %7252 }
 0xa51   :  { %2160 = vrot.lane.b32.xlu0 %v8200_v48, %s7434_s21  ;;  %v2147_v43 = vsel %vm2128_vm8, %v7253_v41, 0.0 }
 0xa54   :  { %2260 = vrot.lane.b32.xlu1 %v8200_v48, %s7440_s29 }
 0xa58   :  { %7171 = vrot.lane.b32.xlu1 %v8261_v38, %s7439_s4 }
 0xa5c   :  { %2751 = vrot.lane.b32.xlu1 %v8257_v37, %s7440_s29 }
 0xa60   :  { %2755 = vrot.lane.b32.xlu1 %v8243_v33, %s7440_s29 }
 0xa70   :  { %2148 = vadd.xlane.f32.xlu0 %v2147_v43 }
 0xa86   :  { %7166 = vrot.lane.b32.xlu0 %v8261_v38, %s7438_s28 }
 0xa8a   :  { %2258 = vrot.lane.b32.xlu0 %v8193_v42, %s7440_s29  ;;  %v7164_v42 = vunpack.i.h.bf16 %v7162_v47 }
 0xa8c   :  { %v6989_v59 = vpack.c.bf16 %v7164_v42, %v7163_v55 }
 0xa8e   :  { %2522 = vrot.lane.b32.xlu0 %v8243_v33, %s7438_s28 }
 0xa92   :  { %2761 = vrot.lane.b32.xlu0 %v8243_v33, %s7439_s4 }
 0xa96   :  { %2753 = vrot.lane.b32.xlu0 %v8252_v36, %s7440_s29 }
 0xac8   :  { %v2143_v51 = vpop.xlane.xlu0 %2142 }
 0xac9   :  { %7254 = vrcp.f32 %v2143_v51 }
 0xacc   :  { %v2161_v52 = vpop.permute.xlu0 %2160  ;;  %v2146_v53 = vpop.xlane.xlu1 %2145 }
 0xacd   :  { %7256 = vrcp.f32 %v2146_v53  ;;  %6414 = vmatpush3.msk.msra.mxu0 %vm2173_vm10, %v2161_v52 }
 0xace   :  { %6988 = vmatprep.subr.bf16.mxu0 %v7435_v44 }
 0xad0   :  { %v2257_v0 = vpop.permute.xlu1 %2256 }
 0xad3   :  { %v7255_v57 = vpop.eup %7254 }
 0xad4   :  { %v2153_v58 = vmul.f32 %v7255_v57, %v7249_v24  ;;  %v2261_v6 = vpop.permute.xlu1 %2260 }
 0xad6   :  { %6416 = vmatmul.mubr.msk.f32.vlgmr.msra.gmra.mrb[66].mxu0 %vm2121_vm7, %v2153_v58 }
 0xad7   :  { %v7257_v60 = vpop.eup %7256  ;;  %6991 = vmatpush3.bf16.xpose.msk.msra.mxu0 %vm8208_vm6, %v6989_v59  ;;  %6418 = vmatprep.mubr.msk.f32.mxu0 %vm7436_vm1, %v7437_v45 }
 0xad8   :  { %v2154_v63 = vmul.f32 %v7257_v60, %v7251_v28  ;;  %6428 = vmatprep.subr.mxu0 %v7437_v45  ;;  %v7172_v11 = vpop.permute.xlu1 %7171 }
 0xad9   :  { %v7174_v13 = vunpack.i.h.bf16 %v7172_v11  ;;  %v7173_v14 = vunpack.i.l.bf16 %v7172_v11 }
 0xada   :  { %6419 = vmatmul.mubr.msk.f32.gmra.mrb[68].mxu0 %vm2121_vm7, %v2154_v63 }
 0xadb   :  { %6421 = vmatprep.mubr.msk.f32.mxu0 %vm7436_vm1, %v7437_v45  ;;  %v7003_v16 = vpack.c.bf16 %v7174_v13, %v7173_v14 }
 0xadc   :  { %v2752_v18 = vpop.permute.xlu1 %2751 }
 0xadf   :  { %6429 = vmatpush3.xpose.msk.msra.mxu0 %vm468_vm3, %v2267_v49 }
 0xae0   :  { %6992 = vmatprep.subr.bf16.mxu0 %v7435_v44  ;;  %v2756_v20 = vpop.permute.xlu1 %2755 }
 0xafd   :  { %v2149_v1 = vpop.xlane.xlu0 %2148 }
 0xafe   :  { %7258 = vrcp.f32 %v2149_v1 }
 0xb01   :  { %v7167_v2 = vpop.permute.xlu0 %7166 }
 0xb02   :  { %v7169_v4 = vunpack.i.h.bf16 %v7167_v2  ;;  %v7168_v5 = vunpack.i.l.bf16 %v7167_v2 }
 0xb04   :  { %v6996_v7 = vpack.c.bf16 %v7169_v4, %v7168_v5 }
 0xb05   :  { %v2259_v9 = vpop.permute.xlu0 %2258 }
 0xb06   :  { %6998 = vmatpush3.bf16.xpose.msk.msra.mxu1 %vm8208_vm6, %v6996_v7 }
 0xb07   :  { %6458 = vmatprep.subr.mxu1 %v7437_v45 }
 0xb08   :  { %v7259_v10 = vpop.eup %7258 }
 0xb09   :  { %v2155_v12 = vmul.f32 %v7259_v10, %v7253_v41  ;;  %v2523_v15 = vpop.permute.xlu0 %2522 }
 0xb0b   :  { %6422 = vmatmul.mubr.msk.f32.gmra.mrb[70].mxu0 %vm2121_vm7, %v2155_v12 }
 0xb0c   :  { %6430 = vmatprep.mubr.msk.f32.mxu0 %vm7436_vm1, %v7437_v45 }
 0xb0d   :  { %v2762_v17 = vpop.permute.xlu0 %2761 }
 0xb0e   :  { %6459 = vmatpush3.xpose.msk.msra.mxu1 %vm468_vm3, %v2523_v15 }
 0xb0f   :  { %6431 = vmatmul.mubr.msk.f32.vlgmr.msra.gmra.mrb[72].mxu0 %vm468_vm3, %v2257_v0  ;;  %7002 = vmatprep.subr.bf16.mxu1 %v7435_v44 }
 0xb10   :  { %6433 = vmatprep.mubr.msk.f32.mxu0 %vm7436_vm1, %v7437_v45 }
 0xb11   :  { %6461 = vmatmul.mubr.msk.f32.vlgmr.msra.gmra.mrb[18].mxu1 %vm468_vm3, %v8257_v37  ;;  %v2754_v19 = vpop.permute.xlu0 %2753 }
 0xb12   :  { %7005 = vmatpush3.bf16.xpose.msk.msra.mxu1 %vm8208_vm6, %v7003_v16  ;;  %6463 = vmatprep.mubr.msk.f32.mxu1 %vm7436_vm1, %v7437_v45 }
 0xb13   :  { %6434 = vmatmul.mubr.msk.f32.gmra.mrb[74].mxu0 %vm468_vm3, %v2259_v9  ;;  %6488 = vmatprep.subr.mxu1 %v7437_v45 }
 0xb14   :  { %6436 = vmatprep.mubr.msk.f32.mxu0 %vm7436_vm1, %v7437_v45 }
 0xb15   :  { %6464 = vmatmul.mubr.msk.f32.gmra.mrb[20].mxu1 %vm468_vm3, %v8252_v36 }
 0xb16   :  { %6466 = vmatprep.mubr.msk.f32.mxu1 %vm7436_vm1, %v7437_v45 }
 0xb17   :  { %6437 = vmatmul.mubr.msk.f32.gmra.mrb[76].mxu0 %vm468_vm3, %v2261_v6 }
 0xb18   :  { %6445 = vmatprep.mubr.msk.f32.mxu0 %vm7436_vm1, %v7437_v45 }
 0xb19   :  { %6467 = vmatmul.mubr.msk.f32.gmra.mrb[22].mxu1 %vm468_vm3, %v8243_v33 }
 0xb1a   :  { %6489 = vmatpush3.xpose.msk.msra.mxu1 %vm468_vm3, %v2762_v17  ;;  %6490 = vmatprep.mubr.msk.f32.mxu1 %vm7436_vm1, %v7437_v45 }
 0xb1b   :  { %7009 = vmatprep.subr.bf16.mxu1 %v7435_v44 }
 0xb1d   :  { %6491 = vmatmul.mubr.msk.f32.vlgmr.msra.gmra.mrb[24].mxu1 %vm468_vm3, %v2752_v18 }
 0xb1e   :  { %6493 = vmatprep.mubr.msk.f32.mxu1 %vm7436_vm1, %v7437_v45 }
 0xb21   :  { %6494 = vmatmul.mubr.msk.f32.gmra.mrb[26].mxu1 %vm468_vm3, %v2754_v19 }
 0xb22   :  { %6496 = vmatprep.mubr.msk.f32.mxu1 %vm7436_vm1, %v7437_v45 }
 0xb25   :  { %6497 = vmatmul.mubr.msk.f32.gmra.mrb[28].mxu1 %vm468_vm3, %v2756_v20 }
 0xb26   :  { %6522 = vmatprep.mubr.msk.f32.mxu1 %vm7436_vm1, %v7437_v45 }
 0xba9   :  { %v8336_v21 = vpop.f32.mrb[66].mxu0 }
 0xbaa   :  { %v6417_v22 = vpop.f32.mrb[67].mxu0 }
 0xbad   :  { %v8338_v23 = vpop.f32.mrb[68].mxu0 }
 0xbae   :  { %v6420_v24 = vpop.f32.mrb[69].mxu0 }
 0xbde   :  { %v8340_v25 = vpop.f32.mrb[70].mxu0 }
 0xbdf   :  { %v6423_v26 = vpop.f32.mrb[71].mxu0 }
 0xbe2   :  { %v2346_v28 = vpop.f32.mrb[72].mxu0 }
 0xbe3   :  { %v8342_v29 = vmul.f32 0.25, %v2346_v28  ;;  %v6432_v30 = vpop.f32.mrb[73].mxu0 }
 0xbe4   :  { %v2602_v31 = vpop.f32.mrb[18].mxu1 }
 0xbe5   :  { %v2616_v34 = vmul.f32 0.25, %v2602_v31  ;;  %v6462_v35 = vpop.f32.mrb[19].mxu1  ;;  %v2363_v36 = vsel %vm2121_vm7, %v8342_v29, -inf }
 0xbe6   :  { %2364 = vmax.xlane.f32.xlu0 %v2363_v36  ;;  %v2351_v37 = vpop.f32.mrb[74].mxu0 }
 0xbe7   :  { %v8346_v39 = vmul.f32 0.25, %v2351_v37  ;;  %v6435_v40 = vpop.f32.mrb[75].mxu0  ;;  %v2619_v49 = vsel %vm2121_vm7, %v2616_v34, -inf }
 0xbe8   :  { %v2607_v41 = vpop.f32.mrb[20].mxu1 }
 0xbe9   :  { %v2617_v43 = vmul.f32 0.25, %v2607_v41  ;;  %v6465_v47 = vpop.f32.mrb[21].mxu1  ;;  %v2366_v51 = vsel %vm2121_vm7, %v8346_v39, -inf }
 0xbea   :  { %2620 = vmax.xlane.f32.xlu0 %v2619_v49  ;;  %2367 = vmax.xlane.f32.xlu1 %v2366_v51  ;;  %v2356_v52 = vpop.f32.mrb[76].mxu0 }
 0xbeb   :  { %v6438_v53 = vpop.f32.mrb[77].mxu0  ;;  %v2622_v58 = vsel %vm2121_vm7, %v2617_v43, -inf }
 0xbec   :  { %v2612_v42 = vpop.f32.mrb[22].mxu1 }
 0xbed   :  { %v2618_v55 = vmul.f32 0.25, %v2612_v42  ;;  %v6468_v57 = vpop.f32.mrb[23].mxu1 }
 0xbee   :  { %2623 = vmax.xlane.f32.xlu1 %v2622_v58 }
 0xbef   :  { %v2625_v59 = vsel %vm2128_vm8, %v2618_v55, -inf }
 0xbf0   :  { %v2841_v60 = vpop.f32.mrb[24].mxu1  ;;  %2626 = vmax.xlane.f32.xlu0 %v2625_v59 }
 0xbf1   :  { %v2855_v63 = vmul.f32 0.25, %v2841_v60  ;;  %v6492_v0 = vpop.f32.mrb[25].mxu1 }
 0xbf3   :  { %v2858_v1 = vsel %vm2121_vm7, %v2855_v63, -inf }
 0xbf4   :  { %v2846_v2 = vpop.f32.mrb[26].mxu1  ;;  %2859 = vmax.xlane.f32.xlu1 %v2858_v1 }
 0xbf5   :  { %v2856_v4 = vmul.f32 0.25, %v2846_v2  ;;  %v6495_v5 = vpop.f32.mrb[27].mxu1 }
 0xbf7   :  { %v2861_v6 = vsel %vm2121_vm7, %v2856_v4, -inf }
 0xbf8   :  { %v2851_v7 = vpop.f32.mrb[28].mxu1  ;;  %2862 = vmax.xlane.f32.xlu0 %v2861_v6 }
 0xbf9   :  { %v8355_v9 = vmul.f32 0.25, %v2851_v7  ;;  %v6498_v10 = vpop.f32.mrb[29].mxu1 }
 0xbfb   :  { %v2864_v11 = vsel %vm2128_vm8, %v8355_v9, -inf }
 0xbfc   :  { %2865 = vmax.xlane.f32.xlu1 %v2864_v11 }
 0xc73   :  { %v2365_v12 = vpop.xlane.xlu0 %2364 }
 0xc74   :  { %v2372_v57 = vsub.f32 %v8342_v29, %v2365_v12 }
 0xc76   :  { %v2375_v59 = vmul.f32 1.442695, %v2372_v57 }
 0xc77   :  { %v2621_v13 = vpop.xlane.xlu0 %2620  ;;  %v2368_v14 = vpop.xlane.xlu1 %2367 }
 0xc78   :  { %v2628_v15 = vsub.f32 %v2616_v34, %v2621_v13  ;;  %v2373_v42 = vsub.f32 %v8346_v39, %v2368_v14 }
 0xc7a   :  { %v2631_v16 = vmul.f32 1.442695, %v2628_v15 }
 0xc7b   :  { %v2624_v17 = vpop.xlane.xlu1 %2623 }
 0xc7c   :  { %7260 = vpow2.f32 %v2631_v16  ;;  %v2629_v18 = vsub.f32 %v2617_v43, %v2624_v17  ;;  %v2362_v43 = vmul.f32 0.25, %v2356_v52  ;;  %v2377_v52 = vmul.f32 1.442695, %v2373_v42 }
 0xc7d   :  { %v2627_v19 = vpop.xlane.xlu0 %2626 }
 0xc7e   :  { %v2633_v20 = vmul.f32 1.442695, %v2629_v18  ;;  %v2630_v22 = vsub.f32 %v2618_v55, %v2627_v19  ;;  %v2369_v49 = vsel %vm2128_vm8, %v2362_v43, -inf }
 0xc80   :  { %7262 = vpow2.f32 %v2633_v20  ;;  %v2635_v24 = vmul.f32 1.442695, %v2630_v22 }
 0xc81   :  { %v2860_v26 = vpop.xlane.xlu1 %2859 }
 0xc82   :  { %7264 = vpow2.f32 %v2635_v24  ;;  %v2867_v28 = vsub.f32 %v2855_v63, %v2860_v26 }
 0xc84   :  { %v2870_v30 = vmul.f32 1.442695, %v2867_v28 }
 0xc85   :  { %v2863_v51 = vpop.xlane.xlu0 %2862 }
 0xc86   :  { %v8359_v31 = vpop.eup %7260  ;;  %7266 = vpow2.f32 %v2870_v30  ;;  %v2868_v53 = vsub.f32 %v2856_v4, %v2863_v51 }
 0xc87   :  { %v2637_v35 = vsel %vm2121_vm7, %v8359_v31, 0.0 }
 0xc88   :  { %2638 = vadd.xlane.f32.xlu1 %v2637_v35  ;;  %v2872_v55 = vmul.f32 1.442695, %v2868_v53 }
 0xc89   :  { %v2866_v29 = vpop.xlane.xlu1 %2865 }
 0xc8a   :  { %v8363_v34 = vpop.eup %7262  ;;  %7268 = vpow2.f32 %v2872_v55  ;;  %v2869_v16 = vsub.f32 %v8355_v9, %v2866_v29 }
 0xc8b   :  { %v2640_v36 = vsel %vm2121_vm7, %v8363_v34, 0.0  ;;  %7270 = vpow2.f32 %v2377_v52 }
 0xc8c   :  { %v8367_v37 = vpop.eup %7264  ;;  %2641 = vadd.xlane.f32.xlu0 %v2640_v36  ;;  %7272 = vpow2.f32 %v2375_v59  ;;  %v2874_v18 = vmul.f32 1.442695, %v2869_v16 }
 0xc8d   :  { %v2643_v40 = vsel %vm2128_vm8, %v8367_v37, 0.0 }
 0xc90   :  { %v8371_v41 = vpop.eup %7266  ;;  %2644 = vadd.xlane.f32.xlu0 %v2643_v40 }
 0xc91   :  { %v2876_v47 = vsel %vm2121_vm7, %v8371_v41, 0.0 }
 0xc94   :  { %2877 = vadd.xlane.f32.xlu0 %v2876_v47  ;;  %v8382_v58 = vpop.eup %7268 }
 0xc95   :  { %v2879_v60 = vsel %vm2121_vm7, %v8382_v58, 0.0 }
 0xc98   :  { %2370 = vmax.xlane.f32.xlu0 %v2369_v49 }
 0xc99   :  { %7176 = vrot.lane.b32.xlu1 %v8197_v46, %s7441_s30  ;;  %v7271_v46 = vpop.eup %7270 }
 0xc9a   :  { %v2384_v39 = vsel %vm2121_vm7, %v7271_v46, 0.0  ;;  %v7273_v63 = vpop.eup %7272 }
 0xcae   :  { %2400 = vrot.lane.b32.xlu0 %v8200_v48, %s7441_s30  ;;  %v2381_v48 = vsel %vm2121_vm7, %v7273_v63, 0.0 }
 0xcbd   :  { %2880 = vadd.xlane.f32.xlu1 %v2879_v60 }
 0xcc1   :  { %2385 = vadd.xlane.f32.xlu1 %v2384_v39 }
 0xccd   :  { %2382 = vadd.xlane.f32.xlu0 %v2381_v48 }
 0xcd2   :  { %2656 = vrot.lane.b32.xlu1 %v8243_v33, %s7434_s21 }
 0xcd6   :  { %2895 = vrot.lane.b32.xlu1 %v8243_v33, %s7441_s30 }
 0xd15   :  { %v2639_v0 = vpop.xlane.xlu1 %2638 }
 0xd19   :  { %v2642_v1 = vpop.xlane.xlu0 %2641  ;;  %v7177_v2 = vpop.permute.xlu1 %7176 }
 0xd1a   :  { %v7179_v4 = vunpack.i.h.bf16 %v7177_v2  ;;  %v7178_v5 = vunpack.i.l.bf16 %v7177_v2  ;;  %v3015_v2 = vld [vmem:[%s9212_s11] sm:$0xff] }
 0xd1c   :  { %v6993_v6 = vpack.c.bf16 %v7179_v4, %v7178_v5  ;;  %v3017_v5 = vld [vmem:[%s9212_s11 + $0x10] sm:$0xff] }
 0xd1d   :  { %v2645_v7 = vpop.xlane.xlu0 %2644 }
 0xd1e   :  { %6994 = vmatpush3.bf16.msra.mxu0 %v6993_v6  ;;  %v3018_v6 = vld [vmem:[%s9212_s11 + $0x18] sm:$0xff] }
 0xd1f   :  { %6443 = vmatprep.subr.mxu0 %v7437_v45 }
 0xd21   :  { %v2878_v10 = vpop.xlane.xlu0 %2877 }
 0xd25   :  { %v2371_v11 = vpop.xlane.xlu0 %2370 }
 0xd26   :  { %v2374_v12 = vsub.f32 %v2362_v43, %v2371_v11 }
 0xd28   :  { %v2379_v13 = vmul.f32 1.442695, %v2374_v12 }
 0xd29   :  { %v2401_v14 = vpop.permute.xlu0 %2400 }
 0xd2a   :  { %7274 = vpow2.f32 %v2379_v13  ;;  %6444 = vmatpush3.msk.msra.mxu0 %vm2173_vm10, %v2401_v14 }
 0xd2b   :  { %6999 = vmatprep.subr.bf16.mxu0 %v7435_v44 }
 0xd34   :  { %v7275_v33 = vpop.eup %7274 }
 0xd35   :  { %v2387_v15 = vsel %vm2128_vm8, %v7275_v33, 0.0 }
 0xd36   :  { %2388 = vadd.xlane.f32.xlu0 %v2387_v15 }
 0xd4a   :  { %v2881_v17 = vpop.xlane.xlu1 %2880 }
 0xd4c   :  { %7181 = vrot.lane.b32.xlu0 %v8261_v38, %s7434_s21 }
 0xd4e   :  { %v2386_v19 = vpop.xlane.xlu1 %2385 }
 0xd52   :  { %v2657_v51 = vpop.permute.xlu1 %2656 }
 0xd5a   :  { %v2383_v20 = vpop.xlane.xlu0 %2382 }
 0xd5b   :  { %7276 = vrcp.f32 %v2383_v20 }
 0xd5c   :  { %7278 = vpow2.f32 %v2874_v18 }
 0xd5d   :  { %7280 = vrcp.f32 %v2386_v19 }
 0xd65   :  { %v7277_v22 = vpop.eup %7276 }
 0xd66   :  { %v8399_v24 = vpop.eup %7278  ;;  %v2393_v26 = vmul.f32 %v7277_v22, %v7273_v63 }
 0xd67   :  { %v7281_v28 = vpop.eup %7280  ;;  %v2882_v9 = vsel %vm2128_vm8, %v8399_v24, 0.0 }
 0xd68   :  { %6446 = vmatmul.mubr.msk.f32.vlgmr.msra.gmra.mrb[78].mxu0 %vm2121_vm7, %v2393_v26  ;;  %v2394_v30 = vmul.f32 %v7281_v28, %v7271_v46 }
 0xd69   :  { %6448 = vmatprep.mubr.msk.f32.mxu0 %vm7436_vm1, %v7437_v45 }
 0xd6b   :  { %2883 = vadd.xlane.f32.xlu0 %v2882_v9 }
 0xd6c   :  { %6449 = vmatmul.mubr.msk.f32.gmra.mrb[80].mxu0 %vm2121_vm7, %v2394_v30 }
 0xd6d   :  { %6451 = vmatprep.mubr.msk.f32.mxu0 %vm7436_vm1, %v7437_v45 }
 0xd81   :  { %7186 = vrot.lane.b32.xlu0 %v8261_v38, %s7441_s30 }
 0xdc3   :  { %v2389_v35 = vpop.xlane.xlu0 %2388 }
 0xdc4   :  { %7282 = vrcp.f32 %v2389_v35 }
 0xdc5   :  { %7284 = vrcp.f32 %v2639_v0 }
 0xdc6   :  { %7286 = vrcp.f32 %v2642_v1 }
 0xdc7   :  { %v7182_v36 = vpop.permute.xlu0 %7181  ;;  %7288 = vrcp.f32 %v2645_v7  ;;  %v7013_v7 = vpack.c.bf16 %v3018_v6, %v3017_v5 }
 0xdc8   :  { %v7184_v40 = vunpack.i.h.bf16 %v7182_v36  ;;  %v7183_v43 = vunpack.i.l.bf16 %v7182_v36  ;;  %7290 = vrcp.f32 %v2878_v10 }
 0xdc9   :  { %7292 = vrcp.f32 %v2881_v17 }
 0xdca   :  { %v7000_v47 = vpack.c.bf16 %v7184_v40, %v7183_v43 }
 0xdcc   :  { %7001 = vmatpush3.bf16.msra.mxu0 %v7000_v47 }
 0xdcd   :  { %6473 = vmatprep.subr.mxu0 %v7437_v45 }
 0xdce   :  { %v7283_v49 = vpop.eup %7282 }
 0xdcf   :  { %v2395_v53 = vmul.f32 %v7283_v49, %v7275_v33  ;;  %v7285_v42 = vpop.eup %7284 }
 0xdd0   :  { %6474 = vmatpush3.msk.msra.mxu0 %vm2173_vm10, %v2657_v51  ;;  %v2649_v38 = vmul.f32 %v7285_v42, %v8359_v31  ;;  %v7287_v55 = vpop.eup %7286 }
 0xdd1   :  { %6452 = vmatmul.mubr.msk.f32.gmra.mrb[82].mxu0 %vm2121_vm7, %v2395_v53  ;;  %7006 = vmatprep.subr.bf16.mxu0 %v7435_v44  ;;  %v2650_v52 = vmul.f32 %v7287_v55, %v8363_v34  ;;  %v7289_v57 = vpop.eup %7288 }
 0xdd2   :  { %6475 = vmatprep.mubr.msk.f32.mxu0 %vm7436_vm1, %v7437_v45  ;;  %v2651_v59 = vmul.f32 %v7289_v57, %v8367_v37  ;;  %v7291_v63 = vpop.eup %7290  ;;  %v2896_v37 = vpop.permute.xlu1 %2895 }
 0xdd3   :  { %v2888_v48 = vmul.f32 %v7291_v63, %v8371_v41  ;;  %v7293_v29 = vpop.eup %7292 }
 0xdd4   :  { %v2889_v0 = vmul.f32 %v7293_v29, %v8382_v58  ;;  %v3016_v58 = vld [vmem:[%s9212_s11 + $0x8] sm:$0xff] }
 0xdd5   :  { %6476 = vmatmul.mubr.msk.f32.vlgmr.msra.gmra.mrb[84].mxu0 %vm2121_vm7, %v2649_v38  ;;  %v7010_v4 = vpack.c.bf16 %v3016_v58, %v3015_v2 }
 0xdd6   :  { %6478 = vmatprep.mubr.msk.f32.mxu0 %vm7436_vm1, %v7437_v45 }
 0xdd7   :  { %7011 = vmatpush3.bf16.msra.mxu1 %v7010_v4 }
 0xdd8   :  { %7012 = vmatprep.subr.bf16.mxu1 %v7435_v44 }
 0xdd9   :  { %6479 = vmatmul.mubr.msk.f32.gmra.mrb[86].mxu0 %vm2121_vm7, %v2650_v52 }
 0xdda   :  { %6481 = vmatprep.mubr.msk.f32.mxu0 %vm7436_vm1, %v7437_v45 }
 0xddb   :  { %7014 = vmatpush3.bf16.msra.mxu1 %v7013_v7 }
 0xddc   :  { %7021 = vmatprep.subr.bf16.mxu1 %v7435_v44 }
 0xddd   :  { %6482 = vmatmul.mubr.msk.f32.gmra.mrb[88].mxu0 %vm2121_vm7, %v2651_v59 }
 0xdde   :  { %6505 = vmatprep.mubr.msk.f32.mxu0 %vm7436_vm1, %v7437_v45 }
 0xdf8   :  { %v2884_v31 = vpop.xlane.xlu0 %2883 }
 0xdf9   :  { %7294 = vrcp.f32 %v2884_v31 }
 0xdfc   :  { %v7187_v60 = vpop.permute.xlu0 %7186 }
 0xdfd   :  { %v7189_v46 = vunpack.i.h.bf16 %v7187_v60  ;;  %v7188_v39 = vunpack.i.l.bf16 %v7187_v60  ;;  %v5550_v60 = vld [vmem:[%s9213_s12] ss:$0 sm:$0xff] }
 0xdff   :  { %v7007_v34 = vpack.c.bf16 %v7189_v46, %v7188_v39 }
 0xe01   :  { %7008 = vmatpush3.bf16.msra.mxu0 %v7007_v34 }
 0xe02   :  { %6503 = vmatprep.subr.mxu0 %v7437_v45 }
 0xe03   :  { %v7295_v1 = vpop.eup %7294 }
 0xe04   :  { %v2890_v41 = vmul.f32 %v7295_v1, %v8399_v24 }
 0xe05   :  { %6504 = vmatpush3.msk.msra.mxu0 %vm2173_vm10, %v2896_v37 }
 0xe06   :  { %6506 = vmatmul.mubr.msk.f32.vlgmr.msra.gmra.mrb[90].mxu0 %vm2121_vm7, %v2888_v48  ;;  %7015 = vmatprep.subr.bf16.mxu0 %v7435_v44 }
 0xe07   :  { %6508 = vmatprep.mubr.msk.f32.mxu0 %vm7436_vm1, %v7437_v45 }
 0xe0a   :  { %6509 = vmatmul.mubr.msk.f32.gmra.mrb[92].mxu0 %vm2121_vm7, %v2889_v0 }
 0xe0b   :  { %6511 = vmatprep.mubr.msk.f32.mxu0 %vm7436_vm1, %v7437_v45 }
 0xe0e   :  { %6512 = vmatmul.mubr.msk.f32.gmra.mrb[94].mxu0 %vm2121_vm7, %v2890_v41 }
 0xe0f   :  { %6545 = vmatprep.mubr.msk.f32.mxu0 %vm7436_vm1, %v7437_v45 }
 0xe3b   :  { %v2481_v10 = vpop.f32.mrb[78].mxu0 }
 0xe3c   :  { %2498 = vrot.lane.b32.xlu1 %v2481_v10, %s7442_s6  ;;  %v6447_v11 = vpop.f32.mrb[79].mxu0 }
 0xe3f   :  { %v2486_v12 = vpop.f32.mrb[80].mxu0 }
 0xe40   :  { %2500 = vrot.lane.b32.xlu1 %v2486_v12, %s7442_s6  ;;  %v6450_v13 = vpop.f32.mrb[81].mxu0 }
 0xea4   :  { %v2491_v14 = vpop.f32.mrb[82].mxu0 }
 0xea5   :  { %v6453_v33 = vpop.f32.mrb[83].mxu0 }
 0xea8   :  { %v2737_v15 = vpop.f32.mrb[84].mxu0 }
 0xea9   :  { %v6477_v16 = vpop.f32.mrb[85].mxu0 }
 0xeac   :  { %v2742_v17 = vpop.f32.mrb[86].mxu0 }
 0xead   :  { %v6480_v18 = vpop.f32.mrb[87].mxu0 }
 0xeae   :  { %v2499_v19 = vpop.permute.xlu1 %2498 }
 0xeaf   :  { %v2507_v20 = vsel %vm468_vm3, %v8336_v21, %v2499_v19 }
 0xeb0   :  { %v2747_v22 = vpop.f32.mrb[88].mxu0  ;;  %6523 = vmatmul.mubr.msk.f32.vlgmr.msra.gmra.mrb[30].mxu1 %vm314_vm2, %v2507_v20 }
 0xeb1   :  { %v6483_v24 = vpop.f32.mrb[89].mxu0  ;;  %6525 = vmatprep.mubr.msk.f32.mxu1 %vm7436_vm1, %v7437_v45 }
 0xeb2   :  { %v2501_v26 = vpop.permute.xlu1 %2500 }
 0xeb3   :  { %v2508_v28 = vsel %vm468_vm3, %v8338_v23, %v2501_v26 }
 0xeb4   :  { %6526 = vmatmul.mubr.msk.f32.gmra.mrb[32].mxu1 %vm314_vm2, %v2508_v28  ;;  %v3217_v28 = vld [vmem:[%s9214_s13] sm:$0xff] }
 0xeb5   :  { %6528 = vmatprep.mubr.msk.f32.mxu1 %vm7436_vm1, %v7437_v45 }
 0xed9   :  { %v2976_v9 = vpop.f32.mrb[90].mxu0 }
 0xeda   :  { %2993 = vrot.lane.b32.xlu1 %v2976_v9, %s7442_s6  ;;  %v6507_v21 = vpop.f32.mrb[91].mxu0 }
 0xedb   :  { %v3219_v21 = vld [vmem:[%s9214_s13 + $0x10] sm:$0xff] }
 0xedd   :  { %v2981_v30 = vpop.f32.mrb[92].mxu0 }
 0xede   :  { %2502 = vrot.lane.b32.xlu1 %v2491_v14, %s7442_s6  ;;  %2995 = vrot.lane.b32.xlu0 %v2981_v30, %s7442_s6  ;;  %v6510_v35 = vpop.f32.mrb[93].mxu0  ;;  %v3220_v30 = vld [vmem:[%s9214_s13 + $0x18] sm:$0xff] }
 0xedf   :  { %v7019_v35 = vpack.c.bf16 %v3220_v30, %v3219_v21 }
 0xee1   :  { %v2986_v36 = vpop.f32.mrb[94].mxu0 }
 0xee2   :  { %2997 = vrot.lane.b32.xlu1 %v2986_v36, %s7442_s6  ;;  %v6513_v40 = vpop.f32.mrb[95].mxu0 }
 0xf4c   :  { %v2994_v23 = vpop.permute.xlu1 %2993 }
 0xf4d   :  { %v3002_v43 = vsel %vm468_vm3, %v2737_v15, %v2994_v23 }
 0xf4e   :  { %v3008_v47 = vrot.slane %v3002_v43, 6 }
 0xf50   :  { %v2503_v49 = vpop.permute.xlu1 %2502  ;;  %v2996_v51 = vpop.permute.xlu0 %2995 }
 0xf51   :  { %v2509_v53 = vsel %vm468_vm3, %v8340_v25, %v2503_v49  ;;  %v3003_v42 = vsel %vm468_vm3, %v2742_v17, %v2996_v51 }
 0xf52   :  { %v3009_v38 = vrot.slane %v3003_v42, 6  ;;  %v3014_v55 = vsel %vm2173_vm10, %v2509_v53, %v3008_v47 }
 0xf53   :  { %6529 = vmatmul.mubr.msk.f32.gmra.mrb[34].mxu1 %vm314_vm2, %v3014_v55 }
 0xf54   :  { %v2998_v52 = vpop.permute.xlu1 %2997  ;;  %6531 = vmatprep.mubr.msk.f32.mxu1 %vm7436_vm1, %v7437_v45  ;;  %v3010_v57 = vsel %vm2173_vm10, %v3008_v47, %v3009_v38 }
 0xf55   :  { %v3004_v59 = vsel %vm468_vm3, %v2747_v22, %v2998_v52 }
 0xf56   :  { %v3011_v31 = vrot.slane %v3004_v59, 6 }
 0xf57   :  { %6532 = vmatmul.mubr.msk.f32.gmra.mrb[36].mxu1 %vm314_vm2, %v3010_v57 }
 0xf58   :  { %6534 = vmatprep.mubr.msk.f32.mxu1 %vm7436_vm1, %v7437_v45  ;;  %v3012_v25 = vsel %vm2173_vm10, %v3009_v38, %v3011_v31 }
 0xf5b   :  { %6535 = vmatmul.mubr.msk.f32.gmra.mrb[38].mxu1 %vm314_vm2, %v3012_v25 }
 0xf5c   :  { %6576 = vmatprep.mubr.msk.f32.mxu1 %vm7436_vm1, %v7437_v45 }
 0xf83   :  { %v3105_v46 = vpop.f32.mrb[30].mxu1 }
 0xf84   :  { %v3106_v39 = vadd.f32 %v5550_v60, %v3105_v46  ;;  %v6524_v34 = vpop.f32.mrb[31].mxu1 }
 0xf86   :  { %v8495_v63 = vadd.f32 %v8090_v62, %v3106_v39 }
 0xf87   :  { %v3110_v48 = vpop.f32.mrb[32].mxu1 }
 0xf88   :  { %v3111_v37 = vadd.f32 %v5550_v60, %v3110_v48  ;;  %v6527_v29 = vpop.f32.mrb[33].mxu1  ;;  %v3134_v0 = vsel %vm314_vm2, %v8495_v63, 0.0 }
 0xf89   :  { %3135 = vadd.xlane.f32.xlu0 %v3134_v0  ;;  %v8563_v29 = vsub.s32 3, %v8150_v50  ;;  %v7408_v0 = vld [vmem:[%s9209_s8] sm:$0xf] }
 0xf8a   :  { %v8500_v1 = vadd.f32 %v8097_v3, %v3111_v37  ;;  %v8560_v37 = vsub.s32 2, %v8150_v50 }
 0xf8c   :  { %v3137_v41 = vsel %vm314_vm2, %v8500_v1, 0.0 }
 0xf8d   :  { %3138 = vadd.xlane.f32.xlu1 %v3137_v41  ;;  %v3202_v41 = vrot.slane %v7408_v0, %v8560_v37 }
0x1016   :  { %v3136_v2 = vpop.xlane.xlu0 %3135 }
0x1017   :  { %v3149_v4 = vmul.f32 0.03125, %v3136_v2 }
0x1019   :  { %v8508_v11 = vsub.f32 %v8495_v63, %v3149_v4 }
0x101a   :  { %v3139_v6 = vpop.xlane.xlu1 %3138 }
0x101b   :  { %v3150_v12 = vmul.f32 0.03125, %v3139_v6  ;;  %v3159_v19 = vmul.f32 %v8508_v11, %v8508_v11 }
0x101d   :  { %v3155_v16 = vsub.f32 %v8500_v1, %v3150_v12  ;;  %v3164_v22 = vsel %vm314_vm2, %v3159_v19, 0.0  ;;  %v3384_v19 = vld [vmem:[%s9216_s15 + $0x30] sm:$0xff] }
0x101f   :  { %v3160_v24 = vmul.f32 %v3155_v16, %v3155_v16 }
0x1021   :  { %v3167_v26 = vsel %vm314_vm2, %v3160_v24, 0.0 }
0x1026   :  { %v3115_v58 = vpop.f32.mrb[34].mxu1 }
0x1027   :  { %v3116_v5 = vadd.f32 %v5550_v60, %v3115_v58  ;;  %v6530_v62 = vpop.f32.mrb[35].mxu1  ;;  %v3211_v58 = vrot.slane %v7408_v0, %v8563_v29 }
0x1029   :  { %v8505_v7 = vadd.f32 %v8104_v8, %v3116_v5 }
0x102a   :  { %v3120_v10 = vpop.f32.mrb[36].mxu1 }
0x102b   :  { %v3121_v3 = vadd.f32 %v5550_v60, %v3120_v10  ;;  %v6533_v13 = vpop.f32.mrb[37].mxu1  ;;  %v3140_v14 = vsel %vm314_vm2, %v8505_v7, 0.0 }
0x102c   :  { %3141 = vadd.xlane.f32.xlu0 %v3140_v14  ;;  %v3380_v14 = vld [vmem:[%s9216_s15 + $0x10] sm:$0xff] }
0x102d   :  { %v8513_v33 = vadd.f32 %v8118_v27, %v3121_v3  ;;  %v3379_v3 = vld [vmem:[%s9216_s15 + $0x8] sm:$0xff] }
0x102e   :  { %v3125_v15 = vpop.f32.mrb[38].mxu1 }
0x102f   :  { %v3126_v17 = vadd.f32 %v5550_v60, %v3125_v15  ;;  %v6536_v8 = vpop.f32.mrb[39].mxu1  ;;  %v3143_v18 = vsel %vm314_vm2, %v8513_v33, 0.0  ;;  %v3381_v15 = vld [vmem:[%s9216_s15 + $0x18] sm:$0xff] }
0x1030   :  { %3144 = vadd.xlane.f32.xlu0 %v3143_v18  ;;  %v3383_v8 = vld [vmem:[%s9216_s15 + $0x28] sm:$0xff] }
0x1031   :  { %v8521_v20 = vadd.f32 %v8129_v32, %v3126_v17  ;;  %v3218_v32 = vld [vmem:[%s9214_s13 + $0x8] sm:$0xff]  ;;  %v3382_v17 = vld [vmem:[%s9216_s15 + $0x20] sm:$0xff] }
0x1032   :  { %v7016_v9 = vpack.c.bf16 %v3218_v32, %v3217_v28  ;;  %v7028_v18 = vpack.c.bf16 %v3383_v8, %v3382_v17 }
0x1033   :  { %v3146_v27 = vsel %vm1828_vm5, %v8521_v20, 0.0 }
0x1034   :  { %3165 = vadd.xlane.f32.xlu0 %v3164_v22  ;;  %3147 = vadd.xlane.f32.xlu1 %v3146_v27  ;;  %v3385_v22 = vld [vmem:[%s9216_s15 + $0x38] sm:$0xff] }
0x1035   :  { %7017 = vmatpush3.bf16.msra.mxu0 %v7016_v9  ;;  %v7031_v27 = vpack.c.bf16 %v3385_v22, %v3384_v19 }
0x1036   :  { %7018 = vmatprep.subr.bf16.mxu0 %v7435_v44 }
0x1038   :  { %3168 = vadd.xlane.f32.xlu1 %v3167_v26 }
0x1039   :  { %7020 = vmatpush3.bf16.msra.mxu0 %v7019_v35 }
0x103a   :  { %7033 = vmatprep.subr.bf16.mxu0 %v7435_v44 }
0x10b9   :  { %v3142_v36 = vpop.xlane.xlu0 %3141 }
0x10ba   :  { %v3151_v40 = vmul.f32 0.03125, %v3142_v36 }
0x10bc   :  { %v8542_v23 = vsub.f32 %v8505_v7, %v3151_v40 }
0x10bd   :  { %v3145_v43 = vpop.xlane.xlu0 %3144 }
0x10be   :  { %v3152_v47 = vmul.f32 0.03125, %v3145_v43  ;;  %v3161_v49 = vmul.f32 %v8542_v23, %v8542_v23 }
0x10c0   :  { %v8547_v51 = vsub.f32 %v8513_v33, %v3152_v47  ;;  %v3170_v53 = vsel %vm314_vm2, %v3161_v49, 0.0 }
0x10c1   :  { %3171 = vadd.xlane.f32.xlu0 %v3170_v53  ;;  %v3166_v42 = vpop.xlane.xlu0 %3165  ;;  %v3148_v38 = vpop.xlane.xlu1 %3147 }
0x10c2   :  { %v3179_v55 = vmul.f32 0.03125, %v3166_v42  ;;  %v3153_v52 = vmul.f32 0.03125, %v3148_v38  ;;  %v3162_v57 = vmul.f32 %v8547_v51, %v8547_v51 }
0x10c4   :  { %v3184_v59 = vadd.f32 1e-06, %v3179_v55  ;;  %v8553_v31 = vsub.f32 %v8521_v20, %v3153_v52  ;;  %v3173_v25 = vsel %vm314_vm2, %v3162_v57, 0.0 }
0x10c5   :  { %3174 = vadd.xlane.f32.xlu1 %v3173_v25  ;;  %v3169_v60 = vpop.xlane.xlu1 %3168 }
0x10c6   :  { %7296 = vrsqrt.f32 %v3184_v59  ;;  %v3180_v46 = vmul.f32 0.03125, %v3169_v60  ;;  %v3163_v39 = vmul.f32 %v8553_v31, %v8553_v31 }
0x10c8   :  { %v3185_v34 = vadd.f32 1e-06, %v3180_v46  ;;  %v3176_v48 = vsel %vm1828_vm5, %v3163_v39, 0.0 }
0x10c9   :  { %3177 = vadd.xlane.f32.xlu0 %v3176_v48 }
0x10ca   :  { %7298 = vrsqrt.f32 %v3185_v34 }
0x10d0   :  { %v7297_v2 = vpop.eup %7296 }
0x10d1   :  { %v3194_v4 = vmul.f32 %v7297_v2, %v8508_v11  ;;  %v3378_v11 = vld [vmem:[%s9216_s15] sm:$0xff] }
0x10d2   :  { %v7022_v13 = vpack.c.bf16 %v3379_v3, %v3378_v11 }
0x10d3   :  { %v3203_v5 = vmul.f32 %v3202_v41, %v3194_v4 }
0x10d4   :  { %v7299_v62 = vpop.eup %7298  ;;  %7023 = vmatpush3.bf16.msra.mxu1 %v7022_v13 }
0x10d5   :  { %v3212_v6 = vadd.f32 %v3211_v58, %v3203_v5  ;;  %v3195_v10 = vmul.f32 %v7299_v62, %v3155_v16  ;;  %7024 = vmatprep.subr.bf16.mxu1 %v7435_v44  ;;  %v7025_v16 = vpack.c.bf16 %v3381_v15, %v3380_v14 }
0x10d7   :  { %6546 = vmatmul.mubr.msk.f32.vlgmr.msra.gmra.mrb[96].mxu0 %vm314_vm2, %v3212_v6  ;;  %v3204_v12 = vmul.f32 %v3202_v41, %v3195_v10 }
0x10d8   :  { %6548 = vmatprep.mubr.msk.f32.mxu0 %vm7436_vm1, %v7437_v45  ;;  %7026 = vmatpush3.bf16.msra.mxu1 %v7025_v16 }
0x10d9   :  { %v3213_v50 = vadd.f32 %v3211_v58, %v3204_v12  ;;  %7027 = vmatprep.subr.bf16.mxu1 %v7435_v44 }
0x10db   :  { %6549 = vmatmul.mubr.msk.f32.gmra.mrb[98].mxu0 %vm314_vm2, %v3213_v50 }
0x10dc   :  { %6551 = vmatprep.mubr.msk.f32.mxu0 %vm7436_vm1, %v7437_v45  ;;  %7029 = vmatpush3.bf16.msra.mxu1 %v7028_v18 }
0x10dd   :  { %7030 = vmatprep.subr.bf16.mxu1 %v7435_v44 }
0x10e0   :  { %7032 = vmatpush3.bf16.msra.mxu1 %v7031_v27 }
0x10e1   :  { %7039 = vmatprep.subr.bf16.mxu1 %v7435_v44 }
0x114e   :  { %v3172_v24 = vpop.xlane.xlu0 %3171 }
0x114f   :  { %v3181_v26 = vmul.f32 0.03125, %v3172_v24 }
0x1151   :  { %v3186_v28 = vadd.f32 1e-06, %v3181_v26 }
0x1152   :  { %v3175_v32 = vpop.xlane.xlu1 %3174 }
0x1153   :  { %7300 = vrsqrt.f32 %v3186_v28  ;;  %v3182_v9 = vmul.f32 0.03125, %v3175_v32 }
0x1155   :  { %v3187_v21 = vadd.f32 1e-06, %v3182_v9 }
0x1156   :  { %v3178_v30 = vpop.xlane.xlu0 %3177 }
0x1157   :  { %7302 = vrsqrt.f32 %v3187_v21  ;;  %v3183_v35 = vmul.f32 0.03125, %v3178_v30 }
0x1159   :  { %v3188_v36 = vadd.f32 1e-06, %v3183_v35 }
0x115b   :  { %7304 = vrsqrt.f32 %v3188_v36 }
0x115d   :  { %v7301_v40 = vpop.eup %7300 }
0x115e   :  { %v3196_v43 = vmul.f32 %v7301_v40, %v8542_v23 }
0x1160   :  { %v3205_v47 = vmul.f32 %v3202_v41, %v3196_v43 }
0x1161   :  { %v7303_v49 = vpop.eup %7302 }
0x1162   :  { %v3214_v53 = vadd.f32 %v3211_v58, %v3205_v47  ;;  %v3197_v42 = vmul.f32 %v7303_v49, %v8547_v51  ;;  %v5556_v51 = vld [vmem:[%s9215_s14] ss:$0 sm:$0xff] }
0x1164   :  { %6552 = vmatmul.mubr.msk.f32.gmra.mrb[100].mxu0 %vm314_vm2, %v3214_v53  ;;  %v3206_v38 = vmul.f32 %v3202_v41, %v3197_v42 }
0x1165   :  { %v7305_v55 = vpop.eup %7304  ;;  %6554 = vmatprep.mubr.msk.f32.mxu0 %vm7436_vm1, %v7437_v45 }
0x1166   :  { %v3215_v52 = vadd.f32 %v3211_v58, %v3206_v38  ;;  %v3198_v57 = vmul.f32 %v7305_v55, %v8553_v31 }
0x1168   :  { %6555 = vmatmul.mubr.msk.f32.gmra.mrb[102].mxu0 %vm314_vm2, %v3215_v52  ;;  %v3207_v59 = vmul.f32 %v3202_v41, %v3198_v57 }
0x1169   :  { %6557 = vmatprep.mubr.msk.f32.mxu0 %vm7436_vm1, %v7437_v45 }
0x116a   :  { %v3216_v23 = vadd.f32 %v3211_v58, %v3207_v59 }
0x116c   :  { %6558 = vmatmul.mubr.msk.f32.gmra.mrb[104].mxu0 %vm314_vm2, %v3216_v23 }
0x116d   :  { %6599 = vmatprep.mubr.msk.f32.mxu0 %vm7436_vm1, %v7437_v45 }
0x11aa   :  { %v3309_v25 = vpop.f32.mrb[96].mxu0 }
0x11ab   :  { %v3310_v60 = vadd.f32 %v5556_v51, %v3309_v25  ;;  %v6547_v46 = vpop.f32.mrb[97].mxu0 }
0x11ad   :  { %v3338_v31 = vmul.f32 0.044715, %v3310_v60  ;;  %v3333_v50 = vmul.f32 0.5, %v3310_v60 }
0x11ae   :  { %v3314_v39 = vpop.f32.mrb[98].mxu0 }
0x11af   :  { %v3343_v34 = vmul.f32 %v3338_v31, %v3310_v60  ;;  %v3315_v48 = vadd.f32 %v5556_v51, %v3314_v39  ;;  %v6550_v0 = vpop.f32.mrb[99].mxu0 }
0x11b1   :  { %v3348_v41 = vmul.f32 %v3343_v34, %v3310_v60  ;;  %v3339_v2 = vmul.f32 0.044715, %v3315_v48  ;;  %v3334_v14 = vmul.f32 0.5, %v3315_v48 }
0x11b3   :  { %v3353_v58 = vadd.f32 %v3348_v41, %v3310_v60  ;;  %v3344_v4 = vmul.f32 %v3339_v2, %v3315_v48  ;;  %v5562_v41 = vld [vmem:[%s9217_s16] ss:$0 sm:$0xff] }
0x11b5   :  { %v3358_v5 = vmul.f32 0.7978846, %v3353_v58  ;;  %v3349_v62 = vmul.f32 %v3344_v4, %v3315_v48 }
0x11b7   :  { %7306 = vtanh.f32 %v3358_v5  ;;  %v3354_v6 = vadd.f32 %v3349_v62, %v3315_v48 }
0x11b9   :  { %v3359_v10 = vmul.f32 0.7978846, %v3354_v6 }
0x11bb   :  { %7308 = vtanh.f32 %v3359_v10 }
0x11c1   :  { %v7307_v12 = vpop.eup %7306 }
0x11c2   :  { %v3368_v11 = vadd.f32 1.0, %v7307_v12 }
0x11c4   :  { %v3373_v3 = vmul.f32 %v3368_v11, %v3333_v50 }
0x11c5   :  { %v7309_v13 = vpop.eup %7308 }
0x11c6   :  { %6577 = vmatmul.mubr.msk.f32.vlgmr.msra.gmra.mrb[40].mxu1 %vm78_vm0, %v3373_v3  ;;  %v3369_v15 = vadd.f32 1.0, %v7309_v13 }
0x11c7   :  { %6579 = vmatprep.mubr.msk.f32.mxu1 %vm7436_vm1, %v7437_v45 }
0x11c8   :  { %v3374_v16 = vmul.f32 %v3369_v15, %v3334_v14 }
0x11ca   :  { %6580 = vmatmul.mubr.msk.f32.gmra.mrb[42].mxu1 %vm78_vm0, %v3374_v16 }
0x11cb   :  { %6582 = vmatprep.mubr.msk.f32.mxu1 %vm7436_vm1, %v7437_v45 }
0x1237   :  { %v3319_v17 = vpop.f32.mrb[100].mxu0 }
0x1238   :  { %v3320_v8 = vadd.f32 %v5556_v51, %v3319_v17  ;;  %v6553_v18 = vpop.f32.mrb[101].mxu0 }
0x123a   :  { %v3340_v19 = vmul.f32 0.044715, %v3320_v8  ;;  %v3335_v59 = vmul.f32 0.5, %v3320_v8 }
0x123b   :  { %v3324_v22 = vpop.f32.mrb[102].mxu0 }
0x123c   :  { %v3345_v27 = vmul.f32 %v3340_v19, %v3320_v8  ;;  %v3325_v24 = vadd.f32 %v5556_v51, %v3324_v22  ;;  %v6556_v26 = vpop.f32.mrb[103].mxu0 }
0x123e   :  { %v3350_v28 = vmul.f32 %v3345_v27, %v3320_v8  ;;  %v3341_v32 = vmul.f32 0.044715, %v3325_v24 }
0x123f   :  { %v3329_v9 = vpop.f32.mrb[104].mxu0 }
0x1240   :  { %v3355_v21 = vadd.f32 %v3350_v28, %v3320_v8  ;;  %v3346_v30 = vmul.f32 %v3341_v32, %v3325_v24  ;;  %v3330_v35 = vadd.f32 %v5556_v51, %v3329_v9  ;;  %v6559_v36 = vpop.f32.mrb[105].mxu0  ;;  %v3336_v51 = vmul.f32 0.5, %v3325_v24 }
0x1242   :  { %v3351_v40 = vmul.f32 %v3346_v30, %v3325_v24  ;;  %v3342_v43 = vmul.f32 0.044715, %v3330_v35  ;;  %v3360_v47 = vmul.f32 0.7978846, %v3355_v21  ;;  %v3337_v34 = vmul.f32 0.5, %v3330_v35 }
0x1244   :  { %v3356_v49 = vadd.f32 %v3351_v40, %v3325_v24  ;;  %v3347_v53 = vmul.f32 %v3342_v43, %v3330_v35  ;;  %7310 = vtanh.f32 %v3360_v47  ;;  %v5570_v43 = vld [vmem:[%s9210_s9 + $0x28] sm:$0xff] }
0x1246   :  { %v3352_v42 = vmul.f32 %v3347_v53, %v3330_v35  ;;  %v3361_v38 = vmul.f32 0.7978846, %v3356_v49  ;;  %v5571_v49 = vld [vmem:[%s9210_s9 + $0x30] sm:$0xff]  ;;  %v5572_v53 = vld [vmem:[%s9210_s9 + $0x38] sm:$0xff] }
0x1248   :  { %v3357_v55 = vadd.f32 %v3352_v42, %v3330_v35  ;;  %7312 = vtanh.f32 %v3361_v38  ;;  %v7037_v42 = vpack.c.bf16 %v5572_v53, %v5571_v49 }
0x124a   :  { %v3362_v52 = vmul.f32 0.7978846, %v3357_v55 }
0x124c   :  { %7314 = vtanh.f32 %v3362_v52 }
0x124e   :  { %v7311_v57 = vpop.eup %7310 }
0x124f   :  { %v3370_v23 = vadd.f32 1.0, %v7311_v57 }
0x1251   :  { %v3375_v25 = vmul.f32 %v3370_v23, %v3335_v59 }
0x1252   :  { %v7313_v60 = vpop.eup %7312 }
0x1253   :  { %6583 = vmatmul.mubr.msk.f32.gmra.mrb[44].mxu1 %vm78_vm0, %v3375_v25  ;;  %v3371_v46 = vadd.f32 1.0, %v7313_v60 }
0x1254   :  { %6585 = vmatprep.mubr.msk.f32.mxu1 %vm7436_vm1, %v7437_v45 }
0x1255   :  { %v3376_v31 = vmul.f32 %v3371_v46, %v3336_v51 }
0x1256   :  { %v7315_v39 = vpop.eup %7314 }
0x1257   :  { %6586 = vmatmul.mubr.msk.f32.gmra.mrb[46].mxu1 %vm78_vm0, %v3376_v31  ;;  %v3372_v48 = vadd.f32 1.0, %v7315_v39 }
0x1258   :  { %6588 = vmatprep.mubr.msk.f32.mxu1 %vm7436_vm1, %v7437_v45 }
0x1259   :  { %v3377_v0 = vmul.f32 %v3372_v48, %v3337_v34 }
0x125b   :  { %6589 = vmatmul.mubr.msk.f32.gmra.mrb[48].mxu1 %vm78_vm0, %v3377_v0 }
0x125c   :  { %6620 = vmatprep.mubr.msk.f32.mxu1 %vm7436_vm1, %v7437_v45 }
0x1299   :  { %v3474_v2 = vpop.f32.mrb[40].mxu1 }
0x129a   :  { %v3475_v58 = vadd.f32 %v5562_v41, %v3474_v2  ;;  %v6578_v4 = vpop.f32.mrb[41].mxu1 }
0x129c   :  { %v8639_v5 = vadd.f32 %v3475_v58, %v8495_v63 }
0x129d   :  { %v3479_v62 = vpop.f32.mrb[42].mxu1 }
0x129e   :  { %v3480_v6 = vadd.f32 %v5562_v41, %v3479_v62  ;;  %v6581_v10 = vpop.f32.mrb[43].mxu1  ;;  %v3505_v12 = vsel %vm314_vm2, %v8639_v5, 0.0 }
0x129f   :  { %3506 = vadd.xlane.f32.xlu1 %v3505_v12  ;;  %v5568_v10 = vld [vmem:[%s9209_s8 + $0x4] sm:$0xf] }
0x12a0   :  { %v8644_v50 = vadd.f32 %v3480_v6, %v8500_v1  ;;  %v3573_v12 = vrot.slane %v5568_v10, %v8153_v56 }
0x12a2   :  { %v3508_v11 = vsel %vm314_vm2, %v8644_v50, 0.0 }
0x12a3   :  { %3509 = vadd.xlane.f32.xlu0 %v3508_v11 }
0x1326   :  { %v3484_v3 = vpop.f32.mrb[44].mxu1 }
0x1327   :  { %v3485_v13 = vadd.f32 %v5562_v41, %v3484_v3  ;;  %v6584_v14 = vpop.f32.mrb[45].mxu1  ;;  %v3582_v3 = vrot.slane %v5568_v10, %v8160_v61 }
0x1329   :  { %v8649_v63 = vadd.f32 %v3485_v13, %v8505_v7 }
0x132a   :  { %v3489_v15 = vpop.f32.mrb[46].mxu1 }
0x132b   :  { %v3490_v16 = vadd.f32 %v5562_v41, %v3489_v15  ;;  %v6587_v17 = vpop.f32.mrb[47].mxu1  ;;  %v3511_v8 = vsel %vm314_vm2, %v8649_v63, 0.0 }
0x132c   :  { %v3507_v18 = vpop.xlane.xlu1 %3506  ;;  %3512 = vadd.xlane.f32.xlu1 %v3511_v8 }
0x132d   :  { %v8654_v1 = vadd.f32 %v3490_v16, %v8513_v33  ;;  %v3520_v19 = vmul.f32 0.03125, %v3507_v18 }
0x132e   :  { %v3494_v22 = vpop.f32.mrb[48].mxu1 }
0x132f   :  { %v3525_v27 = vsub.f32 %v8639_v5, %v3520_v19  ;;  %v3495_v24 = vadd.f32 %v5562_v41, %v3494_v22  ;;  %v6590_v26 = vpop.f32.mrb[49].mxu1  ;;  %v3514_v7 = vsel %vm314_vm2, %v8654_v1, 0.0 }
0x1330   :  { %v3510_v28 = vpop.xlane.xlu0 %3509  ;;  %3515 = vadd.xlane.f32.xlu0 %v3514_v7 }
0x1331   :  { %v8660_v32 = vadd.f32 %v3495_v24, %v8521_v20  ;;  %v3521_v9 = vmul.f32 0.03125, %v3510_v28  ;;  %v3530_v21 = vmul.f32 %v3525_v27, %v3525_v27  ;;  %v5569_v20 = vld [vmem:[%s9210_s9 + $0x20] sm:$0xff] }
0x1332   :  { %v7034_v47 = vpack.c.bf16 %v5570_v43, %v5569_v20 }
0x1333   :  { %v3526_v30 = vsub.f32 %v8644_v50, %v3521_v9  ;;  %v3535_v33 = vsel %vm314_vm2, %v3530_v21, 0.0  ;;  %v3517_v35 = vsel %vm1828_vm5, %v8660_v32, 0.0 }
0x1334   :  { %3536 = vadd.xlane.f32.xlu0 %v3535_v33  ;;  %3518 = vadd.xlane.f32.xlu1 %v3517_v35 }
0x1335   :  { %v3531_v36 = vmul.f32 %v3526_v30, %v3526_v30  ;;  %7035 = vmatpush3.bf16.msra.mxu0 %v7034_v47 }
0x1336   :  { %7036 = vmatprep.subr.bf16.mxu0 %v7435_v44 }
0x1337   :  { %v3538_v40 = vsel %vm314_vm2, %v3531_v36, 0.0 }
0x1338   :  { %3539 = vadd.xlane.f32.xlu1 %v3538_v40 }
0x1339   :  { %7038 = vmatpush3.bf16.msra.mxu0 %v7037_v42 }
0x133a   :  { %7043 = vmatprep.subr.bf16.mxu0 %v7435_v44 }
0x13b9   :  { %v3513_v38 = vpop.xlane.xlu1 %3512 }
0x13ba   :  { %v3522_v55 = vmul.f32 0.03125, %v3513_v38 }
0x13bc   :  { %v3527_v52 = vsub.f32 %v8649_v63, %v3522_v55 }
0x13bd   :  { %v3516_v57 = vpop.xlane.xlu0 %3515 }
0x13be   :  { %v3523_v59 = vmul.f32 0.03125, %v3516_v57  ;;  %v3532_v23 = vmul.f32 %v3527_v52, %v3527_v52  ;;  %v5574_v57 = vld [vmem:[%s9211_s10 + $0x1] ss:$0 sm:$0xff] }
0x13c0   :  { %v3528_v25 = vsub.f32 %v8654_v1, %v3523_v59  ;;  %v3541_v60 = vsel %vm314_vm2, %v3532_v23, 0.0 }
0x13c1   :  { %3542 = vadd.xlane.f32.xlu0 %v3541_v60  ;;  %v3537_v51 = vpop.xlane.xlu0 %3536  ;;  %v3519_v46 = vpop.xlane.xlu1 %3518 }
0x13c2   :  { %v3550_v31 = vmul.f32 0.03125, %v3537_v51  ;;  %v3524_v39 = vmul.f32 0.03125, %v3519_v46  ;;  %v3533_v34 = vmul.f32 %v3528_v25, %v3528_v25 }
0x13c4   :  { %v3555_v48 = vadd.f32 1e-06, %v3550_v31  ;;  %v3529_v0 = vsub.f32 %v8660_v32, %v3524_v39  ;;  %v3544_v41 = vsel %vm314_vm2, %v3533_v34, 0.0 }
0x13c5   :  { %3545 = vadd.xlane.f32.xlu1 %v3544_v41  ;;  %v3540_v2 = vpop.xlane.xlu1 %3539 }
0x13c6   :  { %7316 = vrsqrt.f32 %v3555_v48  ;;  %v3551_v58 = vmul.f32 0.03125, %v3540_v2  ;;  %v3534_v4 = vmul.f32 %v3529_v0, %v3529_v0 }
0x13c8   :  { %v3556_v62 = vadd.f32 1e-06, %v3551_v58  ;;  %v3547_v6 = vsel %vm1828_vm5, %v3534_v4, 0.0 }
0x13c9   :  { %3548 = vadd.xlane.f32.xlu0 %v3547_v6 }
0x13ca   :  { %7318 = vrsqrt.f32 %v3556_v62 }
0x13d0   :  { %v7317_v11 = vpop.eup %7316 }
0x13d1   :  { %v3565_v13 = vmul.f32 %v7317_v11, %v3525_v27 }
0x13d3   :  { %v3574_v14 = vmul.f32 %v3573_v12, %v3565_v13 }
0x13d4   :  { %v7319_v15 = vpop.eup %7318 }
0x13d5   :  { %v3583_v16 = vadd.f32 %v3582_v3, %v3574_v14  ;;  %v3566_v17 = vmul.f32 %v7319_v15, %v3526_v30 }
0x13d7   :  { %6600 = vmatmul.mubr.msk.f32.vlgmr.msra.gmra.mrb[106].mxu0 %vm314_vm2, %v3583_v16  ;;  %v3575_v8 = vmul.f32 %v3573_v12, %v3566_v17 }
0x13d8   :  { %6602 = vmatprep.mubr.msk.f32.mxu0 %vm7436_vm1, %v7437_v45 }
0x13d9   :  { %v3584_v18 = vadd.f32 %v3582_v3, %v3575_v8 }
0x13db   :  { %6603 = vmatmul.mubr.msk.f32.gmra.mrb[108].mxu0 %vm314_vm2, %v3584_v18 }
0x13dc   :  { %6605 = vmatprep.mubr.msk.f32.mxu0 %vm7436_vm1, %v7437_v45 }
0x144e   :  { %v3543_v19 = vpop.xlane.xlu0 %3542 }
0x144f   :  { %v3552_v22 = vmul.f32 0.03125, %v3543_v19 }
0x1451   :  { %v3557_v24 = vadd.f32 1e-06, %v3552_v22 }
0x1452   :  { %v3546_v27 = vpop.xlane.xlu1 %3545 }
0x1453   :  { %7320 = vrsqrt.f32 %v3557_v24  ;;  %v3553_v26 = vmul.f32 0.03125, %v3546_v27 }
0x1455   :  { %v3558_v7 = vadd.f32 1e-06, %v3553_v26 }
0x1456   :  { %v3549_v28 = vpop.xlane.xlu0 %3548 }
0x1457   :  { %7322 = vrsqrt.f32 %v3558_v7  ;;  %v3554_v9 = vmul.f32 0.03125, %v3549_v28 }
0x1459   :  { %v3559_v21 = vadd.f32 1e-06, %v3554_v9 }
0x145b   :  { %7324 = vrsqrt.f32 %v3559_v21 }
0x145d   :  { %v7321_v30 = vpop.eup %7320 }
0x145e   :  { %v3567_v33 = vmul.f32 %v7321_v30, %v3527_v52 }
0x1460   :  { %v3576_v35 = vmul.f32 %v3573_v12, %v3567_v33 }
0x1461   :  { %v7323_v36 = vpop.eup %7322 }
0x1462   :  { %v3585_v40 = vadd.f32 %v3582_v3, %v3576_v35  ;;  %v3568_v20 = vmul.f32 %v7323_v36, %v3528_v25 }
0x1464   :  { %6606 = vmatmul.mubr.msk.f32.gmra.mrb[110].mxu0 %vm314_vm2, %v3585_v40  ;;  %v3577_v43 = vmul.f32 %v3573_v12, %v3568_v20 }
0x1465   :  { %v7325_v47 = vpop.eup %7324  ;;  %6608 = vmatprep.mubr.msk.f32.mxu0 %vm7436_vm1, %v7437_v45 }
0x1466   :  { %v3586_v49 = vadd.f32 %v3582_v3, %v3577_v43  ;;  %v3569_v53 = vmul.f32 %v7325_v47, %v3529_v0 }
0x1468   :  { %6609 = vmatmul.mubr.msk.f32.gmra.mrb[112].mxu0 %vm314_vm2, %v3586_v49  ;;  %v3578_v42 = vmul.f32 %v3573_v12, %v3569_v53 }
0x1469   :  { %6611 = vmatprep.mubr.msk.f32.mxu0 %vm7436_vm1, %v7437_v45 }
0x146a   :  { %v3587_v38 = vadd.f32 %v3582_v3, %v3578_v42 }
0x146c   :  { %6612 = vmatmul.mubr.msk.f32.gmra.mrb[114].mxu0 %vm314_vm2, %v3587_v38 }
0x146d   :  { %6635 = vmatprep.mubr.msk.f32.mxu0 %vm7436_vm1, %v7437_v45 }
0x14aa   :  { %v3682_v55 = vpop.f32.mrb[106].mxu0 }
0x14ab   :  { %v6601_v52 = vpop.f32.mrb[107].mxu0  ;;  %v3683_v23 = vadd.f32 %v5574_v57, %v3682_v55 }
0x14ae   :  { %v3687_v59 = vpop.f32.mrb[108].mxu0 }
0x14af   :  { %v3688_v25 = vadd.f32 %v5574_v57, %v3687_v59  ;;  %v6604_v60 = vpop.f32.mrb[109].mxu0 }
0x14b1   :  { %v8710_v51 = vpack.i.bf16 %v3688_v25, %v3683_v23 }
0x14b3   :  { %7191 = vrot.lane.b32.xlu1 %v8710_v51, %s7438_s28 }
0x14b7   :  { %7196 = vrot.lane.b32.xlu1 %v8710_v51, %s7439_s4 }
0x1525   :  { %v7192_v46 = vpop.permute.xlu1 %7191 }
0x1526   :  { %v7194_v31 = vunpack.i.h.bf16 %v7192_v46  ;;  %v7193_v39 = vunpack.i.l.bf16 %v7192_v46 }
0x1528   :  { %v7040_v34 = vpack.c.bf16 %v7194_v31, %v7193_v39 }
0x1529   :  { %v7197_v16 = vpop.permute.xlu1 %7196 }
0x152a   :  { %7042 = vmatpush3.bf16.xpose.msk.msra.mxu1 %vm8208_vm6, %v7040_v34  ;;  %v7199_v17 = vunpack.i.h.bf16 %v7197_v16  ;;  %v7198_v8 = vunpack.i.l.bf16 %v7197_v16 }
0x152b   :  { %6618 = vmatprep.subr.mxu1 %v7437_v45 }
0x152c   :  { %v7047_v19 = vpack.c.bf16 %v7199_v17, %v7198_v8 }
0x1537   :  { %v3692_v48 = vpop.f32.mrb[110].mxu0 }
0x1538   :  { %v8719_v0 = vadd.f32 %v5574_v57, %v3692_v48  ;;  %v6607_v41 = vpop.f32.mrb[111].mxu0 }
0x153a   :  { %3952 = vrot.lane.b32.xlu1 %v8719_v0, %s7439_s4  ;;  %3713 = vrot.lane.b32.xlu0 %v8719_v0, %s7438_s28  ;;  %v4198_v11 = vrot.slane %v8719_v0, 2 }
0x153b   :  { %v3697_v2 = vpop.f32.mrb[112].mxu0 }
0x153c   :  { %v3698_v58 = vadd.f32 %v5574_v57, %v3697_v2  ;;  %v6610_v4 = vpop.f32.mrb[113].mxu0 }
0x153e   :  { %3942 = vrot.lane.b32.xlu1 %v3683_v23, %s7440_s29  ;;  %v4199_v6 = vrot.slane %v3698_v58, 2 }
0x153f   :  { %v3702_v62 = vpop.f32.mrb[114].mxu0 }
0x1540   :  { %v3703_v10 = vadd.f32 %v5574_v57, %v3702_v62  ;;  %v6613_v12 = vpop.f32.mrb[115].mxu0  ;;  %v4200_v13 = vsel %vm2512_vm9, %v4198_v11, %v4199_v6 }
0x1542   :  { %v8727_v3 = vrot.slane %v3703_v10, 2  ;;  %3946 = vrot.lane.b32.xlu1 %v8719_v0, %s7440_s29 }
0x1544   :  { %v8734_v14 = vsel %vm2512_vm9, %v4199_v6, %v8727_v3 }
0x1545   :  { %v8737_v15 = vpack.i.bf16 %v8734_v14, %v4200_v13 }
0x1547   :  { %7206 = vrot.lane.b32.xlu1 %v8737_v15, %s7439_s4  ;;  %7201 = vrot.lane.b32.xlu0 %v8737_v15, %s7438_s28 }
0x154b   :  { %4436 = vrot.lane.b32.xlu1 %v4200_v13, %s7440_s29  ;;  %3944 = vrot.lane.b32.xlu0 %v3688_v25, %s7440_s29 }
0x154f   :  { %3847 = vrot.lane.b32.xlu1 %v8719_v0, %s7434_s21  ;;  %4207 = vrot.lane.b32.xlu0 %v8727_v3, %s7438_s28 }
0x1553   :  { %4446 = vrot.lane.b32.xlu0 %v8727_v3, %s7439_s4 }
0x1557   :  { %7211 = vrot.lane.b32.xlu0 %v8710_v51, %s7434_s21 }
0x15ac   :  { %v3714_v18 = vpop.permute.xlu0 %3713  ;;  %v3953_v22 = vpop.permute.xlu1 %3952 }
0x15ad   :  { %6619 = vmatpush3.xpose.msk.msra.mxu1 %vm468_vm3, %v3714_v18 }
0x15ae   :  { %7046 = vmatprep.subr.bf16.mxu1 %v7435_v44 }
0x15b0   :  { %6621 = vmatmul.mubr.msk.f32.vlgmr.msra.gmra.mrb[50].mxu1 %vm468_vm3, %v3683_v23  ;;  %v3943_v24 = vpop.permute.xlu1 %3942 }
0x15b1   :  { %7049 = vmatpush3.bf16.xpose.msk.msra.mxu1 %vm8208_vm6, %v7047_v19  ;;  %6623 = vmatprep.mubr.msk.f32.mxu1 %vm7436_vm1, %v7437_v45 }
0x15b2   :  { %6648 = vmatprep.subr.mxu1 %v7437_v45 }
0x15b4   :  { %6624 = vmatmul.mubr.msk.f32.gmra.mrb[52].mxu1 %vm468_vm3, %v3688_v25  ;;  %v3947_v28 = vpop.permute.xlu1 %3946 }
0x15b5   :  { %6626 = vmatprep.mubr.msk.f32.mxu1 %vm7436_vm1, %v7437_v45 }
0x15b8   :  { %6627 = vmatmul.mubr.msk.f32.gmra.mrb[54].mxu1 %vm468_vm3, %v8719_v0 }
0x15b9   :  { %6649 = vmatpush3.xpose.msk.msra.mxu1 %vm468_vm3, %v3953_v22  ;;  %v7202_v27 = vpop.permute.xlu0 %7201  ;;  %6650 = vmatprep.mubr.msk.f32.mxu1 %vm7436_vm1, %v7437_v45  ;;  %v7207_v30 = vpop.permute.xlu1 %7206 }
0x15ba   :  { %v7204_v26 = vunpack.i.h.bf16 %v7202_v27  ;;  %v7203_v7 = vunpack.i.l.bf16 %v7202_v27  ;;  %7053 = vmatprep.subr.bf16.mxu1 %v7435_v44  ;;  %v7209_v35 = vunpack.i.h.bf16 %v7207_v30  ;;  %v7208_v36 = vunpack.i.l.bf16 %v7207_v30 }
0x15bc   :  { %v7054_v9 = vpack.c.bf16 %v7204_v26, %v7203_v7  ;;  %6651 = vmatmul.mubr.msk.f32.vlgmr.msra.gmra.mrb[56].mxu1 %vm468_vm3, %v3943_v24  ;;  %v7061_v20 = vpack.c.bf16 %v7209_v35, %v7208_v36 }
0x15bd   :  { %v3945_v21 = vpop.permute.xlu0 %3944  ;;  %6653 = vmatprep.mubr.msk.f32.mxu1 %vm7436_vm1, %v7437_v45  ;;  %v4437_v53 = vpop.permute.xlu1 %4436 }
0x15be   :  { %7056 = vmatpush3.bf16.xpose.msk.msra.mxu1 %vm8208_vm6, %v7054_v9 }
0x15bf   :  { %6678 = vmatprep.subr.mxu1 %v7437_v45 }
0x15c0   :  { %6654 = vmatmul.mubr.msk.f32.gmra.mrb[58].mxu1 %vm468_vm3, %v3945_v21 }
0x15c1   :  { %v4208_v33 = vpop.permute.xlu0 %4207  ;;  %6656 = vmatprep.mubr.msk.f32.mxu1 %vm7436_vm1, %v7437_v45  ;;  %v3848_v38 = vpop.permute.xlu1 %3847 }
0x15c4   :  { %6657 = vmatmul.mubr.msk.f32.gmra.mrb[60].mxu1 %vm468_vm3, %v3947_v28 }
0x15c5   :  { %v4447_v40 = vpop.permute.xlu0 %4446  ;;  %6680 = vmatprep.mubr.msk.f32.mxu1 %vm7436_vm1, %v7437_v45 }
0x15c6   :  { %6679 = vmatpush3.xpose.msk.msra.mxu1 %vm468_vm3, %v4208_v33 }
0x15c7   :  { %7060 = vmatprep.subr.bf16.mxu1 %v7435_v44 }
0x15c9   :  { %v7212_v43 = vpop.permute.xlu0 %7211  ;;  %6681 = vmatmul.mubr.msk.f32.vlgmr.msra.gmra.mrb[62].mxu1 %vm468_vm3, %v4200_v13 }
0x15ca   :  { %v7214_v47 = vunpack.i.h.bf16 %v7212_v43  ;;  %v7213_v49 = vunpack.i.l.bf16 %v7212_v43  ;;  %7063 = vmatpush3.bf16.xpose.msk.msra.mxu1 %vm8208_vm6, %v7061_v20  ;;  %6683 = vmatprep.mubr.msk.f32.mxu1 %vm7436_vm1, %v7437_v45 }
0x15cb   :  { %6708 = vmatprep.subr.mxu1 %v7437_v45 }
0x15cc   :  { %v7044_v42 = vpack.c.bf16 %v7214_v47, %v7213_v49 }
0x15cd   :  { %6684 = vmatmul.mubr.msk.f32.gmra.mrb[64].mxu1 %vm468_vm3, %v8734_v14 }
0x15ce   :  { %7045 = vmatpush3.bf16.msra.mxu0 %v7044_v42  ;;  %6686 = vmatprep.mubr.msk.f32.mxu1 %vm7436_vm1, %v7437_v45 }
0x15cf   :  { %6633 = vmatprep.subr.mxu0 %v7437_v45 }
0x15d1   :  { %6687 = vmatmul.mubr.msk.f32.gmra.mrb[66].mxu1 %vm468_vm3, %v8727_v3 }
0x15d2   :  { %6634 = vmatpush3.msk.msra.mxu0 %vm2173_vm10, %v3848_v38  ;;  %6709 = vmatpush3.xpose.msk.msra.mxu1 %vm468_vm3, %v4447_v40 }
0x15d3   :  { %6710 = vmatprep.mubr.msk.f32.mxu1 %vm7436_vm1, %v7437_v45  ;;  %7050 = vmatprep.subr.bf16.mxu0 %v7435_v44 }
0x15d4   :  { %7067 = vmatprep.subr.bf16.mxu1 %v7435_v44 }
0x15d5   :  { %6711 = vmatmul.mubr.msk.f32.vlgmr.msra.gmra.mrb[68].mxu1 %vm468_vm3, %v4437_v53 }
0x15d6   :  { %6713 = vmatprep.mubr.msk.f32.mxu1 %vm7436_vm1, %v7437_v45 }
0x1683   :  { %v3793_v54 = vpop.f32.mrb[50].mxu1 }
0x1684   :  { %v3807_v55 = vmul.f32 0.25, %v3793_v54  ;;  %v6622_v52 = vpop.f32.mrb[51].mxu1 }
0x1686   :  { %v3810_v57 = vsel %vm2121_vm7, %v3807_v55, -inf }
0x1687   :  { %v3798_v59 = vpop.f32.mrb[52].mxu1  ;;  %3811 = vmax.xlane.f32.xlu0 %v3810_v57 }
0x1688   :  { %v3808_v23 = vmul.f32 0.25, %v3798_v59  ;;  %v6625_v25 = vpop.f32.mrb[53].mxu1 }
0x168a   :  { %v3813_v60 = vsel %vm2121_vm7, %v3808_v23, -inf }
0x168b   :  { %v3803_v46 = vpop.f32.mrb[54].mxu1  ;;  %3814 = vmax.xlane.f32.xlu1 %v3813_v60 }
0x168c   :  { %v3809_v31 = vmul.f32 0.25, %v3803_v46  ;;  %v6628_v39 = vpop.f32.mrb[55].mxu1 }
0x168e   :  { %v3816_v34 = vsel %vm2128_vm8, %v3809_v31, -inf }
0x168f   :  { %v4032_v48 = vpop.f32.mrb[56].mxu1  ;;  %3817 = vmax.xlane.f32.xlu0 %v3816_v34 }
0x1690   :  { %v4046_v41 = vmul.f32 0.25, %v4032_v48  ;;  %v6652_v2 = vpop.f32.mrb[57].mxu1 }
0x1692   :  { %v4049_v58 = vsel %vm2121_vm7, %v4046_v41, -inf }
0x1693   :  { %4050 = vmax.xlane.f32.xlu0 %v4049_v58  ;;  %v4037_v4 = vpop.f32.mrb[58].mxu1 }
0x1694   :  { %v8810_v62 = vmul.f32 0.25, %v4037_v4  ;;  %v6655_v6 = vpop.f32.mrb[59].mxu1 }
0x1696   :  { %v4052_v10 = vsel %vm2121_vm7, %v8810_v62, -inf }
0x1697   :  { %4053 = vmax.xlane.f32.xlu1 %v4052_v10  ;;  %v4042_v12 = vpop.f32.mrb[60].mxu1 }
0x1698   :  { %v8814_v11 = vmul.f32 0.25, %v4042_v12  ;;  %v6658_v13 = vpop.f32.mrb[61].mxu1 }
0x169a   :  { %v4055_v16 = vsel %vm2128_vm8, %v8814_v11, -inf }
0x169b   :  { %4056 = vmax.xlane.f32.xlu0 %v4055_v16 }
0x169c   :  { %v4287_v17 = vpop.f32.mrb[62].mxu1 }
0x169d   :  { %v8818_v8 = vmul.f32 0.25, %v4287_v17  ;;  %v6682_v18 = vpop.f32.mrb[63].mxu1 }
0x169f   :  { %v4304_v19 = vsel %vm2121_vm7, %v8818_v8, -inf }
0x16a0   :  { %4305 = vmax.xlane.f32.xlu1 %v4304_v19  ;;  %v4292_v22 = vpop.f32.mrb[64].mxu1 }
0x16a1   :  { %v4302_v24 = vmul.f32 0.25, %v4292_v22  ;;  %v6685_v27 = vpop.f32.mrb[65].mxu1 }
0x16a3   :  { %v4307_v26 = vsel %vm2121_vm7, %v4302_v24, -inf }
0x16a4   :  { %4308 = vmax.xlane.f32.xlu0 %v4307_v26  ;;  %v4297_v7 = vpop.f32.mrb[66].mxu1 }
0x16a5   :  { %v4303_v28 = vmul.f32 0.25, %v4297_v7  ;;  %v6688_v9 = vpop.f32.mrb[67].mxu1 }
0x16a7   :  { %v4310_v21 = vsel %vm2128_vm8, %v4303_v28, -inf }
0x16a8   :  { %4311 = vmax.xlane.f32.xlu1 %v4310_v21  ;;  %v4526_v30 = vpop.f32.mrb[68].mxu1 }
0x16a9   :  { %v4540_v33 = vmul.f32 0.25, %v4526_v30  ;;  %v6712_v35 = vpop.f32.mrb[69].mxu1 }
0x16ab   :  { %v4543_v36 = vsel %vm2121_vm7, %v4540_v33, -inf }
0x16ac   :  { %4544 = vmax.xlane.f32.xlu0 %v4543_v36 }
0x16b9   :  { %7216 = vrot.lane.b32.xlu1 %v8710_v51, %s7441_s30 }
0x16c2   :  { %4086 = vrot.lane.b32.xlu0 %v8719_v0, %s7441_s30 }
0x1714   :  { %v3812_v40 = vpop.xlane.xlu0 %3811 }
0x1715   :  { %v3819_v20 = vsub.f32 %v3807_v55, %v3812_v40 }
0x1717   :  { %v3822_v43 = vmul.f32 1.442695, %v3819_v20 }
0x1718   :  { %v3815_v47 = vpop.xlane.xlu1 %3814 }
0x1719   :  { %7326 = vpow2.f32 %v3822_v43  ;;  %v3820_v49 = vsub.f32 %v3808_v23, %v3815_v47 }
0x171b   :  { %v3824_v53 = vmul.f32 1.442695, %v3820_v49 }
0x171c   :  { %v3818_v42 = vpop.xlane.xlu0 %3817 }
0x171d   :  { %7328 = vpow2.f32 %v3824_v53  ;;  %v3821_v38 = vsub.f32 %v3809_v31, %v3818_v42 }
0x171f   :  { %v3826_v54 = vmul.f32 1.442695, %v3821_v38 }
0x1720   :  { %v4051_v52 = vpop.xlane.xlu0 %4050 }
0x1721   :  { %7330 = vpow2.f32 %v3826_v54  ;;  %v4058_v57 = vsub.f32 %v4046_v41, %v4051_v52 }
0x1723   :  { %v8829_v59 = vpop.eup %7326  ;;  %v4061_v51 = vmul.f32 1.442695, %v4058_v57 }
0x1724   :  { %v3828_v0 = vsel %vm2121_vm7, %v8829_v59, 0.0  ;;  %v4054_v39 = vpop.xlane.xlu1 %4053 }
0x1725   :  { %7332 = vpow2.f32 %v4061_v51  ;;  %3829 = vadd.xlane.f32.xlu1 %v3828_v0  ;;  %v4059_v48 = vsub.f32 %v8810_v62, %v4054_v39 }
0x1727   :  { %v8833_v55 = vpop.eup %7328  ;;  %v4063_v58 = vmul.f32 1.442695, %v4059_v48 }
0x1728   :  { %v3831_v23 = vsel %vm2121_vm7, %v8833_v55, 0.0  ;;  %v4057_v34 = vpop.xlane.xlu0 %4056 }
0x1729   :  { %3832 = vadd.xlane.f32.xlu0 %v3831_v23  ;;  %v4060_v2 = vsub.f32 %v8814_v11, %v4057_v34  ;;  %7334 = vpow2.f32 %v4063_v58 }
0x172b   :  { %v8837_v25 = vpop.eup %7330  ;;  %v4065_v12 = vmul.f32 1.442695, %v4060_v2 }
0x172c   :  { %v3834_v60 = vsel %vm2128_vm8, %v8837_v25, 0.0 }
0x172d   :  { %3835 = vadd.xlane.f32.xlu1 %v3834_v60  ;;  %v4306_v4 = vpop.xlane.xlu1 %4305  ;;  %7336 = vpow2.f32 %v4065_v12 }
0x172e   :  { %v4313_v13 = vsub.f32 %v8818_v8, %v4306_v4 }
0x172f   :  { %v8841_v46 = vpop.eup %7332 }
0x1730   :  { %v4067_v31 = vsel %vm2121_vm7, %v8841_v46, 0.0  ;;  %v4316_v19 = vmul.f32 1.442695, %v4313_v13 }
0x1731   :  { %4068 = vadd.xlane.f32.xlu0 %v4067_v31  ;;  %v4309_v41 = vpop.xlane.xlu0 %4308 }
0x1732   :  { %v4314_v6 = vsub.f32 %v4302_v24, %v4309_v41 }
0x1733   :  { %v8852_v11 = vpop.eup %7334 }
0x1734   :  { %v4318_v16 = vmul.f32 1.442695, %v4314_v6  ;;  %v4070_v8 = vsel %vm2121_vm7, %v8852_v11, 0.0 }
0x1735   :  { %v4312_v18 = vpop.xlane.xlu1 %4311 }
0x1736   :  { %7338 = vpow2.f32 %v4318_v16  ;;  %v4315_v22 = vsub.f32 %v4303_v28, %v4312_v18 }
0x1737   :  { %7340 = vpow2.f32 %v4316_v19  ;;  %v8854_v24 = vpop.eup %7336 }
0x1738   :  { %v4320_v62 = vmul.f32 1.442695, %v4315_v22  ;;  %v4073_v28 = vsel %vm2128_vm8, %v8854_v24, 0.0 }
0x1739   :  { %v4545_v10 = vpop.xlane.xlu0 %4544  ;;  %v7217_v40 = vpop.permute.xlu1 %7216 }
0x173a   :  { %v4552_v17 = vsub.f32 %v4540_v33, %v4545_v10  ;;  %v7219_v53 = vunpack.i.h.bf16 %v7217_v40  ;;  %v7218_v42 = vunpack.i.l.bf16 %v7217_v40 }
0x173c   :  { %v4555_v27 = vmul.f32 1.442695, %v4552_v17  ;;  %v7051_v52 = vpack.c.bf16 %v7219_v53, %v7218_v42 }
0x173d   :  { %v4087_v20 = vpop.permute.xlu0 %4086 }
0x173e   :  { %7221 = vrot.lane.b32.xlu1 %v8737_v15, %s7434_s21  ;;  %7342 = vpow2.f32 %v4555_v27 }
0x173f   :  { %7344 = vpow2.f32 %v4320_v62 }
0x1740   :  { %v8858_v26 = vpop.eup %7338 }
0x1741   :  { %v8860_v7 = vpop.eup %7340  ;;  %v4325_v9 = vsel %vm2121_vm7, %v8858_v26, 0.0 }
0x1742   :  { %v4322_v30 = vsel %vm2121_vm7, %v8860_v7, 0.0 }
0x1747   :  { %4341 = vrot.lane.b32.xlu0 %v8727_v3, %s7434_s21 }
0x1748   :  { %v8866_v21 = vpop.eup %7342 }
0x1749   :  { %v4561_v33 = vsel %vm2121_vm7, %v8866_v21, 0.0  ;;  %v8872_v35 = vpop.eup %7344 }
0x174a   :  { %v4328_v36 = vsel %vm2128_vm8, %v8872_v35, 0.0 }
0x1762   :  { %4071 = vadd.xlane.f32.xlu1 %v4070_v8 }
0x1766   :  { %4074 = vadd.xlane.f32.xlu1 %v4073_v28  ;;  %4326 = vadd.xlane.f32.xlu0 %v4325_v9  ;;  %v5620_v9 = vld [vmem:[%s9212_s11 + $0x20] sm:$0xff] }
0x176a   :  { %4323 = vadd.xlane.f32.xlu1 %v4322_v30  ;;  %4562 = vadd.xlane.f32.xlu0 %v4561_v33  ;;  %v5621_v30 = vld [vmem:[%s9212_s11 + $0x28] sm:$0xff]  ;;  %v5622_v33 = vld [vmem:[%s9212_s11 + $0x30] sm:$0xff] }
0x176e   :  { %4329 = vadd.xlane.f32.xlu1 %v4328_v36 }
0x177f   :  { %4580 = vrot.lane.b32.xlu1 %v8727_v3, %s7441_s30 }
0x1780   :  { %7226 = vrot.lane.b32.xlu0 %v8737_v15, %s7441_s30 }
0x1783   :  { %4440 = vrot.lane.b32.xlu1 %v8727_v3, %s7440_s29 }
0x1784   :  { %4438 = vrot.lane.b32.xlu0 %v8734_v14, %s7440_s29 }
0x17b2   :  { %v3830_v43 = vpop.xlane.xlu1 %3829 }
0x17b3   :  { %7346 = vrcp.f32 %v3830_v43 }
0x17b6   :  { %v3833_v47 = vpop.xlane.xlu0 %3832 }
0x17b7   :  { %7348 = vrcp.f32 %v3833_v47 }
0x17ba   :  { %v3836_v49 = vpop.xlane.xlu1 %3835 }
0x17bb   :  { %7350 = vrcp.f32 %v3836_v49 }
0x17bd   :  { %v7347_v38 = vpop.eup %7346 }
0x17be   :  { %v3840_v54 = vmul.f32 %v7347_v38, %v8829_v59  ;;  %v4069_v15 = vpop.xlane.xlu0 %4068  ;;  %v7222_v57 = vpop.permute.xlu1 %7221 }
0x17bf   :  { %7352 = vrcp.f32 %v4069_v15  ;;  %v7224_v0 = vunpack.i.h.bf16 %v7222_v57  ;;  %v7223_v23 = vunpack.i.l.bf16 %v7222_v57 }
0x17c0   :  { %6636 = vmatmul.mubr.msk.f32.vlgmr.msra.gmra.mrb[116].mxu0 %vm2121_vm7, %v3840_v54 }
0x17c1   :  { %v7349_v3 = vpop.eup %7348  ;;  %7052 = vmatpush3.bf16.msra.mxu0 %v7051_v52  ;;  %6638 = vmatprep.mubr.msk.f32.mxu0 %vm7436_vm1, %v7437_v45  ;;  %v7058_v31 = vpack.c.bf16 %v7224_v0, %v7223_v23 }
0x17c2   :  { %6663 = vmatprep.subr.mxu0 %v7437_v45  ;;  %v3841_v14 = vmul.f32 %v7349_v3, %v8833_v55 }
0x17c4   :  { %6639 = vmatmul.mubr.msk.f32.gmra.mrb[118].mxu0 %vm2121_vm7, %v3841_v14 }
0x17c5   :  { %v7351_v51 = vpop.eup %7350  ;;  %6664 = vmatpush3.msk.msra.mxu0 %vm2173_vm10, %v4087_v20  ;;  %6641 = vmatprep.mubr.msk.f32.mxu0 %vm7436_vm1, %v7437_v45 }
0x17c6   :  { %v3842_v59 = vmul.f32 %v7351_v51, %v8837_v25  ;;  %7057 = vmatprep.subr.bf16.mxu0 %v7435_v44  ;;  %v4342_v25 = vpop.permute.xlu0 %4341 }
0x17c8   :  { %6642 = vmatmul.mubr.msk.f32.gmra.mrb[120].mxu0 %vm2121_vm7, %v3842_v59 }
0x17c9   :  { %v7353_v60 = vpop.eup %7352  ;;  %6665 = vmatprep.mubr.msk.f32.mxu0 %vm7436_vm1, %v7437_v45 }
0x17ca   :  { %v4079_v55 = vmul.f32 %v7353_v60, %v8841_v46 }
0x17cc   :  { %6666 = vmatmul.mubr.msk.f32.vlgmr.msra.gmra.mrb[122].mxu0 %vm2121_vm7, %v4079_v55 }
0x17cd   :  { %7059 = vmatpush3.bf16.msra.mxu0 %v7058_v31  ;;  %6668 = vmatprep.mubr.msk.f32.mxu0 %vm7436_vm1, %v7437_v45 }
0x17ce   :  { %6693 = vmatprep.subr.mxu0 %v7437_v45 }
0x17d1   :  { %6694 = vmatpush3.msk.msra.mxu0 %vm2173_vm10, %v4342_v25 }
0x17d2   :  { %7064 = vmatprep.subr.bf16.mxu0 %v7435_v44 }
0x17ef   :  { %v4072_v39 = vpop.xlane.xlu1 %4071 }
0x17f0   :  { %7354 = vrcp.f32 %v4072_v39 }
0x17f3   :  { %v4075_v34 = vpop.xlane.xlu1 %4074  ;;  %v4327_v48 = vpop.xlane.xlu0 %4326 }
0x17f4   :  { %7356 = vrcp.f32 %v4075_v34 }
0x17f7   :  { %v4324_v46 = vpop.xlane.xlu1 %4323  ;;  %v4563_v41 = vpop.xlane.xlu0 %4562 }
0x17f8   :  { %7358 = vrcp.f32 %v4324_v46 }
0x17f9   :  { %7360 = vrcp.f32 %v4327_v48 }
0x17fa   :  { %v7355_v2 = vpop.eup %7354 }
0x17fb   :  { %v4330_v58 = vpop.xlane.xlu1 %4329  ;;  %v7227_v4 = vpop.permute.xlu0 %7226  ;;  %v4080_v6 = vmul.f32 %v7355_v2, %v8852_v11 }
0x17fc   :  { %7362 = vrcp.f32 %v4330_v58  ;;  %v7229_v17 = vunpack.i.h.bf16 %v7227_v4  ;;  %v7228_v18 = vunpack.i.l.bf16 %v7227_v4 }
0x17fd   :  { %6669 = vmatmul.mubr.msk.f32.gmra.mrb[124].mxu0 %vm2121_vm7, %v4080_v6  ;;  %7364 = vrcp.f32 %v4563_v41 }
0x17fe   :  { %v7357_v10 = vpop.eup %7356  ;;  %6671 = vmatprep.mubr.msk.f32.mxu0 %vm7436_vm1, %v7437_v45  ;;  %v7065_v11 = vpack.c.bf16 %v7229_v17, %v7228_v18 }
0x17ff   :  { %v4581_v12 = vpop.permute.xlu1 %4580  ;;  %v4439_v13 = vpop.permute.xlu0 %4438  ;;  %v4081_v16 = vmul.f32 %v7357_v10, %v8854_v24 }
0x1800   :  { %6714 = vmatmul.mubr.msk.f32.gmra.mrb[70].mxu1 %vm468_vm3, %v4439_v13 }
0x1801   :  { %6672 = vmatmul.mubr.msk.f32.gmra.mrb[126].mxu0 %vm2121_vm7, %v4081_v16  ;;  %6716 = vmatprep.mubr.msk.f32.mxu1 %vm7436_vm1, %v7437_v45 }
0x1802   :  { %v7359_v19 = vpop.eup %7358  ;;  %6695 = vmatprep.mubr.msk.f32.mxu0 %vm7436_vm1, %v7437_v45 }
0x1803   :  { %v4334_v22 = vmul.f32 %v7359_v19, %v8860_v7  ;;  %v4441_v27 = vpop.permute.xlu1 %4440  ;;  %v7361_v62 = vpop.eup %7360 }
0x1804   :  { %6717 = vmatmul.mubr.msk.f32.gmra.mrb[72].mxu1 %vm468_vm3, %v4441_v27  ;;  %v4335_v24 = vmul.f32 %v7361_v62, %v8858_v26 }
0x1805   :  { %6696 = vmatmul.mubr.msk.f32.vlgmr.msra.gmra.mrb[128].mxu0 %vm2121_vm7, %v4334_v22  ;;  %6742 = vmatprep.mubr.msk.f32.mxu1 %vm7436_vm1, %v7437_v45  ;;  %v8985_v22 = vld [vmem:[%s9213_s12 + $0x1] ss:$0 sm:$0xff] }
0x1806   :  { %7066 = vmatpush3.bf16.msra.mxu0 %v7065_v11  ;;  %6698 = vmatprep.mubr.msk.f32.mxu0 %vm7436_vm1, %v7437_v45  ;;  %v7363_v8 = vpop.eup %7362 }
0x1807   :  { %6723 = vmatprep.subr.mxu0 %v7437_v45  ;;  %v4336_v7 = vmul.f32 %v7363_v8, %v8872_v35  ;;  %v7365_v28 = vpop.eup %7364  ;;  %v7068_v35 = vpack.c.bf16 %v5621_v30, %v5620_v9 }
0x1808   :  { %v4573_v26 = vmul.f32 %v7365_v28, %v8866_v21  ;;  %v5623_v21 = vld [vmem:[%s9212_s11 + $0x38] sm:$0xff] }
0x1809   :  { %6699 = vmatmul.mubr.msk.f32.gmra.mrb[130].mxu0 %vm2121_vm7, %v4335_v24  ;;  %7069 = vmatpush3.bf16.msra.mxu1 %v7068_v35  ;;  %v7071_v36 = vpack.c.bf16 %v5623_v21, %v5622_v33 }
0x180a   :  { %6724 = vmatpush3.msk.msra.mxu0 %vm2173_vm10, %v4581_v12  ;;  %6701 = vmatprep.mubr.msk.f32.mxu0 %vm7436_vm1, %v7437_v45 }
0x180b   :  { %7073 = vmatprep.subr.bf16.mxu0 %v7435_v44  ;;  %7070 = vmatprep.subr.bf16.mxu1 %v7435_v44 }
0x180d   :  { %6702 = vmatmul.mubr.msk.f32.gmra.mrb[132].mxu0 %vm2121_vm7, %v4336_v7  ;;  %7072 = vmatpush3.bf16.msra.mxu1 %v7071_v36 }
0x180e   :  { %6725 = vmatprep.mubr.msk.f32.mxu0 %vm7436_vm1, %v7437_v45  ;;  %7079 = vmatprep.subr.bf16.mxu1 %v7435_v44 }
0x1811   :  { %6726 = vmatmul.mubr.msk.f32.vlgmr.msra.gmra.mrb[134].mxu0 %vm2121_vm7, %v4573_v26 }
0x1812   :  { %6728 = vmatprep.mubr.msk.f32.mxu0 %vm7436_vm1, %v7437_v45 }
0x1893   :  { %v3928_v40 = vpop.f32.mrb[116].mxu0 }
0x1894   :  { %v6637_v20 = vpop.f32.mrb[117].mxu0 }
0x1897   :  { %v3933_v43 = vpop.f32.mrb[118].mxu0 }
0x1898   :  { %v6640_v47 = vpop.f32.mrb[119].mxu0 }
0x189b   :  { %v3938_v49 = vpop.f32.mrb[120].mxu0 }
0x189c   :  { %v6643_v53 = vpop.f32.mrb[121].mxu0 }
0x189f   :  { %v4167_v42 = vpop.f32.mrb[122].mxu0 }
0x18a0   :  { %4184 = vrot.lane.b32.xlu0 %v4167_v42, %s7442_s6  ;;  %v6667_v38 = vpop.f32.mrb[123].mxu0 }
0x18d0   :  { %v4172_v54 = vpop.f32.mrb[124].mxu0 }
0x18d1   :  { %4186 = vrot.lane.b32.xlu1 %v4172_v54, %s7442_s6  ;;  %v6670_v15 = vpop.f32.mrb[125].mxu0 }
0x18d3   :  { %v4531_v52 = vpop.f32.mrb[70].mxu1 }
0x18d4   :  { %v4177_v3 = vpop.f32.mrb[126].mxu0  ;;  %v6715_v14 = vpop.f32.mrb[71].mxu1  ;;  %v4541_v41 = vmul.f32 0.25, %v4531_v52 }
0x18d5   :  { %4188 = vrot.lane.b32.xlu1 %v4177_v3, %s7442_s6  ;;  %v6673_v57 = vpop.f32.mrb[127].mxu0 }
0x18d6   :  { %v4546_v2 = vsel %vm2121_vm7, %v4541_v41, -inf }
0x18d7   :  { %v4536_v51 = vpop.f32.mrb[72].mxu1 }
0x18d8   :  { %v4422_v59 = vpop.f32.mrb[128].mxu0  ;;  %v6718_v0 = vpop.f32.mrb[73].mxu1  ;;  %v4542_v48 = vmul.f32 0.25, %v4536_v51  ;;  %v5632_v51 = vld [vmem:[%s9214_s13 + $0x28] sm:$0xff] }
0x18d9   :  { %v6697_v23 = vpop.f32.mrb[129].mxu0  ;;  %v5633_v0 = vld [vmem:[%s9214_s13 + $0x30] sm:$0xff] }
0x18da   :  { %v4549_v46 = vsel %vm2128_vm8, %v4542_v48, -inf  ;;  %v5634_v23 = vld [vmem:[%s9214_s13 + $0x38] sm:$0xff] }
0x18dc   :  { %v8956_v60 = vpop.f32.mrb[130].mxu0 }
0x18dd   :  { %v6700_v55 = vpop.f32.mrb[131].mxu0 }
0x18de   :  { %v7077_v55 = vpack.c.bf16 %v5634_v23, %v5633_v0  ;;  %v5645_v0 = vld [vmem:[%s9216_s15 + $0x58] sm:$0xff] }
0x18e0   :  { %v8958_v31 = vpop.f32.mrb[132].mxu0 }
0x18e1   :  { %v6703_v25 = vpop.f32.mrb[133].mxu0 }
0x18e4   :  { %v4661_v39 = vpop.f32.mrb[134].mxu0 }
0x18e5   :  { %4678 = vrot.lane.b32.xlu0 %v4661_v39, %s7442_s6  ;;  %v6727_v34 = vpop.f32.mrb[135].mxu0 }
0x18f9   :  { %4550 = vmax.xlane.f32.xlu1 %v4549_v46 }
0x1904   :  { %4547 = vmax.xlane.f32.xlu0 %v4546_v2 }
0x1912   :  { %v4185_v58 = vpop.permute.xlu0 %4184 }
0x1913   :  { %v4193_v4 = vsel %vm468_vm3, %v3928_v40, %v4185_v58 }
0x1914   :  { %6743 = vmatmul.mubr.msk.f32.vlgmr.msra.gmra.mrb[74].mxu1 %vm314_vm2, %v4193_v4 }
0x1915   :  { %6745 = vmatprep.mubr.msk.f32.mxu1 %vm7436_vm1, %v7437_v45 }
0x1943   :  { %v4187_v6 = vpop.permute.xlu1 %4186 }
0x1944   :  { %v4194_v10 = vsel %vm468_vm3, %v3933_v43, %v4187_v6 }
0x1945   :  { %6746 = vmatmul.mubr.msk.f32.gmra.mrb[76].mxu1 %vm314_vm2, %v4194_v10 }
0x1946   :  { %6748 = vmatprep.mubr.msk.f32.mxu1 %vm7436_vm1, %v7437_v45 }
0x1947   :  { %v4189_v12 = vpop.permute.xlu1 %4188 }
0x1948   :  { %v4195_v18 = vsel %vm468_vm3, %v3938_v49, %v4189_v12 }
0x1957   :  { %v4679_v13 = vpop.permute.xlu0 %4678 }
0x1958   :  { %v8972_v16 = vsel %vm468_vm3, %v4422_v59, %v4679_v13 }
0x1959   :  { %v4693_v17 = vrot.slane %v8972_v16, 6 }
0x195b   :  { %v4699_v19 = vsel %vm2173_vm10, %v4195_v18, %v4693_v17 }
0x195c   :  { %6749 = vmatmul.mubr.msk.f32.gmra.mrb[78].mxu1 %vm314_vm2, %v4699_v19 }
0x195d   :  { %6751 = vmatprep.mubr.msk.f32.mxu1 %vm7436_vm1, %v7437_v45 }
0x1991   :  { %v4548_v7 = vpop.xlane.xlu0 %4547 }
0x1992   :  { %v4553_v28 = vsub.f32 %v4541_v41, %v4548_v7  ;;  %v7409_v7 = vld [vmem:[%s9209_s8 + $0x4] sm:$0xf] }
0x1994   :  { %v4557_v26 = vmul.f32 1.442695, %v4553_v28  ;;  %v9032_v28 = vrot.slane %v7409_v7, %v8560_v37 }
0x1996   :  { %7366 = vpow2.f32 %v4557_v26 }
0x19a0   :  { %v7367_v36 = vpop.eup %7366 }
0x19a1   :  { %v4564_v40 = vsel %vm2121_vm7, %v7367_v36, 0.0 }
0x19e7   :  { %v4792_v27 = vpop.f32.mrb[74].mxu1 }
0x19e8   :  { %v4793_v62 = vadd.f32 %v8985_v22, %v4792_v27  ;;  %v6744_v11 = vpop.f32.mrb[75].mxu1 }
0x19ea   :  { %v8989_v24 = vadd.f32 %v4793_v62, %v8639_v5  ;;  %v4551_v5 = vpop.xlane.xlu1 %4550 }
0x19eb   :  { %v4554_v20 = vsub.f32 %v4542_v48, %v4551_v5 }
0x19ec   :  { %v4821_v8 = vsel %vm314_vm2, %v8989_v24, 0.0 }
0x19ed   :  { %4822 = vadd.xlane.f32.xlu0 %v4821_v8  ;;  %v4559_v43 = vmul.f32 1.442695, %v4554_v20 }
0x19ef   :  { %7368 = vpow2.f32 %v4559_v43 }
0x19f9   :  { %v7369_v38 = vpop.eup %7368 }
0x19fa   :  { %v4567_v54 = vsel %vm2128_vm8, %v7369_v38, 0.0 }
0x1a18   :  { %v4797_v9 = vpop.f32.mrb[76].mxu1 }
0x1a19   :  { %v4798_v30 = vadd.f32 %v8985_v22, %v4797_v9  ;;  %v6747_v33 = vpop.f32.mrb[77].mxu1  ;;  %v9035_v9 = vrot.slane %v7409_v7, %v8563_v29 }
0x1a1b   :  { %v4817_v35 = vadd.f32 %v4798_v30, %v8644_v50 }
0x1a1d   :  { %v4824_v21 = vsel %vm314_vm2, %v4817_v35, 0.0 }
0x1a1e   :  { %4825 = vadd.xlane.f32.xlu0 %v4824_v21 }
0x1a22   :  { %4565 = vadd.xlane.f32.xlu0 %v4564_v40 }
0x1a2f   :  { %v4802_v47 = vpop.f32.mrb[78].mxu1 }
0x1a30   :  { %v4803_v49 = vadd.f32 %v8985_v22, %v4802_v47  ;;  %v6750_v53 = vpop.f32.mrb[79].mxu1 }
0x1a32   :  { %v8999_v42 = vadd.f32 %v4803_v49, %v8649_v63  ;;  %v5631_v63 = vld [vmem:[%s9214_s13 + $0x20] sm:$0xff] }
0x1a33   :  { %v7074_v59 = vpack.c.bf16 %v5632_v51, %v5631_v63  ;;  %v5643_v63 = vld [vmem:[%s9216_s15 + $0x48] sm:$0xff]  ;;  %v5644_v51 = vld [vmem:[%s9216_s15 + $0x50] sm:$0xff] }
0x1a34   :  { %v4827_v50 = vsel %vm314_vm2, %v8999_v42, 0.0  ;;  %v7083_v23 = vpack.c.bf16 %v5645_v0, %v5644_v51 }
0x1a35   :  { %4828 = vadd.xlane.f32.xlu1 %v4827_v50  ;;  %7075 = vmatpush3.bf16.msra.mxu0 %v7074_v59 }
0x1a36   :  { %7076 = vmatprep.subr.bf16.mxu0 %v7435_v44 }
0x1a39   :  { %4568 = vadd.xlane.f32.xlu1 %v4567_v54  ;;  %7078 = vmatpush3.bf16.msra.mxu0 %v7077_v55  ;;  %v5646_v55 = vld [vmem:[%s9216_s15 + $0x60] sm:$0xff] }
0x1a7a   :  { %v4823_v15 = vpop.xlane.xlu0 %4822 }
0x1a7b   :  { %v4836_v52 = vmul.f32 0.03125, %v4823_v15 }
0x1a7d   :  { %v4841_v3 = vsub.f32 %v8989_v24, %v4836_v52 }
0x1a7f   :  { %v4846_v14 = vmul.f32 %v4841_v3, %v4841_v3 }
0x1a81   :  { %v4851_v57 = vsel %vm314_vm2, %v4846_v14, 0.0 }
0x1a82   :  { %4852 = vadd.xlane.f32.xlu0 %v4851_v57  ;;  %v5642_v57 = vld [vmem:[%s9216_s15 + $0x40] sm:$0xff] }
0x1a83   :  { %v7080_v59 = vpack.c.bf16 %v5643_v63, %v5642_v57 }
0x1a85   :  { %7081 = vmatpush3.bf16.msra.mxu1 %v7080_v59 }
0x1a86   :  { %7082 = vmatprep.subr.bf16.mxu1 %v7435_v44 }
0x1a89   :  { %7084 = vmatpush3.bf16.msra.mxu1 %v7083_v23 }
0x1a8a   :  { %7085 = vmatprep.subr.bf16.mxu1 %v7435_v44 }
0x1aab   :  { %v4826_v25 = vpop.xlane.xlu0 %4825 }
0x1aac   :  { %v4837_v39 = vmul.f32 0.03125, %v4826_v25  ;;  %v5647_v25 = vld [vmem:[%s9216_s15 + $0x68] sm:$0xff] }
0x1aae   :  { %v4842_v34 = vsub.f32 %v4817_v35, %v4837_v39  ;;  %v7086_v39 = vpack.c.bf16 %v5647_v25, %v5646_v55 }
0x1aaf   :  { %v4566_v48 = vpop.xlane.xlu0 %4565 }
0x1ab0   :  { %7370 = vrcp.f32 %v4566_v48  ;;  %v4847_v46 = vmul.f32 %v4842_v34, %v4842_v34  ;;  %7087 = vmatpush3.bf16.msra.mxu1 %v7086_v39  ;;  %v5649_v48 = vld [vmem:[%s9216_s15 + $0x78] sm:$0xff] }
0x1ab1   :  { %7088 = vmatprep.subr.bf16.mxu1 %v7435_v44 }
0x1ab2   :  { %v4854_v41 = vsel %vm314_vm2, %v4847_v46, 0.0 }
0x1ab3   :  { %4855 = vadd.xlane.f32.xlu1 %v4854_v41 }
0x1aba   :  { %v7371_v2 = vpop.eup %7370 }
0x1abb   :  { %v4574_v58 = vmul.f32 %v7371_v2, %v7367_v36 }
0x1abd   :  { %6729 = vmatmul.mubr.msk.f32.gmra.mrb[136].mxu0 %vm2121_vm7, %v4574_v58  ;;  %v9084_v58 = vld [vmem:[%s9215_s14 + $0x1] ss:$0 sm:$0xff] }
0x1abe   :  { %6731 = vmatprep.mubr.msk.f32.mxu0 %vm7436_vm1, %v7437_v45 }
0x1ac2   :  { %v4829_v4 = vpop.xlane.xlu1 %4828 }
0x1ac3   :  { %v4838_v6 = vmul.f32 0.03125, %v4829_v4 }
0x1ac5   :  { %v4843_v10 = vsub.f32 %v8999_v42, %v4838_v6 }
0x1ac6   :  { %v4569_v12 = vpop.xlane.xlu1 %4568 }
0x1ac7   :  { %7372 = vrcp.f32 %v4569_v12  ;;  %v4848_v13 = vmul.f32 %v4843_v10, %v4843_v10 }
0x1ac9   :  { %v4857_v18 = vsel %vm314_vm2, %v4848_v13, 0.0 }
0x1aca   :  { %4858 = vadd.xlane.f32.xlu0 %v4857_v18 }
0x1ad1   :  { %v7373_v19 = vpop.eup %7372 }
0x1ad2   :  { %v4575_v27 = vmul.f32 %v7373_v19, %v7369_v38 }
0x1ad4   :  { %6732 = vmatmul.mubr.msk.f32.gmra.mrb[138].mxu0 %vm2121_vm7, %v4575_v27 }
0x1ad5   :  { %6765 = vmatprep.mubr.msk.f32.mxu0 %vm7436_vm1, %v7437_v45 }
0x1b0f   :  { %v4853_v62 = vpop.xlane.xlu0 %4852 }
0x1b10   :  { %v4866_v11 = vmul.f32 0.03125, %v4853_v62 }
0x1b12   :  { %v4871_v8 = vadd.f32 1e-06, %v4866_v11 }
0x1b14   :  { %7374 = vrsqrt.f32 %v4871_v8 }
0x1b1e   :  { %v7375_v26 = vpop.eup %7374 }
0x1b1f   :  { %v4881_v30 = vmul.f32 %v7375_v26, %v4841_v3 }
0x1b21   :  { %v4890_v33 = vmul.f32 %v9032_v28, %v4881_v30 }
0x1b23   :  { %v4899_v35 = vadd.f32 %v9035_v9, %v4890_v33 }
0x1b25   :  { %6766 = vmatmul.mubr.msk.f32.vlgmr.msra.gmra.mrb[140].mxu0 %vm314_vm2, %v4899_v35 }
0x1b26   :  { %6768 = vmatprep.mubr.msk.f32.mxu0 %vm7436_vm1, %v7437_v45 }
0x1b40   :  { %v4856_v21 = vpop.xlane.xlu1 %4855 }
0x1b41   :  { %v4867_v36 = vmul.f32 0.03125, %v4856_v21 }
0x1b43   :  { %v4872_v5 = vadd.f32 1e-06, %v4867_v36 }
0x1b45   :  { %7376 = vrsqrt.f32 %v4872_v5 }
0x1b4f   :  { %v7377_v40 = vpop.eup %7376 }
0x1b50   :  { %v4882_v20 = vmul.f32 %v7377_v40, %v4842_v34  ;;  %v5648_v34 = vld [vmem:[%s9216_s15 + $0x70] sm:$0xff] }
0x1b51   :  { %v7089_v46 = vpack.c.bf16 %v5649_v48, %v5648_v34 }
0x1b52   :  { %v4891_v43 = vmul.f32 %v9032_v28, %v4882_v20 }
0x1b53   :  { %7090 = vmatpush3.bf16.msra.mxu1 %v7089_v46 }
0x1b54   :  { %v4900_v47 = vadd.f32 %v9035_v9, %v4891_v43 }
0x1b56   :  { %6769 = vmatmul.mubr.msk.f32.gmra.mrb[142].mxu0 %vm314_vm2, %v4900_v47 }
0x1b57   :  { %v4859_v49 = vpop.xlane.xlu0 %4858  ;;  %6771 = vmatprep.mubr.msk.f32.mxu0 %vm7436_vm1, %v7437_v45 }
0x1b58   :  { %v4868_v53 = vmul.f32 0.03125, %v4859_v49 }
0x1b5a   :  { %v4873_v50 = vadd.f32 1e-06, %v4868_v53 }
0x1b5c   :  { %7378 = vrsqrt.f32 %v4873_v50 }
0x1b66   :  { %v7379_v38 = vpop.eup %7378 }
0x1b67   :  { %v4883_v54 = vmul.f32 %v7379_v38, %v4843_v10 }
0x1b69   :  { %v4892_v15 = vmul.f32 %v9032_v28, %v4883_v54 }
0x1b6b   :  { %v4901_v52 = vadd.f32 %v9035_v9, %v4892_v15 }
0x1b6d   :  { %6772 = vmatmul.mubr.msk.f32.gmra.mrb[144].mxu0 %vm314_vm2, %v4901_v52 }
0x1b6e   :  { %6774 = vmatprep.mubr.msk.f32.mxu0 %vm7436_vm1, %v7437_v45 }
0x1b90   :  { %v4666_v3 = vpop.f32.mrb[136].mxu0 }
0x1b91   :  { %4680 = vrot.lane.b32.xlu1 %v4666_v3, %s7442_s6  ;;  %v6730_v14 = vpop.f32.mrb[137].mxu0 }
0x1ba7   :  { %v4671_v41 = vpop.f32.mrb[138].mxu0 }
0x1ba8   :  { %4682 = vrot.lane.b32.xlu0 %v4671_v41, %s7442_s6  ;;  %v6733_v2 = vpop.f32.mrb[139].mxu0 }
0x1bf8   :  { %v4998_v44 = vpop.f32.mrb[140].mxu0 }
0x1bf9   :  { %v4999_v4 = vadd.f32 %v9084_v58, %v4998_v44  ;;  %v6767_v6 = vpop.f32.mrb[141].mxu0 }
0x1bfb   :  { %v5027_v10 = vmul.f32 0.044715, %v4999_v4  ;;  %v5022_v16 = vmul.f32 0.5, %v4999_v4 }
0x1bfd   :  { %v5032_v12 = vmul.f32 %v5027_v10, %v4999_v4 }
0x1bff   :  { %v5037_v18 = vmul.f32 %v5032_v12, %v4999_v4 }
0x1c01   :  { %v5042_v11 = vadd.f32 %v5037_v18, %v4999_v4 }
0x1c03   :  { %v4681_v13 = vpop.permute.xlu1 %4680  ;;  %v5047_v8 = vmul.f32 0.7978846, %v5042_v11 }
0x1c04   :  { %v4688_v19 = vsel %vm468_vm3, %v8956_v60, %v4681_v13 }
0x1c05   :  { %v4694_v27 = vrot.slane %v4688_v19, 6  ;;  %7380 = vtanh.f32 %v5047_v8 }
0x1c07   :  { %v4695_v62 = vsel %vm2173_vm10, %v4693_v17, %v4694_v27 }
0x1c08   :  { %6752 = vmatmul.mubr.msk.f32.gmra.mrb[80].mxu1 %vm314_vm2, %v4695_v62 }
0x1c09   :  { %6754 = vmatprep.mubr.msk.f32.mxu1 %vm7436_vm1, %v7437_v45 }
0x1c0f   :  { %v7381_v7 = vpop.eup %7380 }
0x1c10   :  { %v5057_v60 = vadd.f32 1.0, %v7381_v7 }
0x1c12   :  { %v5062_v17 = vmul.f32 %v5057_v60, %v5022_v16 }
0x1c1a   :  { %v4683_v26 = vpop.permute.xlu0 %4682 }
0x1c1b   :  { %v4689_v30 = vsel %vm468_vm3, %v8958_v31, %v4683_v26 }
0x1c1c   :  { %v4696_v33 = vrot.slane %v4689_v30, 6 }
0x1c1e   :  { %v4697_v35 = vsel %vm2173_vm10, %v4694_v27, %v4696_v33 }
0x1c1f   :  { %6755 = vmatmul.mubr.msk.f32.gmra.mrb[82].mxu1 %vm314_vm2, %v4697_v35 }
0x1c20   :  { %6796 = vmatprep.mubr.msk.f32.mxu1 %vm7436_vm1, %v7437_v45 }
0x1c23   :  { %6797 = vmatmul.mubr.msk.f32.vlgmr.msra.gmra.mrb[84].mxu1 %vm78_vm0, %v5062_v17 }
0x1c24   :  { %6799 = vmatprep.mubr.msk.f32.mxu1 %vm7436_vm1, %v7437_v45 }
0x1c29   :  { %v5003_v21 = vpop.f32.mrb[142].mxu0 }
0x1c2a   :  { %v5004_v36 = vadd.f32 %v9084_v58, %v5003_v21  ;;  %v6770_v31 = vpop.f32.mrb[143].mxu0 }
0x1c2c   :  { %v5028_v5 = vmul.f32 0.044715, %v5004_v36  ;;  %v5023_v54 = vmul.f32 0.5, %v5004_v36 }
0x1c2e   :  { %v5033_v40 = vmul.f32 %v5028_v5, %v5004_v36 }
0x1c30   :  { %v5038_v20 = vmul.f32 %v5033_v40, %v5004_v36 }
0x1c32   :  { %v5043_v43 = vadd.f32 %v5038_v20, %v5004_v36 }
0x1c34   :  { %v5048_v47 = vmul.f32 0.7978846, %v5043_v43 }
0x1c36   :  { %7382 = vtanh.f32 %v5048_v47 }
0x1c40   :  { %v7383_v49 = vpop.eup %7382  ;;  %v5008_v53 = vpop.f32.mrb[144].mxu0 }
0x1c41   :  { %v5009_v50 = vadd.f32 %v9084_v58, %v5008_v53  ;;  %v6773_v38 = vpop.f32.mrb[145].mxu0  ;;  %v5058_v15 = vadd.f32 1.0, %v7383_v49 }
0x1c43   :  { %v5029_v52 = vmul.f32 0.044715, %v5009_v50  ;;  %v5063_v3 = vmul.f32 %v5058_v15, %v5023_v54  ;;  %v5024_v0 = vmul.f32 0.5, %v5009_v50 }
0x1c45   :  { %v5034_v14 = vmul.f32 %v5029_v52, %v5009_v50  ;;  %6800 = vmatmul.mubr.msk.f32.gmra.mrb[86].mxu1 %vm78_vm0, %v5063_v3 }
0x1c46   :  { %6802 = vmatprep.mubr.msk.f32.mxu1 %vm7436_vm1, %v7437_v45 }
0x1c47   :  { %v5039_v57 = vmul.f32 %v5034_v14, %v5009_v50 }
0x1c49   :  { %v5044_v63 = vadd.f32 %v5039_v57, %v5009_v50 }
0x1c4b   :  { %v5049_v51 = vmul.f32 0.7978846, %v5044_v63 }
0x1c4d   :  { %7384 = vtanh.f32 %v5049_v51 }
0x1c57   :  { %v7385_v59 = vpop.eup %7384 }
0x1c58   :  { %v5059_v23 = vadd.f32 1.0, %v7385_v59 }
0x1c5a   :  { %v5064_v55 = vmul.f32 %v5059_v23, %v5024_v0 }
0x1c5c   :  { %6803 = vmatmul.mubr.msk.f32.gmra.mrb[88].mxu1 %vm78_vm0, %v5064_v55 }
0x1c5d   :  { %6805 = vmatprep.mubr.msk.f32.mxu1 %vm7436_vm1, %v7437_v45 }
0x1cdb   :  { %v4807_v25 = vpop.f32.mrb[80].mxu1 }
0x1cdc   :  { %v4808_v39 = vadd.f32 %v8985_v22, %v4807_v25  ;;  %v6753_v34 = vpop.f32.mrb[81].mxu1 }
0x1cde   :  { %v4819_v48 = vadd.f32 %v4808_v39, %v8654_v1  ;;  %v5651_v1 = vld [vmem:[%s9217_s16 + $0x1] ss:$0 sm:$0xff] }
0x1ce0   :  { %v4830_v46 = vsel %vm314_vm2, %v4819_v48, 0.0 }
0x1ce1   :  { %4831 = vadd.xlane.f32.xlu1 %v4830_v46 }
0x1cf2   :  { %v4812_v41 = vpop.f32.mrb[82].mxu1 }
0x1cf3   :  { %v4813_v2 = vadd.f32 %v8985_v22, %v4812_v41  ;;  %v6756_v44 = vpop.f32.mrb[83].mxu1 }
0x1cf5   :  { %v4820_v4 = vadd.f32 %v4813_v2, %v8660_v32 }
0x1cf6   :  { %v5165_v6 = vpop.f32.mrb[84].mxu1 }
0x1cf7   :  { %v6798_v10 = vpop.f32.mrb[85].mxu1  ;;  %v4833_v12 = vsel %vm1828_vm5, %v4820_v4, 0.0  ;;  %v5166_v19 = vadd.f32 %v5651_v1, %v5165_v6 }
0x1cf8   :  { %4834 = vadd.xlane.f32.xlu0 %v4833_v12 }
0x1cf9   :  { %v5186_v62 = vadd.f32 %v5166_v19, %v8989_v24 }
0x1cfb   :  { %v5195_v32 = vrot.slane %v5186_v62, 1 }
0x1d18   :  { %v5170_v13 = vpop.f32.mrb[86].mxu1 }
0x1d19   :  { %v6801_v18 = vpop.f32.mrb[87].mxu1  ;;  %v9141_v13 = vld [vmem:[%s9218_s17] sm:$0xf] }
0x1d2f   :  { %v5174_v27 = vpop.f32.mrb[88].mxu1 }
0x1d30   :  { %v5175_v11 = vadd.f32 %v5651_v1, %v5174_v27  ;;  %v6804_v22 = vpop.f32.mrb[89].mxu1  ;;  %v5222_v1 = vrot.slane %v9141_v13, %v8160_v61 }
0x1d32   :  { %v5187_v8 = vadd.f32 %v5175_v11, %v8999_v42 }
0x1d34   :  { %v5190_v7 = vrot.slane %v5187_v8, 1  ;;  %v5197_v26 = vrot.slane %v5187_v8, 2 }
0x1d36   :  { %v5199_v30 = vsel %vm5192_vm11, %v5195_v32, %v5197_v26  ;;  %v5193_v33 = vsel %vm5192_vm11, %v5186_v62, %v5190_v7 }
0x1d37   :  { %v5224_v60 = vsel %vm5200_vm12, %v5199_v30, 0.0  ;;  %v5201_v35 = vsel %vm5200_vm12, %v5193_v33, 0.0 }
0x1d38   :  { %5225 = vadd.xlane.f32.xlu0 %v5224_v60  ;;  %5202 = vadd.xlane.f32.xlu1 %v5201_v35 }
0x1d6e   :  { %v4832_v16 = vpop.xlane.xlu1 %4831 }
0x1d6f   :  { %v4839_v17 = vmul.f32 0.03125, %v4832_v16 }
0x1d71   :  { %v4844_v24 = vsub.f32 %v4819_v48, %v4839_v17 }
0x1d73   :  { %v4849_v21 = vmul.f32 %v4844_v24, %v4844_v24 }
0x1d75   :  { %v4860_v36 = vsel %vm314_vm2, %v4849_v21, 0.0 }
0x1d76   :  { %4861 = vadd.xlane.f32.xlu1 %v4860_v36 }
0x1d85   :  { %v4835_v42 = vpop.xlane.xlu0 %4834 }
0x1d86   :  { %v4840_v31 = vmul.f32 0.03125, %v4835_v42 }
0x1d88   :  { %v4845_v5 = vsub.f32 %v4820_v4, %v4840_v31 }
0x1d8a   :  { %v4850_v40 = vmul.f32 %v4845_v5, %v4845_v5 }
0x1d8c   :  { %v4863_v20 = vsel %vm1828_vm5, %v4850_v40, 0.0 }
0x1d8d   :  { %4864 = vadd.xlane.f32.xlu0 %v4863_v20 }
0x1dc5   :  { %v5226_v43 = vpop.xlane.xlu0 %5225  ;;  %v5203_v47 = vpop.xlane.xlu1 %5202 }
0x1dc6   :  { %v5227_v49 = vmul.f32 0.03125, %v5226_v43  ;;  %v5204_v53 = vmul.f32 0.03125, %v5203_v47 }
0x1dc8   :  { %v5228_v50 = vsub.f32 %v5199_v30, %v5227_v49  ;;  %v5205_v38 = vsub.f32 %v5193_v33, %v5204_v53 }
0x1dca   :  { %v5229_v54 = vmul.f32 %v5228_v50, %v5228_v50  ;;  %v5206_v15 = vmul.f32 %v5205_v38, %v5205_v38 }
0x1dcc   :  { %v5230_v52 = vsel %vm5200_vm12, %v5229_v54, 0.0  ;;  %v5207_v3 = vsel %vm5200_vm12, %v5206_v15, 0.0 }
0x1dcd   :  { %5231 = vadd.xlane.f32.xlu0 %v5230_v52  ;;  %5208 = vadd.xlane.f32.xlu1 %v5207_v3 }
0x1e03   :  { %v4862_v14 = vpop.xlane.xlu1 %4861 }
0x1e04   :  { %v4869_v57 = vmul.f32 0.03125, %v4862_v14 }
0x1e06   :  { %v4874_v63 = vadd.f32 1e-06, %v4869_v57 }
0x1e08   :  { %7386 = vrsqrt.f32 %v4874_v63 }
0x1e12   :  { %v7387_v51 = vpop.eup %7386 }
0x1e13   :  { %v4884_v59 = vmul.f32 %v7387_v51, %v4844_v24 }
0x1e15   :  { %v4893_v0 = vmul.f32 %v9032_v28, %v4884_v59  ;;  %v5265_v59 = vld [vmem:[%s9219_s18 + $0x8] sm:$0xff] }
0x1e17   :  { %v4902_v23 = vadd.f32 %v9035_v9, %v4893_v0 }
0x1e19   :  { %6775 = vmatmul.mubr.msk.f32.gmra.mrb[146].mxu0 %vm314_vm2, %v4902_v23  ;;  %v5264_v23 = vld [vmem:[%s9219_s18] sm:$0xff] }
0x1e1a   :  { %v4865_v55 = vpop.xlane.xlu0 %4864  ;;  %6777 = vmatprep.mubr.msk.f32.mxu0 %vm7436_vm1, %v7437_v45 }
0x1e1b   :  { %v4870_v25 = vmul.f32 0.03125, %v4865_v55  ;;  %v5266_v55 = vld [vmem:[%s9219_s18 + $0x10] sm:$0xff] }
0x1e1d   :  { %v4875_v39 = vadd.f32 1e-06, %v4870_v25  ;;  %v7093_v25 = vpack.c.bf16 %v5266_v55, %v5264_v23 }
0x1e1f   :  { %7388 = vrsqrt.f32 %v4875_v39  ;;  %v5269_v39 = vld [vmem:[%s9219_s18 + $0x28] sm:$0xff] }
0x1e29   :  { %v7389_v34 = vpop.eup %7388 }
0x1e2a   :  { %v4885_v48 = vmul.f32 %v7389_v34, %v4845_v5  ;;  %v5271_v34 = vld [vmem:[%s9219_s18 + $0x38] sm:$0xff] }
0x1e2c   :  { %v4894_v46 = vmul.f32 %v9032_v28, %v4885_v48  ;;  %v5217_v28 = vrot.slane %v9141_v13, %v8153_v56  ;;  %v7095_v48 = vpack.c.bf16 %v5271_v34, %v5269_v39 }
0x1e2e   :  { %v4903_v41 = vadd.f32 %v9035_v9, %v4894_v46  ;;  %v5268_v46 = vld [vmem:[%s9219_s18 + $0x20] sm:$0xff] }
0x1e30   :  { %6778 = vmatmul.mubr.msk.f32.gmra.mrb[148].mxu0 %vm314_vm2, %v4903_v41  ;;  %v5270_v41 = vld [vmem:[%s9219_s18 + $0x30] sm:$0xff] }
0x1e31   :  { %5351 = vmatprep.mubr.f32.mxu0 %v7437_v45 }
0x1e5a   :  { %v5232_v2 = vpop.xlane.xlu0 %5231  ;;  %v5209_v44 = vpop.xlane.xlu1 %5208 }
0x1e5b   :  { %v5233_v4 = vmul.f32 0.03125, %v5232_v2  ;;  %v5210_v6 = vmul.f32 0.03125, %v5209_v44  ;;  %v7097_v2 = vpack.c.bf16 %v5270_v41, %v5268_v46 }
0x1e5d   :  { %v5234_v10 = vadd.f32 1e-06, %v5233_v4  ;;  %v5211_v12 = vadd.f32 1e-06, %v5210_v6 }
0x1e5f   :  { %7390 = vrsqrt.f32 %v5234_v10  ;;  %v5257_v10 = vrot.slane %v9141_v13, %v8560_v37 }
0x1e60   :  { %7392 = vrsqrt.f32 %v5211_v12 }
0x1e69   :  { %v7391_v9 = vpop.eup %7390 }
0x1e6a   :  { %v7393_v18 = vpop.eup %7392  ;;  %v5236_v19 = vmul.f32 %v7391_v9, %v5228_v50 }
0x1e6b   :  { %v5213_v27 = vmul.f32 %v7393_v18, %v5205_v38 }
0x1e6c   :  { %v5237_v62 = vmul.f32 %v5236_v19, %v5217_v28 }
0x1e6d   :  { %v5218_v11 = vmul.f32 %v5217_v28, %v5213_v27  ;;  %v5262_v28 = vrot.slane %v9141_v13, %v8563_v29 }
0x1e6e   :  { %v5238_v22 = vadd.f32 %v5237_v62, %v5222_v1 }
0x1e6f   :  { %v5223_v8 = vadd.f32 %v5222_v1, %v5218_v11 }
0x1e71   :  { %v5239_v32 = vadd.f32 %v5238_v22, %v5223_v8  ;;  %v5272_v22 = vld [vmem:[%s9220_s19] sm:$0x3]  ;;  %s7443_s19 = smov [#allocation2]  }
0x1e72   :  { %v5277_v8 = vrot.slane %v5272_v22, %v8153_v56  ;;  %v5281_v37 = vrot.slane %v5272_v22, %v8160_v61  ;;  %s5388_s11 = sshll.u32 %s7443_s19, 4  ;;  %s5389_s11 = int_to_ptr.vmem [resolvable:$true] %s5388_s11 }
0x1e73   :  { %v5240_v7 = vmul.f32 0.5, %v5239_v32  ;;  %s7410_s2 = scalar_lea.vmem %s5389_s11, 64  ;;  %p7415_p1 = scmp.lt.s32.totalorder %s5389_s11, %s5389_s11 }
0x1e74   :  { %p7411_p0 = scmp.ne.s32.totalorder %s5389_s11, %s7410_s2  ;;  %p7416_p2 = scmp.lt.s32.totalorder %s7410_s2, %s7410_s2 }
0x1e75   :  { %v5241_v26 = vsel %vm5200_vm12, %v5240_v7, 0.0 }
0x1e76   :  { %5242 = vadd.xlane.f32.xlu1 %v5241_v26  ;;  %p7417_p3 = por %p7416_p2, %p7415_p1 }
0x1e78   :  { %p7418_p4 = pnand %p7417_p3, %p7411_p0 }
0x1eec   :  { %v5013_v30 = vpop.f32.mrb[146].mxu0 }
0x1eed   :  { %v5014_v33 = vadd.f32 %v9084_v58, %v5013_v30  ;;  %v6776_v60 = vpop.f32.mrb[147].mxu0 }
0x1eef   :  { %v5030_v35 = vmul.f32 0.044715, %v5014_v33  ;;  %v5025_v43 = vmul.f32 0.5, %v5014_v33 }
0x1ef1   :  { %v5035_v16 = vmul.f32 %v5030_v35, %v5014_v33 }
0x1ef3   :  { %v5040_v17 = vmul.f32 %v5035_v16, %v5014_v33 }
0x1ef5   :  { %v5045_v24 = vadd.f32 %v5040_v17, %v5014_v33 }
0x1ef7   :  { %v5050_v21 = vmul.f32 0.7978846, %v5045_v24 }
0x1ef9   :  { %7394 = vtanh.f32 %v5050_v21 }
0x1f03   :  { %v7395_v36 = vpop.eup %7394  ;;  %v5243_v42 = vpop.xlane.xlu1 %5242 }
0x1f04   :  { %v5018_v31 = vpop.f32.mrb[148].mxu0  ;;  %v5244_v5 = vmul.f32 0.03125, %v5243_v42  ;;  %v5060_v47 = vadd.f32 1.0, %v7395_v36 }
0x1f05   :  { %v5019_v40 = vadd.f32 %v9084_v58, %v5018_v31  ;;  %v6779_v20 = vpop.f32.mrb[149].mxu0 }
0x1f06   :  { %v5245_v49 = vsub.f32 %v5240_v7, %v5244_v5  ;;  %v5065_v50 = vmul.f32 %v5060_v47, %v5025_v43 }
0x1f07   :  { %v5031_v53 = vmul.f32 0.044715, %v5019_v40  ;;  %v5026_v57 = vmul.f32 0.5, %v5019_v40 }
0x1f08   :  { %6806 = vmatmul.mubr.msk.f32.gmra.mrb[90].mxu1 %vm78_vm0, %v5065_v50  ;;  %v5246_v54 = vmul.f32 %v5245_v49, %v5245_v49 }
0x1f09   :  { %v5036_v38 = vmul.f32 %v5031_v53, %v5019_v40  ;;  %6808 = vmatprep.mubr.msk.f32.mxu1 %vm7436_vm1, %v7437_v45  ;;  %v5267_v45 = vld [vmem:[%s9219_s18 + $0x18] sm:$0xff] }
0x1f0a   :  { %v5247_v52 = vsel %vm5200_vm12, %v5246_v54, 0.0  ;;  %v7091_v0 = vpack.c.bf16 %v5267_v45, %v5265_v59 }
0x1f0b   :  { %v5041_v15 = vmul.f32 %v5036_v38, %v5019_v40  ;;  %5248 = vadd.xlane.f32.xlu0 %v5247_v52 }
0x1f0c   :  { %7092 = vmatprep.subr.bf16.mxu0 %v7091_v0 }
0x1f0d   :  { %v5046_v3 = vadd.f32 %v5041_v15, %v5019_v40  ;;  %7094 = vmatpush1.bf16.msra.mxu0 %v7093_v25 }
0x1f0e   :  { %7096 = vmatprep.subr.bf16.mxu0 %v7095_v48 }
0x1f0f   :  { %v5051_v14 = vmul.f32 0.7978846, %v5046_v3 }
0x1f11   :  { %7396 = vtanh.f32 %v5051_v14  ;;  %7098 = vmatpush1.bf16.msra.mxu0 %v7097_v2 }
0x1f1b   :  { %v7397_v58 = vpop.eup %7396 }
0x1f1c   :  { %v5061_v63 = vadd.f32 1.0, %v7397_v58 }
0x1f1e   :  { %v5066_v51 = vmul.f32 %v5061_v63, %v5026_v57 }
0x1f20   :  { %6809 = vmatmul.mubr.msk.f32.gmra.mrb[92].mxu1 %vm78_vm0, %v5066_v51 }
0x1f98   :  { %v5249_v44 = vpop.xlane.xlu0 %5248 }
0x1f99   :  { %v5250_v4 = vmul.f32 0.03125, %v5249_v44 }
0x1f9b   :  { %v5251_v6 = vadd.f32 1e-06, %v5250_v4 }
0x1f9d   :  { %7398 = vrsqrt.f32 %v5251_v6 }
0x1fa7   :  { %v7399_v12 = vpop.eup %7398 }
0x1fa8   :  { %v5253_v9 = vmul.f32 %v7399_v12, %v5245_v49 }
0x1faa   :  { %v5258_v18 = vmul.f32 %v5257_v10, %v5253_v9 }
0x1fac   :  { %v5263_v1 = vadd.f32 %v5262_v28, %v5258_v18 }
0x1fae   :  { %5657 = vmatmul.mubr.msk.f32.vlgmr.msra.gmra.mrb[150].mxu0 %vm314_vm2, %v5263_v1 }
0x1fdb   :  { %v5179_v19 = vpop.f32.mrb[90].mxu1 }
0x1fdc   :  { %v6807_v27 = vpop.f32.mrb[91].mxu1 }
0x1ff3   :  { %v5183_v62 = vpop.f32.mrb[92].mxu1 }
0x1ff4   :  { %v6810_v11 = vpop.f32.mrb[93].mxu1 }
0x2081   :  { %v5353_v32 = vpop.f32.mrb[150].mxu0 }
0x2082   :  { %v5354_v7 = vadd.f32 %v5353_v32, %v5277_v8  ;;  %v5355_v29 = vpop.f32.mrb[151].mxu0 }
0x2083   :  { %v5356_v13 = vadd.f32 %v5355_v29, %v5281_v37 }
0x2084   :  { %v5358_v26 = vsub.f32 0.0, %v5354_v7 }
0x2085   :  { %v5359_v30 = vsub.f32 0.0, %v5356_v13 }
0x2086   :  { %v5360_v33 = vmul.f32 1.442695, %v5358_v26 }
0x2087   :  { %v5362_v60 = vmul.f32 1.442695, %v5359_v30 }
0x2088   :  { %7400 = vpow2.f32 %v5360_v33 }
0x2089   :  { %7402 = vpow2.f32 %v5362_v60 }
0x2092   :  { %v7401_v35 = vpop.eup %7400 }
0x2093   :  { %v7403_v16 = vpop.eup %7402  ;;  %v5364_v17 = vadd.f32 1.0, %v7401_v35 }
0x2094   :  { %v5365_v24 = vadd.f32 1.0, %v7403_v16 }
0x2095   :  { %7404 = vrcp.f32 %v5364_v17 }
0x2096   :  { %7406 = vrcp.f32 %v5365_v24 }
0x209f   :  { %v7405_v56 = vpop.eup %7404 }
0x20a0   :  { %v7407_v61 = vpop.eup %7406 }
0x20a1   :  { %v5372_v21 = vcombine.low %v7405_v56, %v7407_v61 }
0x20a3   :  { %5658 = vst.sshfl [vmem:[#allocation2] sm:$0x33 pattern:$0x76325410] %v5372_v21 }
0x20a4   :  { %7421 = shalt.err (!%p7418_p4)
}
0x20a5   :  { %s7422_s3 = scalar_lea.hbm %s9221_s20, 64 }
0x20a6   :  { %p7423_p5 = scmp.ne.s32.totalorder %s9221_s20, %s7422_s3  ;;  %p7426_p6 = scmp.lt.u32.totalorder %s7422_s3, %s9221_s20 }
0x20a8   :  { %p7428_p7 = pnand %p7426_p6, %p7423_p5 }
0x20aa   :  { %7431 = shalt.err (!%p7428_p7)
}
0x20ab   :  { %5391 = dma.vmem_to_hbm [thread:$0]  %s5389_s11, 64, %s9221_s20, [#allocation3]  }
0x20ac   :  { %7432 = dma.done.wait [#allocation3], 64  }
0x20ad   :  { %7433 = vsyncadd [#allocation3], 4294967232 }
0x20ae   :  { %5395 = vsyncpa [#allocation3], 1 }

</bundles_post_ra>
